<compile_context>
chip_gen: v7x
topology: tpu7x:2x2x1
jax: 0.10.0
libtpu: 0.0.40
codegen_flags: <defaults>
</compile_context>

<pallas_src>
import functools
import math

import jax
import jax.numpy as jnp
from jax.experimental import pallas as pl
from jax.experimental.pallas import tpu as pltpu

# ---- small synthetic CLIP-text-transformer config ----
N_PROMPTS = 2          # two learned prompts (like [' '.join(['X']*L)] * 2)
SEQ = 8                # context length (77 in real CLIP)
WIDTH = 32             # transformer width
HEADS = 4
HEAD_DIM = WIDTH // HEADS
LAYERS = 2
MLP_HIDDEN = 4 * WIDTH
EMBED = 32             # text_projection output dim

_LAYER_PARAM_NAMES = ('ln1_g', 'ln1_b', 'wq', 'bq', 'wk', 'bk', 'wv', 'bv',
                      'wo', 'bo', 'ln2_g', 'ln2_b', 'w1', 'b1', 'w2', 'b2')
_N_PER_LAYER = len(_LAYER_PARAM_NAMES)


# ---------------------------------------------------------------- kernel ----
def _layernorm(x, g, b, eps=1e-5):
    mu = jnp.mean(x, axis=-1, keepdims=True)
    var = jnp.mean((x - mu) ** 2, axis=-1, keepdims=True)
    return (x - mu) * jax.lax.rsqrt(var + eps) * g + b


def fused_prompts_kernel(eot_ref, emb_ref, pos_ref, img_ref,
                         lnf_g_ref, lnf_b_ref, proj_ref,
                         *rest, apply_softmax):
    """Whole Prompts.forward in one kernel.

    eot_ref : (1,) int32 in SMEM  — argmax of tokenized prompt ids.
    emb_ref : (P*S, W)            — learned prompt embeddings (flattened).
    pos_ref : (S, W)              — positional embedding.
    img_ref : (M, E)              — flattened image features (B*K, E).
    rest    : 16 params per layer for `LAYERS` layers, then the output ref.
    """
    o_ref = rest[-1]
    layer_refs = rest[:-1]
    n_layers = len(layer_refs) // _N_PER_LAYER

    PS = N_PROMPTS * SEQ

    # x = prompts + positional_embedding.  The PyTorch permute(1,0,2) /
    # permute-back around the transformer is a pure layout change; we keep the
    # (P*S, W) layout throughout.
    pos = pos_ref[...].astype(jnp.float32)
    x = emb_ref[...].astype(jnp.float32) + jnp.concatenate(
        [pos] * N_PROMPTS, axis=0)

    # --- masks, built ONCE per invocation (hoisted out of the layer loop) ---
    row = jax.lax.broadcasted_iota(jnp.int32, (PS, PS), 0)
    col = jax.lax.broadcasted_iota(jnp.int32, (PS, PS), 1)
    allow = col <= row                                   # causal within prompt
    in_block = jnp.zeros((PS, PS), jnp.bool_)
    for p in range(N_PROMPTS):                           # block-diagonal: no
        rb = (row >= p * SEQ) & (row < (p + 1) * SEQ)    # cross-prompt attn
        cb = (col >= p * SEQ) & (col < (p + 1) * SEQ)
        in_block = in_block | (rb & cb)
    attn_mask = jnp.where(in_block & allow, 0.0, -1e30).astype(jnp.float32)

    lane = jax.lax.broadcasted_iota(jnp.int32, (1, WIDTH), 1)
    head_masks = [((lane >= h * HEAD_DIM) & (lane < (h + 1) * HEAD_DIM)
                   ).astype(jnp.float32) for h in range(HEADS)]

    scale = 1.0 / math.sqrt(HEAD_DIM)

    # --- transformer (layers unrolled in Python) ---
    for l in range(n_layers):
        (ln1_g, ln1_b, wq, bq, wk, bk, wv, bv, wo, bo,
         ln2_g, ln2_b, w1, b1, w2, b2) = layer_refs[
            l * _N_PER_LAYER:(l + 1) * _N_PER_LAYER]

        # self-attention branch
        xn = _layernorm(x, ln1_g[...], ln1_b[...])
        q = jnp.dot(xn, wq[...], preferred_element_type=jnp.float32) + bq[...]
        k = jnp.dot(xn, wk[...], preferred_element_type=jnp.float32) + bk[...]
        v = jnp.dot(xn, wv[...], preferred_element_type=jnp.float32) + bv[...]

        attn = jnp.zeros((PS, WIDTH), jnp.float32)
        for h in range(HEADS):
            # (q*m_h)·k contracts only head h's dims; p @ (v*m_h) writes only
            # head h's output columns -> no lane slicing / concat needed.
            qh = q * head_masks[h] * scale
            s = jnp.einsum('qd,kd->qk', qh, k,
                           preferred_element_type=jnp.float32) + attn_mask
            s = s - jnp.max(s, axis=-1, keepdims=True)   # keep for stability
            e = jnp.exp(s)
            p = e / jnp.sum(e, axis=-1, keepdims=True)
            attn = attn + jnp.dot(p, v * head_masks[h],
                                  preferred_element_type=jnp.float32)
        x = x + jnp.dot(attn, wo[...],
                        preferred_element_type=jnp.float32) + bo[...]

        # MLP branch (QuickGELU)
        xn2 = _layernorm(x, ln2_g[...], ln2_b[...])
        h1 = jnp.dot(xn2, w1[...], preferred_element_type=jnp.float32) + b1[...]
        h1 = h1 * jax.nn.sigmoid(1.702 * h1)
        x = x + jnp.dot(h1, w2[...],
                        preferred_element_type=jnp.float32) + b2[...]

    # --- EOT gather inside the kernel (one-hot selection matmul). The single
    #     eot index is shared by all prompts, matching the reference. ---
    eot = eot_ref[0]
    cols = jax.lax.broadcasted_iota(jnp.int32, (1, PS), 1)
    sel = jnp.concatenate(
        [jnp.where(cols == (p * SEQ + eot), 1.0, 0.0).astype(jnp.float32)
         for p in range(N_PROMPTS)], axis=0)             # (P, P*S)
    x_eot = jnp.dot(sel, x, preferred_element_type=jnp.float32)   # (P, W)

    # ln_final + text projection (layernorm commutes with the per-row gather)
    xe = _layernorm(x_eot, lnf_g_ref[...], lnf_b_ref[...])
    tf = jnp.dot(xe, proj_ref[...], preferred_element_type=jnp.float32)  # (P,E)

    # similarity (only text features normalized, as in the reference)
    tnorm = jnp.sqrt(jnp.sum(tf * tf, axis=-1, keepdims=True))
    tfn = tf / tnorm
    img = img_ref[...].astype(jnp.float32)                               # (M,E)
    sim = 100.0 * jnp.einsum('md,pd->mp', img, tfn,
                             preferred_element_type=jnp.float32)         # (M,P)

    if apply_softmax:
        sim = sim - jnp.max(sim, axis=-1, keepdims=True)
        e = jnp.exp(sim)
        probs = e / jnp.sum(e, axis=-1, keepdims=True)
        o_ref[...] = probs[:, 0:1].astype(o_ref.dtype)   # only column 0 stored
    else:
        o_ref[...] = sim.astype(o_ref.dtype)             # raw similarities


# ------------------------------------------------------------- wrapper ------
def prompts_forward(params, tensor, flag=1):
    """Equivalent of Prompts.forward(tensor, flag) — one fused pallas_call."""
    P, S, W = params['embedding_prompt'].shape
    emb2d = params['embedding_prompt'].reshape(P * S, W)
    eot = jnp.argmax(params['tokenized_prompts'][0]).astype(jnp.int32).reshape(1)

    B, K, D = tensor.shape
    img = tensor.reshape(B * K, D)          # batched version of the python loop

    layer_arrays = []
    for lp in params['layers']:
        layer_arrays += [lp[n] for n in _LAYER_PARAM_NAMES]

    apply_softmax = (flag == 1)
    out_cols = 1 if apply_softmax else P

    kern = functools.partial(fused_prompts_kernel, apply_softmax=apply_softmax)
    n_inputs = 7 + len(layer_arrays)
    in_specs = ([pl.BlockSpec(memory_space=pltpu.MemorySpace.SMEM)]     # eot
                + [pl.BlockSpec(memory_space=pltpu.MemorySpace.VMEM)]
                * (n_inputs - 1))

    out = pl.pallas_call(
        kern,
        out_shape=jax.ShapeDtypeStruct((B * K, out_cols), jnp.float32),
        in_specs=in_specs,
        out_specs=pl.BlockSpec(memory_space=pltpu.MemorySpace.VMEM),
    )(eot, emb2d, params['positional_embedding'], img,
      params['lnf_g'], params['lnf_b'], params['text_projection'],
      *layer_arrays)

    if apply_softmax:
        return out[:, 0]        # torch.cat of similarity[:, 0] over the loop
    return out                  # torch.cat of raw similarities along dim 0


# ------------------------------------------------------------ param init -----
def init_params(key):
    keys = iter(jax.random.split(key, 64))

    def nrm(shape, std):
        return jax.random.normal(next(keys), shape, jnp.float32) * std

    params = {
        # nn.Parameter(token_embedding(...)) stand-in (xavier-style scale)
        'embedding_prompt': nrm((N_PROMPTS, SEQ, WIDTH), 1.0 / math.sqrt(WIDTH)),
        'positional_embedding': nrm((SEQ, WIDTH), 0.01),
        'lnf_g': jnp.ones((1, WIDTH), jnp.float32),
        'lnf_b': jnp.zeros((1, WIDTH), jnp.float32),
        'text_projection': nrm((WIDTH, EMBED), 1.0 / math.sqrt(WIDTH)),
        # synthetic tokenized prompt: SOT, L * "X", EOT(highest id), padding
        # TODO(synk): clip.tokenize (BPE string tokenization) has no Pallas/JAX
        # equivalent; replaced by a fixed deterministic token-id array.
        'tokenized_prompts': jnp.array(
            [[49406, 343, 343, 343, 343, 49407, 0, 0]], dtype=jnp.int32),
    }
    layers = []
    for _ in range(LAYERS):
        layers.append({
            'ln1_g': jnp.ones((1, WIDTH), jnp.float32),
            'ln1_b': jnp.zeros((1, WIDTH), jnp.float32),
            # q/k/v projections stored separately & pre-transposed (in, out)
            # so the kernel never lane-slices a fused qkv tensor.
            'wq': nrm((WIDTH, WIDTH), 0.02),
            'bq': jnp.zeros((1, WIDTH), jnp.float32),
            'wk': nrm((WIDTH, WIDTH), 0.02),
            'bk': jnp.zeros((1, WIDTH), jnp.float32),
            'wv': nrm((WIDTH, WIDTH), 0.02),
            'bv': jnp.zeros((1, WIDTH), jnp.float32),
            'wo': nrm((WIDTH, WIDTH), 0.02),
            'bo': jnp.zeros((1, WIDTH), jnp.float32),
            'ln2_g': jnp.ones((1, WIDTH), jnp.float32),
            'ln2_b': jnp.zeros((1, WIDTH), jnp.float32),
            'w1': nrm((WIDTH, MLP_HIDDEN), 0.02),
            'b1': jnp.zeros((1, MLP_HIDDEN), jnp.float32),
            'w2': nrm((MLP_HIDDEN, WIDTH), 0.02),
            'b2': jnp.zeros((1, WIDTH), jnp.float32),
        })
    params['layers'] = layers
    return params


# ----------------------------------------------------------------- main ------
if __name__ == "__main__":
    key = jax.random.PRNGKey(0)
    kp, kt = jax.random.split(key)
    params = init_params(kp)

    # image features: (B, K, D) -> loop body sees tensor[i] of shape (K, D)
    tensor = jax.random.normal(kt, (2, 1, EMBED), jnp.float32)

    probs = prompts_forward(params, tensor, flag=1)     # shape (B*K,)
    jax.block_until_ready(probs)

    # also exercise the flag=0 branch once
    sims = prompts_forward(params, tensor, flag=0)      # shape (B*K, P)
    jax.block_until_ready(sims)

    print("KERNEL_OK")
</pallas_src>

<mosaic_0001>
module attributes {stable_mosaic.version = 11 : i64} {
  func.func @fused_prompts_kernel(%arg0: memref<1xi32, #tpu.memory_space<smem>>, %arg1: memref<16x32xf32, #tpu.memory_space<vmem>>, %arg2: memref<8x32xf32, #tpu.memory_space<vmem>>, %arg3: memref<2x32xf32, #tpu.memory_space<vmem>>, %arg4: memref<1x32xf32, #tpu.memory_space<vmem>>, %arg5: memref<1x32xf32, #tpu.memory_space<vmem>>, %arg6: memref<32x32xf32, #tpu.memory_space<vmem>>, %arg7: memref<1x32xf32, #tpu.memory_space<vmem>>, %arg8: memref<1x32xf32, #tpu.memory_space<vmem>>, %arg9: memref<32x32xf32, #tpu.memory_space<vmem>>, %arg10: memref<1x32xf32, #tpu.memory_space<vmem>>, %arg11: memref<32x32xf32, #tpu.memory_space<vmem>>, %arg12: memref<1x32xf32, #tpu.memory_space<vmem>>, %arg13: memref<32x32xf32, #tpu.memory_space<vmem>>, %arg14: memref<1x32xf32, #tpu.memory_space<vmem>>, %arg15: memref<32x32xf32, #tpu.memory_space<vmem>>, %arg16: memref<1x32xf32, #tpu.memory_space<vmem>>, %arg17: memref<1x32xf32, #tpu.memory_space<vmem>>, %arg18: memref<1x32xf32, #tpu.memory_space<vmem>>, %arg19: memref<32x128xf32, #tpu.memory_space<vmem>>, %arg20: memref<1x128xf32, #tpu.memory_space<vmem>>, %arg21: memref<128x32xf32, #tpu.memory_space<vmem>>, %arg22: memref<1x32xf32, #tpu.memory_space<vmem>>, %arg23: memref<1x32xf32, #tpu.memory_space<vmem>>, %arg24: memref<1x32xf32, #tpu.memory_space<vmem>>, %arg25: memref<32x32xf32, #tpu.memory_space<vmem>>, %arg26: memref<1x32xf32, #tpu.memory_space<vmem>>, %arg27: memref<32x32xf32, #tpu.memory_space<vmem>>, %arg28: memref<1x32xf32, #tpu.memory_space<vmem>>, %arg29: memref<32x32xf32, #tpu.memory_space<vmem>>, %arg30: memref<1x32xf32, #tpu.memory_space<vmem>>, %arg31: memref<32x32xf32, #tpu.memory_space<vmem>>, %arg32: memref<1x32xf32, #tpu.memory_space<vmem>>, %arg33: memref<1x32xf32, #tpu.memory_space<vmem>>, %arg34: memref<1x32xf32, #tpu.memory_space<vmem>>, %arg35: memref<32x128xf32, #tpu.memory_space<vmem>>, %arg36: memref<1x128xf32, #tpu.memory_space<vmem>>, %arg37: memref<128x32xf32, #tpu.memory_space<vmem>>, %arg38: memref<1x32xf32, #tpu.memory_space<vmem>>, %arg39: memref<2x1xf32, #tpu.memory_space<vmem>>) attributes {dimension_semantics = [], scalar_prefetch = 0 : i64, scratch_operands = 0 : i64, tpu.core_type = #tpu.core_type<tc>} {
    %c0 = arith.constant 0 : index
    %c0_0 = arith.constant 0 : index
    %0 = vector.load %arg2[%c0, %c0_0] : memref<8x32xf32, #tpu.memory_space<vmem>>, vector<8x32xf32>
    %c0_1 = arith.constant 0 : index
    %c0_2 = arith.constant 0 : index
    %1 = vector.load %arg1[%c0_1, %c0_2] : memref<16x32xf32, #tpu.memory_space<vmem>>, vector<16x32xf32>
    %2 = tpu.concatenate %0, %0 in 0 : vector<8x32xf32>, vector<8x32xf32> -> vector<16x32xf32>
    %3 = arith.addf %1, %2 : vector<16x32xf32>
    %4 = tpu.iota {dimensions = array<i32: 0>} : vector<16x16xi32>
    %5 = tpu.iota {dimensions = array<i32: 1>} : vector<16x16xi32>
    %6 = arith.cmpi sle, %5, %4 : vector<16x16xi32>
    %false = arith.constant false
    %7 = vector.broadcast %false : i1 to vector<16x16xi1>
    %c0_i32 = arith.constant 0 : i32
    %8 = vector.broadcast %c0_i32 : i32 to vector<16x16xi32>
    %9 = arith.cmpi sge, %4, %8 : vector<16x16xi32>
    %c8_i32 = arith.constant 8 : i32
    %10 = vector.broadcast %c8_i32 : i32 to vector<16x16xi32>
    %11 = arith.cmpi slt, %4, %10 : vector<16x16xi32>
    %12 = arith.andi %9, %11 : vector<16x16xi1>
    %c0_i32_3 = arith.constant 0 : i32
    %13 = vector.broadcast %c0_i32_3 : i32 to vector<16x16xi32>
    %14 = arith.cmpi sge, %5, %13 : vector<16x16xi32>
    %c8_i32_4 = arith.constant 8 : i32
    %15 = vector.broadcast %c8_i32_4 : i32 to vector<16x16xi32>
    %16 = arith.cmpi slt, %5, %15 : vector<16x16xi32>
    %17 = arith.andi %14, %16 : vector<16x16xi1>
    %18 = arith.andi %12, %17 : vector<16x16xi1>
    %19 = arith.ori %7, %18 : vector<16x16xi1>
    %c8_i32_5 = arith.constant 8 : i32
    %20 = vector.broadcast %c8_i32_5 : i32 to vector<16x16xi32>
    %21 = arith.cmpi sge, %4, %20 : vector<16x16xi32>
    %c16_i32 = arith.constant 16 : i32
    %22 = vector.broadcast %c16_i32 : i32 to vector<16x16xi32>
    %23 = arith.cmpi slt, %4, %22 : vector<16x16xi32>
    %24 = arith.andi %21, %23 : vector<16x16xi1>
    %c8_i32_6 = arith.constant 8 : i32
    %25 = vector.broadcast %c8_i32_6 : i32 to vector<16x16xi32>
    %26 = arith.cmpi sge, %5, %25 : vector<16x16xi32>
    %c16_i32_7 = arith.constant 16 : i32
    %27 = vector.broadcast %c16_i32_7 : i32 to vector<16x16xi32>
    %28 = arith.cmpi slt, %5, %27 : vector<16x16xi32>
    %29 = arith.andi %26, %28 : vector<16x16xi1>
    %30 = arith.andi %24, %29 : vector<16x16xi1>
    %31 = arith.ori %19, %30 : vector<16x16xi1>
    %32 = arith.andi %31, %6 : vector<16x16xi1>
    %cst = arith.constant 0.000000e+00 : f32
    %cst_8 = arith.constant -1.000000e+30 : f32
    %33 = vector.broadcast %cst : f32 to vector<16x16xf32>
    %34 = vector.broadcast %cst_8 : f32 to vector<16x16xf32>
    %35 = arith.select %32, %33, %34 : vector<16x16xi1>, vector<16x16xf32>
    %36 = tpu.iota {dimensions = array<i32: 1>} : vector<1x32xi32>
    %c0_i32_9 = arith.constant 0 : i32
    %37 = vector.broadcast %c0_i32_9 : i32 to vector<1x32xi32>
    %38 = arith.cmpi sge, %36, %37 : vector<1x32xi32>
    %c8_i32_10 = arith.constant 8 : i32
    %39 = vector.broadcast %c8_i32_10 : i32 to vector<1x32xi32>
    %40 = arith.cmpi slt, %36, %39 : vector<1x32xi32>
    %41 = arith.andi %38, %40 : vector<1x32xi1>
    %42 = arith.extui %41 : vector<1x32xi1> to vector<1x32xi32>
    %43 = arith.sitofp %42 : vector<1x32xi32> to vector<1x32xf32>
    %c8_i32_11 = arith.constant 8 : i32
    %44 = vector.broadcast %c8_i32_11 : i32 to vector<1x32xi32>
    %45 = arith.cmpi sge, %36, %44 : vector<1x32xi32>
    %c16_i32_12 = arith.constant 16 : i32
    %46 = vector.broadcast %c16_i32_12 : i32 to vector<1x32xi32>
    %47 = arith.cmpi slt, %36, %46 : vector<1x32xi32>
    %48 = arith.andi %45, %47 : vector<1x32xi1>
    %49 = arith.extui %48 : vector<1x32xi1> to vector<1x32xi32>
    %50 = arith.sitofp %49 : vector<1x32xi32> to vector<1x32xf32>
    %c16_i32_13 = arith.constant 16 : i32
    %51 = vector.broadcast %c16_i32_13 : i32 to vector<1x32xi32>
    %52 = arith.cmpi sge, %36, %51 : vector<1x32xi32>
    %c24_i32 = arith.constant 24 : i32
    %53 = vector.broadcast %c24_i32 : i32 to vector<1x32xi32>
    %54 = arith.cmpi slt, %36, %53 : vector<1x32xi32>
    %55 = arith.andi %52, %54 : vector<1x32xi1>
    %56 = arith.extui %55 : vector<1x32xi1> to vector<1x32xi32>
    %57 = arith.sitofp %56 : vector<1x32xi32> to vector<1x32xf32>
    %c24_i32_14 = arith.constant 24 : i32
    %58 = vector.broadcast %c24_i32_14 : i32 to vector<1x32xi32>
    %59 = arith.cmpi sge, %36, %58 : vector<1x32xi32>
    %c32_i32 = arith.constant 32 : i32
    %60 = vector.broadcast %c32_i32 : i32 to vector<1x32xi32>
    %61 = arith.cmpi slt, %36, %60 : vector<1x32xi32>
    %62 = arith.andi %59, %61 : vector<1x32xi1>
    %63 = arith.extui %62 : vector<1x32xi1> to vector<1x32xi32>
    %64 = arith.sitofp %63 : vector<1x32xi32> to vector<1x32xf32>
    %c0_15 = arith.constant 0 : index
    %c0_16 = arith.constant 0 : index
    %65 = vector.load %arg7[%c0_15, %c0_16] : memref<1x32xf32, #tpu.memory_space<vmem>>, vector<1x32xf32>
    %c0_17 = arith.constant 0 : index
    %c0_18 = arith.constant 0 : index
    %66 = vector.load %arg8[%c0_17, %c0_18] : memref<1x32xf32, #tpu.memory_space<vmem>>, vector<1x32xf32>
    %cst_19 = arith.constant dense<0.000000e+00> : vector<16xf32>
    %67 = vector.multi_reduction <add>, %3, %cst_19 [1] : vector<16x32xf32> to vector<16xf32>
    %68 = vector.shape_cast %67 : vector<16xf32> to vector<16x1xf32>
    %cst_20 = arith.constant 3.200000e+01 : f32
    %69 = vector.broadcast %cst_20 : f32 to vector<16x1xf32>
    %70 = arith.divf %68, %69 : vector<16x1xf32>
    %71 = vector.broadcast %70 : vector<16x1xf32> to vector<16x32xf32>
    %72 = arith.subf %3, %71 : vector<16x32xf32>
    %73 = arith.mulf %72, %72 : vector<16x32xf32>
    %cst_21 = arith.constant dense<0.000000e+00> : vector<16xf32>
    %74 = vector.multi_reduction <add>, %73, %cst_21 [1] : vector<16x32xf32> to vector<16xf32>
    %75 = vector.shape_cast %74 : vector<16xf32> to vector<16x1xf32>
    %cst_22 = arith.constant 3.200000e+01 : f32
    %76 = vector.broadcast %cst_22 : f32 to vector<16x1xf32>
    %77 = arith.divf %75, %76 : vector<16x1xf32>
    %78 = vector.broadcast %70 : vector<16x1xf32> to vector<16x32xf32>
    %79 = arith.subf %3, %78 : vector<16x32xf32>
    %cst_23 = arith.constant 9.99999974E-6 : f32
    %80 = vector.broadcast %cst_23 : f32 to vector<16x1xf32>
    %81 = arith.addf %77, %80 : vector<16x1xf32>
    %82 = math.rsqrt %81 : vector<16x1xf32>
    %83 = vector.broadcast %82 : vector<16x1xf32> to vector<16x32xf32>
    %84 = arith.mulf %79, %83 : vector<16x32xf32>
    %85 = vector.broadcast %65 : vector<1x32xf32> to vector<16x32xf32>
    %86 = arith.mulf %84, %85 : vector<16x32xf32>
    %87 = vector.broadcast %66 : vector<1x32xf32> to vector<16x32xf32>
    %88 = arith.addf %86, %87 : vector<16x32xf32>
    %c0_24 = arith.constant 0 : index
    %c0_25 = arith.constant 0 : index
    %89 = vector.load %arg9[%c0_24, %c0_25] : memref<32x32xf32, #tpu.memory_space<vmem>>, vector<32x32xf32>
    %cst_26 = arith.constant dense<0.000000e+00> : vector<16x32xf32>
    %90 = tpu.matmul %88, %89, %cst_26 {dimension_numbers = #tpu.dot_dimension_numbers<[1], [0], [0], [1], [0, 0, 1, 1], [], []>} : vector<16x32xf32>, vector<32x32xf32>, vector<16x32xf32> -> vector<16x32xf32>
    %c0_27 = arith.constant 0 : index
    %c0_28 = arith.constant 0 : index
    %91 = vector.load %arg10[%c0_27, %c0_28] : memref<1x32xf32, #tpu.memory_space<vmem>>, vector<1x32xf32>
    %92 = vector.broadcast %91 : vector<1x32xf32> to vector<16x32xf32>
    %93 = arith.addf %90, %92 : vector<16x32xf32>
    %c0_29 = arith.constant 0 : index
    %c0_30 = arith.constant 0 : index
    %94 = vector.load %arg11[%c0_29, %c0_30] : memref<32x32xf32, #tpu.memory_space<vmem>>, vector<32x32xf32>
    %cst_31 = arith.constant dense<0.000000e+00> : vector<16x32xf32>
    %95 = tpu.matmul %88, %94, %cst_31 {dimension_numbers = #tpu.dot_dimension_numbers<[1], [0], [0], [1], [0, 0, 1, 1], [], []>} : vector<16x32xf32>, vector<32x32xf32>, vector<16x32xf32> -> vector<16x32xf32>
    %c0_32 = arith.constant 0 : index
    %c0_33 = arith.constant 0 : index
    %96 = vector.load %arg12[%c0_32, %c0_33] : memref<1x32xf32, #tpu.memory_space<vmem>>, vector<1x32xf32>
    %97 = vector.broadcast %96 : vector<1x32xf32> to vector<16x32xf32>
    %98 = arith.addf %95, %97 : vector<16x32xf32>
    %c0_34 = arith.constant 0 : index
    %c0_35 = arith.constant 0 : index
    %99 = vector.load %arg13[%c0_34, %c0_35] : memref<32x32xf32, #tpu.memory_space<vmem>>, vector<32x32xf32>
    %cst_36 = arith.constant dense<0.000000e+00> : vector<16x32xf32>
    %100 = tpu.matmul %88, %99, %cst_36 {dimension_numbers = #tpu.dot_dimension_numbers<[1], [0], [0], [1], [0, 0, 1, 1], [], []>} : vector<16x32xf32>, vector<32x32xf32>, vector<16x32xf32> -> vector<16x32xf32>
    %c0_37 = arith.constant 0 : index
    %c0_38 = arith.constant 0 : index
    %101 = vector.load %arg14[%c0_37, %c0_38] : memref<1x32xf32, #tpu.memory_space<vmem>>, vector<1x32xf32>
    %102 = vector.broadcast %101 : vector<1x32xf32> to vector<16x32xf32>
    %103 = arith.addf %100, %102 : vector<16x32xf32>
    %cst_39 = arith.constant 0.000000e+00 : f32
    %104 = vector.broadcast %cst_39 : f32 to vector<16x32xf32>
    %105 = vector.broadcast %43 : vector<1x32xf32> to vector<16x32xf32>
    %106 = arith.mulf %93, %105 : vector<16x32xf32>
    %cst_40 = arith.constant 0.353553385 : f32
    %107 = vector.broadcast %cst_40 : f32 to vector<16x32xf32>
    %108 = arith.mulf %106, %107 : vector<16x32xf32>
    "tpu.trace_start"() <{level = 10 : i32, message = "qd,kd->qk"}> : () -> ()
    %cst_41 = arith.constant dense<0.000000e+00> : vector<16x16xf32>
    %109 = tpu.matmul %108, %98, %cst_41 {dimension_numbers = #tpu.dot_dimension_numbers<[1], [1], [0], [0], [0, 0, 1, 0], [], []>} : vector<16x32xf32>, vector<16x32xf32>, vector<16x16xf32> -> vector<16x16xf32>
    "tpu.trace_stop"() : () -> ()
    %110 = arith.addf %109, %35 : vector<16x16xf32>
    %cst_42 = arith.constant dense<0xFF800000> : vector<16xf32>
    %111 = vector.multi_reduction <maximumf>, %110, %cst_42 [1] : vector<16x16xf32> to vector<16xf32>
    %112 = vector.shape_cast %111 : vector<16xf32> to vector<16x1xf32>
    %113 = vector.broadcast %112 : vector<16x1xf32> to vector<16x16xf32>
    %114 = arith.subf %110, %113 : vector<16x16xf32>
    %115 = math.exp %114 : vector<16x16xf32>
    %cst_43 = arith.constant dense<0.000000e+00> : vector<16xf32>
    %116 = vector.multi_reduction <add>, %115, %cst_43 [1] : vector<16x16xf32> to vector<16xf32>
    %117 = vector.shape_cast %116 : vector<16xf32> to vector<16x1xf32>
    %118 = vector.broadcast %117 : vector<16x1xf32> to vector<16x16xf32>
    %119 = arith.divf %115, %118 : vector<16x16xf32>
    %120 = vector.broadcast %43 : vector<1x32xf32> to vector<16x32xf32>
    %121 = arith.mulf %103, %120 : vector<16x32xf32>
    %cst_44 = arith.constant dense<0.000000e+00> : vector<16x32xf32>
    %122 = tpu.matmul %119, %121, %cst_44 {dimension_numbers = #tpu.dot_dimension_numbers<[1], [0], [0], [1], [0, 0, 1, 1], [], []>} : vector<16x16xf32>, vector<16x32xf32>, vector<16x32xf32> -> vector<16x32xf32>
    %123 = arith.addf %104, %122 : vector<16x32xf32>
    %124 = vector.broadcast %50 : vector<1x32xf32> to vector<16x32xf32>
    %125 = arith.mulf %93, %124 : vector<16x32xf32>
    %cst_45 = arith.constant 0.353553385 : f32
    %126 = vector.broadcast %cst_45 : f32 to vector<16x32xf32>
    %127 = arith.mulf %125, %126 : vector<16x32xf32>
    "tpu.trace_start"() <{level = 10 : i32, message = "qd,kd->qk"}> : () -> ()
    %cst_46 = arith.constant dense<0.000000e+00> : vector<16x16xf32>
    %128 = tpu.matmul %127, %98, %cst_46 {dimension_numbers = #tpu.dot_dimension_numbers<[1], [1], [0], [0], [0, 0, 1, 0], [], []>} : vector<16x32xf32>, vector<16x32xf32>, vector<16x16xf32> -> vector<16x16xf32>
    "tpu.trace_stop"() : () -> ()
    %129 = arith.addf %128, %35 : vector<16x16xf32>
    %cst_47 = arith.constant dense<0xFF800000> : vector<16xf32>
    %130 = vector.multi_reduction <maximumf>, %129, %cst_47 [1] : vector<16x16xf32> to vector<16xf32>
    %131 = vector.shape_cast %130 : vector<16xf32> to vector<16x1xf32>
    %132 = vector.broadcast %131 : vector<16x1xf32> to vector<16x16xf32>
    %133 = arith.subf %129, %132 : vector<16x16xf32>
    %134 = math.exp %133 : vector<16x16xf32>
    %cst_48 = arith.constant dense<0.000000e+00> : vector<16xf32>
    %135 = vector.multi_reduction <add>, %134, %cst_48 [1] : vector<16x16xf32> to vector<16xf32>
    %136 = vector.shape_cast %135 : vector<16xf32> to vector<16x1xf32>
    %137 = vector.broadcast %136 : vector<16x1xf32> to vector<16x16xf32>
    %138 = arith.divf %134, %137 : vector<16x16xf32>
    %139 = vector.broadcast %50 : vector<1x32xf32> to vector<16x32xf32>
    %140 = arith.mulf %103, %139 : vector<16x32xf32>
    %cst_49 = arith.constant dense<0.000000e+00> : vector<16x32xf32>
    %141 = tpu.matmul %138, %140, %cst_49 {dimension_numbers = #tpu.dot_dimension_numbers<[1], [0], [0], [1], [0, 0, 1, 1], [], []>} : vector<16x16xf32>, vector<16x32xf32>, vector<16x32xf32> -> vector<16x32xf32>
    %142 = arith.addf %123, %141 : vector<16x32xf32>
    %143 = vector.broadcast %57 : vector<1x32xf32> to vector<16x32xf32>
    %144 = arith.mulf %93, %143 : vector<16x32xf32>
    %cst_50 = arith.constant 0.353553385 : f32
    %145 = vector.broadcast %cst_50 : f32 to vector<16x32xf32>
    %146 = arith.mulf %144, %145 : vector<16x32xf32>
    "tpu.trace_start"() <{level = 10 : i32, message = "qd,kd->qk"}> : () -> ()
    %cst_51 = arith.constant dense<0.000000e+00> : vector<16x16xf32>
    %147 = tpu.matmul %146, %98, %cst_51 {dimension_numbers = #tpu.dot_dimension_numbers<[1], [1], [0], [0], [0, 0, 1, 0], [], []>} : vector<16x32xf32>, vector<16x32xf32>, vector<16x16xf32> -> vector<16x16xf32>
    "tpu.trace_stop"() : () -> ()
    %148 = arith.addf %147, %35 : vector<16x16xf32>
    %cst_52 = arith.constant dense<0xFF800000> : vector<16xf32>
    %149 = vector.multi_reduction <maximumf>, %148, %cst_52 [1] : vector<16x16xf32> to vector<16xf32>
    %150 = vector.shape_cast %149 : vector<16xf32> to vector<16x1xf32>
    %151 = vector.broadcast %150 : vector<16x1xf32> to vector<16x16xf32>
    %152 = arith.subf %148, %151 : vector<16x16xf32>
    %153 = math.exp %152 : vector<16x16xf32>
    %cst_53 = arith.constant dense<0.000000e+00> : vector<16xf32>
    %154 = vector.multi_reduction <add>, %153, %cst_53 [1] : vector<16x16xf32> to vector<16xf32>
    %155 = vector.shape_cast %154 : vector<16xf32> to vector<16x1xf32>
    %156 = vector.broadcast %155 : vector<16x1xf32> to vector<16x16xf32>
    %157 = arith.divf %153, %156 : vector<16x16xf32>
    %158 = vector.broadcast %57 : vector<1x32xf32> to vector<16x32xf32>
    %159 = arith.mulf %103, %158 : vector<16x32xf32>
    %cst_54 = arith.constant dense<0.000000e+00> : vector<16x32xf32>
    %160 = tpu.matmul %157, %159, %cst_54 {dimension_numbers = #tpu.dot_dimension_numbers<[1], [0], [0], [1], [0, 0, 1, 1], [], []>} : vector<16x16xf32>, vector<16x32xf32>, vector<16x32xf32> -> vector<16x32xf32>
    %161 = arith.addf %142, %160 : vector<16x32xf32>
    %162 = vector.broadcast %64 : vector<1x32xf32> to vector<16x32xf32>
    %163 = arith.mulf %93, %162 : vector<16x32xf32>
    %cst_55 = arith.constant 0.353553385 : f32
    %164 = vector.broadcast %cst_55 : f32 to vector<16x32xf32>
    %165 = arith.mulf %163, %164 : vector<16x32xf32>
    "tpu.trace_start"() <{level = 10 : i32, message = "qd,kd->qk"}> : () -> ()
    %cst_56 = arith.constant dense<0.000000e+00> : vector<16x16xf32>
    %166 = tpu.matmul %165, %98, %cst_56 {dimension_numbers = #tpu.dot_dimension_numbers<[1], [1], [0], [0], [0, 0, 1, 0], [], []>} : vector<16x32xf32>, vector<16x32xf32>, vector<16x16xf32> -> vector<16x16xf32>
    "tpu.trace_stop"() : () -> ()
    %167 = arith.addf %166, %35 : vector<16x16xf32>
    %cst_57 = arith.constant dense<0xFF800000> : vector<16xf32>
    %168 = vector.multi_reduction <maximumf>, %167, %cst_57 [1] : vector<16x16xf32> to vector<16xf32>
    %169 = vector.shape_cast %168 : vector<16xf32> to vector<16x1xf32>
    %170 = vector.broadcast %169 : vector<16x1xf32> to vector<16x16xf32>
    %171 = arith.subf %167, %170 : vector<16x16xf32>
    %172 = math.exp %171 : vector<16x16xf32>
    %cst_58 = arith.constant dense<0.000000e+00> : vector<16xf32>
    %173 = vector.multi_reduction <add>, %172, %cst_58 [1] : vector<16x16xf32> to vector<16xf32>
    %174 = vector.shape_cast %173 : vector<16xf32> to vector<16x1xf32>
    %175 = vector.broadcast %174 : vector<16x1xf32> to vector<16x16xf32>
    %176 = arith.divf %172, %175 : vector<16x16xf32>
    %177 = vector.broadcast %64 : vector<1x32xf32> to vector<16x32xf32>
    %178 = arith.mulf %103, %177 : vector<16x32xf32>
    %cst_59 = arith.constant dense<0.000000e+00> : vector<16x32xf32>
    %179 = tpu.matmul %176, %178, %cst_59 {dimension_numbers = #tpu.dot_dimension_numbers<[1], [0], [0], [1], [0, 0, 1, 1], [], []>} : vector<16x16xf32>, vector<16x32xf32>, vector<16x32xf32> -> vector<16x32xf32>
    %180 = arith.addf %161, %179 : vector<16x32xf32>
    %c0_60 = arith.constant 0 : index
    %c0_61 = arith.constant 0 : index
    %181 = vector.load %arg15[%c0_60, %c0_61] : memref<32x32xf32, #tpu.memory_space<vmem>>, vector<32x32xf32>
    %cst_62 = arith.constant dense<0.000000e+00> : vector<16x32xf32>
    %182 = tpu.matmul %180, %181, %cst_62 {dimension_numbers = #tpu.dot_dimension_numbers<[1], [0], [0], [1], [0, 0, 1, 1], [], []>} : vector<16x32xf32>, vector<32x32xf32>, vector<16x32xf32> -> vector<16x32xf32>
    %183 = arith.addf %3, %182 : vector<16x32xf32>
    %c0_63 = arith.constant 0 : index
    %c0_64 = arith.constant 0 : index
    %184 = vector.load %arg16[%c0_63, %c0_64] : memref<1x32xf32, #tpu.memory_space<vmem>>, vector<1x32xf32>
    %185 = vector.broadcast %184 : vector<1x32xf32> to vector<16x32xf32>
    %186 = arith.addf %183, %185 : vector<16x32xf32>
    %c0_65 = arith.constant 0 : index
    %c0_66 = arith.constant 0 : index
    %187 = vector.load %arg17[%c0_65, %c0_66] : memref<1x32xf32, #tpu.memory_space<vmem>>, vector<1x32xf32>
    %c0_67 = arith.constant 0 : index
    %c0_68 = arith.constant 0 : index
    %188 = vector.load %arg18[%c0_67, %c0_68] : memref<1x32xf32, #tpu.memory_space<vmem>>, vector<1x32xf32>
    %cst_69 = arith.constant dense<0.000000e+00> : vector<16xf32>
    %189 = vector.multi_reduction <add>, %186, %cst_69 [1] : vector<16x32xf32> to vector<16xf32>
    %190 = vector.shape_cast %189 : vector<16xf32> to vector<16x1xf32>
    %cst_70 = arith.constant 3.200000e+01 : f32
    %191 = vector.broadcast %cst_70 : f32 to vector<16x1xf32>
    %192 = arith.divf %190, %191 : vector<16x1xf32>
    %193 = vector.broadcast %192 : vector<16x1xf32> to vector<16x32xf32>
    %194 = arith.subf %186, %193 : vector<16x32xf32>
    %195 = arith.mulf %194, %194 : vector<16x32xf32>
    %cst_71 = arith.constant dense<0.000000e+00> : vector<16xf32>
    %196 = vector.multi_reduction <add>, %195, %cst_71 [1] : vector<16x32xf32> to vector<16xf32>
    %197 = vector.shape_cast %196 : vector<16xf32> to vector<16x1xf32>
    %cst_72 = arith.constant 3.200000e+01 : f32
    %198 = vector.broadcast %cst_72 : f32 to vector<16x1xf32>
    %199 = arith.divf %197, %198 : vector<16x1xf32>
    %200 = vector.broadcast %192 : vector<16x1xf32> to vector<16x32xf32>
    %201 = arith.subf %186, %200 : vector<16x32xf32>
    %cst_73 = arith.constant 9.99999974E-6 : f32
    %202 = vector.broadcast %cst_73 : f32 to vector<16x1xf32>
    %203 = arith.addf %199, %202 : vector<16x1xf32>
    %204 = math.rsqrt %203 : vector<16x1xf32>
    %205 = vector.broadcast %204 : vector<16x1xf32> to vector<16x32xf32>
    %206 = arith.mulf %201, %205 : vector<16x32xf32>
    %207 = vector.broadcast %187 : vector<1x32xf32> to vector<16x32xf32>
    %208 = arith.mulf %206, %207 : vector<16x32xf32>
    %209 = vector.broadcast %188 : vector<1x32xf32> to vector<16x32xf32>
    %210 = arith.addf %208, %209 : vector<16x32xf32>
    %c0_74 = arith.constant 0 : index
    %c0_75 = arith.constant 0 : index
    %211 = vector.load %arg19[%c0_74, %c0_75] : memref<32x128xf32, #tpu.memory_space<vmem>>, vector<32x128xf32>
    %cst_76 = arith.constant dense<0.000000e+00> : vector<16x128xf32>
    %212 = tpu.matmul %210, %211, %cst_76 {dimension_numbers = #tpu.dot_dimension_numbers<[1], [0], [0], [1], [0, 0, 1, 1], [], []>} : vector<16x32xf32>, vector<32x128xf32>, vector<16x128xf32> -> vector<16x128xf32>
    %c0_77 = arith.constant 0 : index
    %c0_78 = arith.constant 0 : index
    %213 = vector.load %arg20[%c0_77, %c0_78] : memref<1x128xf32, #tpu.memory_space<vmem>>, vector<1x128xf32>
    %214 = vector.broadcast %213 : vector<1x128xf32> to vector<16x128xf32>
    %215 = arith.addf %212, %214 : vector<16x128xf32>
    %cst_79 = arith.constant 1.702000e+00 : f32
    %216 = vector.broadcast %cst_79 : f32 to vector<16x128xf32>
    %217 = arith.mulf %216, %215 : vector<16x128xf32>
    %218 = arith.negf %217 : vector<16x128xf32>
    %219 = math.exp %218 : vector<16x128xf32>
    %cst_80 = arith.constant 1.000000e+00 : f32
    %220 = vector.broadcast %cst_80 : f32 to vector<16x128xf32>
    %221 = arith.addf %220, %219 : vector<16x128xf32>
    %222 = arith.divf %220, %221 : vector<16x128xf32>
    %223 = arith.mulf %215, %222 : vector<16x128xf32>
    %c0_81 = arith.constant 0 : index
    %c0_82 = arith.constant 0 : index
    %224 = vector.load %arg21[%c0_81, %c0_82] : memref<128x32xf32, #tpu.memory_space<vmem>>, vector<128x32xf32>
    %cst_83 = arith.constant dense<0.000000e+00> : vector<16x32xf32>
    %225 = tpu.matmul %223, %224, %cst_83 {dimension_numbers = #tpu.dot_dimension_numbers<[1], [0], [0], [1], [0, 0, 1, 1], [], []>} : vector<16x128xf32>, vector<128x32xf32>, vector<16x32xf32> -> vector<16x32xf32>
    %226 = arith.addf %186, %225 : vector<16x32xf32>
    %c0_84 = arith.constant 0 : index
    %c0_85 = arith.constant 0 : index
    %227 = vector.load %arg22[%c0_84, %c0_85] : memref<1x32xf32, #tpu.memory_space<vmem>>, vector<1x32xf32>
    %228 = vector.broadcast %227 : vector<1x32xf32> to vector<16x32xf32>
    %229 = arith.addf %226, %228 : vector<16x32xf32>
    %c0_86 = arith.constant 0 : index
    %c0_87 = arith.constant 0 : index
    %230 = vector.load %arg23[%c0_86, %c0_87] : memref<1x32xf32, #tpu.memory_space<vmem>>, vector<1x32xf32>
    %c0_88 = arith.constant 0 : index
    %c0_89 = arith.constant 0 : index
    %231 = vector.load %arg24[%c0_88, %c0_89] : memref<1x32xf32, #tpu.memory_space<vmem>>, vector<1x32xf32>
    %cst_90 = arith.constant dense<0.000000e+00> : vector<16xf32>
    %232 = vector.multi_reduction <add>, %229, %cst_90 [1] : vector<16x32xf32> to vector<16xf32>
    %233 = vector.shape_cast %232 : vector<16xf32> to vector<16x1xf32>
    %cst_91 = arith.constant 3.200000e+01 : f32
    %234 = vector.broadcast %cst_91 : f32 to vector<16x1xf32>
    %235 = arith.divf %233, %234 : vector<16x1xf32>
    %236 = vector.broadcast %235 : vector<16x1xf32> to vector<16x32xf32>
    %237 = arith.subf %229, %236 : vector<16x32xf32>
    %238 = arith.mulf %237, %237 : vector<16x32xf32>
    %cst_92 = arith.constant dense<0.000000e+00> : vector<16xf32>
    %239 = vector.multi_reduction <add>, %238, %cst_92 [1] : vector<16x32xf32> to vector<16xf32>
    %240 = vector.shape_cast %239 : vector<16xf32> to vector<16x1xf32>
    %cst_93 = arith.constant 3.200000e+01 : f32
    %241 = vector.broadcast %cst_93 : f32 to vector<16x1xf32>
    %242 = arith.divf %240, %241 : vector<16x1xf32>
    %243 = vector.broadcast %235 : vector<16x1xf32> to vector<16x32xf32>
    %244 = arith.subf %229, %243 : vector<16x32xf32>
    %cst_94 = arith.constant 9.99999974E-6 : f32
    %245 = vector.broadcast %cst_94 : f32 to vector<16x1xf32>
    %246 = arith.addf %242, %245 : vector<16x1xf32>
    %247 = math.rsqrt %246 : vector<16x1xf32>
    %248 = vector.broadcast %247 : vector<16x1xf32> to vector<16x32xf32>
    %249 = arith.mulf %244, %248 : vector<16x32xf32>
    %250 = vector.broadcast %230 : vector<1x32xf32> to vector<16x32xf32>
    %251 = arith.mulf %249, %250 : vector<16x32xf32>
    %252 = vector.broadcast %231 : vector<1x32xf32> to vector<16x32xf32>
    %253 = arith.addf %251, %252 : vector<16x32xf32>
    %c0_95 = arith.constant 0 : index
    %c0_96 = arith.constant 0 : index
    %254 = vector.load %arg25[%c0_95, %c0_96] : memref<32x32xf32, #tpu.memory_space<vmem>>, vector<32x32xf32>
    %cst_97 = arith.constant dense<0.000000e+00> : vector<16x32xf32>
    %255 = tpu.matmul %253, %254, %cst_97 {dimension_numbers = #tpu.dot_dimension_numbers<[1], [0], [0], [1], [0, 0, 1, 1], [], []>} : vector<16x32xf32>, vector<32x32xf32>, vector<16x32xf32> -> vector<16x32xf32>
    %c0_98 = arith.constant 0 : index
    %c0_99 = arith.constant 0 : index
    %256 = vector.load %arg26[%c0_98, %c0_99] : memref<1x32xf32, #tpu.memory_space<vmem>>, vector<1x32xf32>
    %257 = vector.broadcast %256 : vector<1x32xf32> to vector<16x32xf32>
    %258 = arith.addf %255, %257 : vector<16x32xf32>
    %c0_100 = arith.constant 0 : index
    %c0_101 = arith.constant 0 : index
    %259 = vector.load %arg27[%c0_100, %c0_101] : memref<32x32xf32, #tpu.memory_space<vmem>>, vector<32x32xf32>
    %cst_102 = arith.constant dense<0.000000e+00> : vector<16x32xf32>
    %260 = tpu.matmul %253, %259, %cst_102 {dimension_numbers = #tpu.dot_dimension_numbers<[1], [0], [0], [1], [0, 0, 1, 1], [], []>} : vector<16x32xf32>, vector<32x32xf32>, vector<16x32xf32> -> vector<16x32xf32>
    %c0_103 = arith.constant 0 : index
    %c0_104 = arith.constant 0 : index
    %261 = vector.load %arg28[%c0_103, %c0_104] : memref<1x32xf32, #tpu.memory_space<vmem>>, vector<1x32xf32>
    %262 = vector.broadcast %261 : vector<1x32xf32> to vector<16x32xf32>
    %263 = arith.addf %260, %262 : vector<16x32xf32>
    %c0_105 = arith.constant 0 : index
    %c0_106 = arith.constant 0 : index
    %264 = vector.load %arg29[%c0_105, %c0_106] : memref<32x32xf32, #tpu.memory_space<vmem>>, vector<32x32xf32>
    %cst_107 = arith.constant dense<0.000000e+00> : vector<16x32xf32>
    %265 = tpu.matmul %253, %264, %cst_107 {dimension_numbers = #tpu.dot_dimension_numbers<[1], [0], [0], [1], [0, 0, 1, 1], [], []>} : vector<16x32xf32>, vector<32x32xf32>, vector<16x32xf32> -> vector<16x32xf32>
    %c0_108 = arith.constant 0 : index
    %c0_109 = arith.constant 0 : index
    %266 = vector.load %arg30[%c0_108, %c0_109] : memref<1x32xf32, #tpu.memory_space<vmem>>, vector<1x32xf32>
    %267 = vector.broadcast %266 : vector<1x32xf32> to vector<16x32xf32>
    %268 = arith.addf %265, %267 : vector<16x32xf32>
    %cst_110 = arith.constant 0.000000e+00 : f32
    %269 = vector.broadcast %cst_110 : f32 to vector<16x32xf32>
    %270 = vector.broadcast %43 : vector<1x32xf32> to vector<16x32xf32>
    %271 = arith.mulf %258, %270 : vector<16x32xf32>
    %cst_111 = arith.constant 0.353553385 : f32
    %272 = vector.broadcast %cst_111 : f32 to vector<16x32xf32>
    %273 = arith.mulf %271, %272 : vector<16x32xf32>
    "tpu.trace_start"() <{level = 10 : i32, message = "qd,kd->qk"}> : () -> ()
    %cst_112 = arith.constant dense<0.000000e+00> : vector<16x16xf32>
    %274 = tpu.matmul %273, %263, %cst_112 {dimension_numbers = #tpu.dot_dimension_numbers<[1], [1], [0], [0], [0, 0, 1, 0], [], []>} : vector<16x32xf32>, vector<16x32xf32>, vector<16x16xf32> -> vector<16x16xf32>
    "tpu.trace_stop"() : () -> ()
    %275 = arith.addf %274, %35 : vector<16x16xf32>
    %cst_113 = arith.constant dense<0xFF800000> : vector<16xf32>
    %276 = vector.multi_reduction <maximumf>, %275, %cst_113 [1] : vector<16x16xf32> to vector<16xf32>
    %277 = vector.shape_cast %276 : vector<16xf32> to vector<16x1xf32>
    %278 = vector.broadcast %277 : vector<16x1xf32> to vector<16x16xf32>
    %279 = arith.subf %275, %278 : vector<16x16xf32>
    %280 = math.exp %279 : vector<16x16xf32>
    %cst_114 = arith.constant dense<0.000000e+00> : vector<16xf32>
    %281 = vector.multi_reduction <add>, %280, %cst_114 [1] : vector<16x16xf32> to vector<16xf32>
    %282 = vector.shape_cast %281 : vector<16xf32> to vector<16x1xf32>
    %283 = vector.broadcast %282 : vector<16x1xf32> to vector<16x16xf32>
    %284 = arith.divf %280, %283 : vector<16x16xf32>
    %285 = vector.broadcast %43 : vector<1x32xf32> to vector<16x32xf32>
    %286 = arith.mulf %268, %285 : vector<16x32xf32>
    %cst_115 = arith.constant dense<0.000000e+00> : vector<16x32xf32>
    %287 = tpu.matmul %284, %286, %cst_115 {dimension_numbers = #tpu.dot_dimension_numbers<[1], [0], [0], [1], [0, 0, 1, 1], [], []>} : vector<16x16xf32>, vector<16x32xf32>, vector<16x32xf32> -> vector<16x32xf32>
    %288 = arith.addf %269, %287 : vector<16x32xf32>
    %289 = vector.broadcast %50 : vector<1x32xf32> to vector<16x32xf32>
    %290 = arith.mulf %258, %289 : vector<16x32xf32>
    %cst_116 = arith.constant 0.353553385 : f32
    %291 = vector.broadcast %cst_116 : f32 to vector<16x32xf32>
    %292 = arith.mulf %290, %291 : vector<16x32xf32>
    "tpu.trace_start"() <{level = 10 : i32, message = "qd,kd->qk"}> : () -> ()
    %cst_117 = arith.constant dense<0.000000e+00> : vector<16x16xf32>
    %293 = tpu.matmul %292, %263, %cst_117 {dimension_numbers = #tpu.dot_dimension_numbers<[1], [1], [0], [0], [0, 0, 1, 0], [], []>} : vector<16x32xf32>, vector<16x32xf32>, vector<16x16xf32> -> vector<16x16xf32>
    "tpu.trace_stop"() : () -> ()
    %294 = arith.addf %293, %35 : vector<16x16xf32>
    %cst_118 = arith.constant dense<0xFF800000> : vector<16xf32>
    %295 = vector.multi_reduction <maximumf>, %294, %cst_118 [1] : vector<16x16xf32> to vector<16xf32>
    %296 = vector.shape_cast %295 : vector<16xf32> to vector<16x1xf32>
    %297 = vector.broadcast %296 : vector<16x1xf32> to vector<16x16xf32>
    %298 = arith.subf %294, %297 : vector<16x16xf32>
    %299 = math.exp %298 : vector<16x16xf32>
    %cst_119 = arith.constant dense<0.000000e+00> : vector<16xf32>
    %300 = vector.multi_reduction <add>, %299, %cst_119 [1] : vector<16x16xf32> to vector<16xf32>
    %301 = vector.shape_cast %300 : vector<16xf32> to vector<16x1xf32>
    %302 = vector.broadcast %301 : vector<16x1xf32> to vector<16x16xf32>
    %303 = arith.divf %299, %302 : vector<16x16xf32>
    %304 = vector.broadcast %50 : vector<1x32xf32> to vector<16x32xf32>
    %305 = arith.mulf %268, %304 : vector<16x32xf32>
    %cst_120 = arith.constant dense<0.000000e+00> : vector<16x32xf32>
    %306 = tpu.matmul %303, %305, %cst_120 {dimension_numbers = #tpu.dot_dimension_numbers<[1], [0], [0], [1], [0, 0, 1, 1], [], []>} : vector<16x16xf32>, vector<16x32xf32>, vector<16x32xf32> -> vector<16x32xf32>
    %307 = arith.addf %288, %306 : vector<16x32xf32>
    %308 = vector.broadcast %57 : vector<1x32xf32> to vector<16x32xf32>
    %309 = arith.mulf %258, %308 : vector<16x32xf32>
    %cst_121 = arith.constant 0.353553385 : f32
    %310 = vector.broadcast %cst_121 : f32 to vector<16x32xf32>
    %311 = arith.mulf %309, %310 : vector<16x32xf32>
    "tpu.trace_start"() <{level = 10 : i32, message = "qd,kd->qk"}> : () -> ()
    %cst_122 = arith.constant dense<0.000000e+00> : vector<16x16xf32>
    %312 = tpu.matmul %311, %263, %cst_122 {dimension_numbers = #tpu.dot_dimension_numbers<[1], [1], [0], [0], [0, 0, 1, 0], [], []>} : vector<16x32xf32>, vector<16x32xf32>, vector<16x16xf32> -> vector<16x16xf32>
    "tpu.trace_stop"() : () -> ()
    %313 = arith.addf %312, %35 : vector<16x16xf32>
    %cst_123 = arith.constant dense<0xFF800000> : vector<16xf32>
    %314 = vector.multi_reduction <maximumf>, %313, %cst_123 [1] : vector<16x16xf32> to vector<16xf32>
    %315 = vector.shape_cast %314 : vector<16xf32> to vector<16x1xf32>
    %316 = vector.broadcast %315 : vector<16x1xf32> to vector<16x16xf32>
    %317 = arith.subf %313, %316 : vector<16x16xf32>
    %318 = math.exp %317 : vector<16x16xf32>
    %cst_124 = arith.constant dense<0.000000e+00> : vector<16xf32>
    %319 = vector.multi_reduction <add>, %318, %cst_124 [1] : vector<16x16xf32> to vector<16xf32>
    %320 = vector.shape_cast %319 : vector<16xf32> to vector<16x1xf32>
    %321 = vector.broadcast %320 : vector<16x1xf32> to vector<16x16xf32>
    %322 = arith.divf %318, %321 : vector<16x16xf32>
    %323 = vector.broadcast %57 : vector<1x32xf32> to vector<16x32xf32>
    %324 = arith.mulf %268, %323 : vector<16x32xf32>
    %cst_125 = arith.constant dense<0.000000e+00> : vector<16x32xf32>
    %325 = tpu.matmul %322, %324, %cst_125 {dimension_numbers = #tpu.dot_dimension_numbers<[1], [0], [0], [1], [0, 0, 1, 1], [], []>} : vector<16x16xf32>, vector<16x32xf32>, vector<16x32xf32> -> vector<16x32xf32>
    %326 = arith.addf %307, %325 : vector<16x32xf32>
    %327 = vector.broadcast %64 : vector<1x32xf32> to vector<16x32xf32>
    %328 = arith.mulf %258, %327 : vector<16x32xf32>
    %cst_126 = arith.constant 0.353553385 : f32
    %329 = vector.broadcast %cst_126 : f32 to vector<16x32xf32>
    %330 = arith.mulf %328, %329 : vector<16x32xf32>
    "tpu.trace_start"() <{level = 10 : i32, message = "qd,kd->qk"}> : () -> ()
    %cst_127 = arith.constant dense<0.000000e+00> : vector<16x16xf32>
    %331 = tpu.matmul %330, %263, %cst_127 {dimension_numbers = #tpu.dot_dimension_numbers<[1], [1], [0], [0], [0, 0, 1, 0], [], []>} : vector<16x32xf32>, vector<16x32xf32>, vector<16x16xf32> -> vector<16x16xf32>
    "tpu.trace_stop"() : () -> ()
    %332 = arith.addf %331, %35 : vector<16x16xf32>
    %cst_128 = arith.constant dense<0xFF800000> : vector<16xf32>
    %333 = vector.multi_reduction <maximumf>, %332, %cst_128 [1] : vector<16x16xf32> to vector<16xf32>
    %334 = vector.shape_cast %333 : vector<16xf32> to vector<16x1xf32>
    %335 = vector.broadcast %334 : vector<16x1xf32> to vector<16x16xf32>
    %336 = arith.subf %332, %335 : vector<16x16xf32>
    %337 = math.exp %336 : vector<16x16xf32>
    %cst_129 = arith.constant dense<0.000000e+00> : vector<16xf32>
    %338 = vector.multi_reduction <add>, %337, %cst_129 [1] : vector<16x16xf32> to vector<16xf32>
    %339 = vector.shape_cast %338 : vector<16xf32> to vector<16x1xf32>
    %340 = vector.broadcast %339 : vector<16x1xf32> to vector<16x16xf32>
    %341 = arith.divf %337, %340 : vector<16x16xf32>
    %342 = vector.broadcast %64 : vector<1x32xf32> to vector<16x32xf32>
    %343 = arith.mulf %268, %342 : vector<16x32xf32>
    %cst_130 = arith.constant dense<0.000000e+00> : vector<16x32xf32>
    %344 = tpu.matmul %341, %343, %cst_130 {dimension_numbers = #tpu.dot_dimension_numbers<[1], [0], [0], [1], [0, 0, 1, 1], [], []>} : vector<16x16xf32>, vector<16x32xf32>, vector<16x32xf32> -> vector<16x32xf32>
    %345 = arith.addf %326, %344 : vector<16x32xf32>
    %c0_131 = arith.constant 0 : index
    %c0_132 = arith.constant 0 : index
    %346 = vector.load %arg31[%c0_131, %c0_132] : memref<32x32xf32, #tpu.memory_space<vmem>>, vector<32x32xf32>
    %cst_133 = arith.constant dense<0.000000e+00> : vector<16x32xf32>
    %347 = tpu.matmul %345, %346, %cst_133 {dimension_numbers = #tpu.dot_dimension_numbers<[1], [0], [0], [1], [0, 0, 1, 1], [], []>} : vector<16x32xf32>, vector<32x32xf32>, vector<16x32xf32> -> vector<16x32xf32>
    %348 = arith.addf %229, %347 : vector<16x32xf32>
    %c0_134 = arith.constant 0 : index
    %c0_135 = arith.constant 0 : index
    %349 = vector.load %arg32[%c0_134, %c0_135] : memref<1x32xf32, #tpu.memory_space<vmem>>, vector<1x32xf32>
    %350 = vector.broadcast %349 : vector<1x32xf32> to vector<16x32xf32>
    %351 = arith.addf %348, %350 : vector<16x32xf32>
    %c0_136 = arith.constant 0 : index
    %c0_137 = arith.constant 0 : index
    %352 = vector.load %arg33[%c0_136, %c0_137] : memref<1x32xf32, #tpu.memory_space<vmem>>, vector<1x32xf32>
    %c0_138 = arith.constant 0 : index
    %c0_139 = arith.constant 0 : index
    %353 = vector.load %arg34[%c0_138, %c0_139] : memref<1x32xf32, #tpu.memory_space<vmem>>, vector<1x32xf32>
    %cst_140 = arith.constant dense<0.000000e+00> : vector<16xf32>
    %354 = vector.multi_reduction <add>, %351, %cst_140 [1] : vector<16x32xf32> to vector<16xf32>
    %355 = vector.shape_cast %354 : vector<16xf32> to vector<16x1xf32>
    %cst_141 = arith.constant 3.200000e+01 : f32
    %356 = vector.broadcast %cst_141 : f32 to vector<16x1xf32>
    %357 = arith.divf %355, %356 : vector<16x1xf32>
    %358 = vector.broadcast %357 : vector<16x1xf32> to vector<16x32xf32>
    %359 = arith.subf %351, %358 : vector<16x32xf32>
    %360 = arith.mulf %359, %359 : vector<16x32xf32>
    %cst_142 = arith.constant dense<0.000000e+00> : vector<16xf32>
    %361 = vector.multi_reduction <add>, %360, %cst_142 [1] : vector<16x32xf32> to vector<16xf32>
    %362 = vector.shape_cast %361 : vector<16xf32> to vector<16x1xf32>
    %cst_143 = arith.constant 3.200000e+01 : f32
    %363 = vector.broadcast %cst_143 : f32 to vector<16x1xf32>
    %364 = arith.divf %362, %363 : vector<16x1xf32>
    %365 = vector.broadcast %357 : vector<16x1xf32> to vector<16x32xf32>
    %366 = arith.subf %351, %365 : vector<16x32xf32>
    %cst_144 = arith.constant 9.99999974E-6 : f32
    %367 = vector.broadcast %cst_144 : f32 to vector<16x1xf32>
    %368 = arith.addf %364, %367 : vector<16x1xf32>
    %369 = math.rsqrt %368 : vector<16x1xf32>
    %370 = vector.broadcast %369 : vector<16x1xf32> to vector<16x32xf32>
    %371 = arith.mulf %366, %370 : vector<16x32xf32>
    %372 = vector.broadcast %352 : vector<1x32xf32> to vector<16x32xf32>
    %373 = arith.mulf %371, %372 : vector<16x32xf32>
    %374 = vector.broadcast %353 : vector<1x32xf32> to vector<16x32xf32>
    %375 = arith.addf %373, %374 : vector<16x32xf32>
    %c0_145 = arith.constant 0 : index
    %c0_146 = arith.constant 0 : index
    %376 = vector.load %arg35[%c0_145, %c0_146] : memref<32x128xf32, #tpu.memory_space<vmem>>, vector<32x128xf32>
    %cst_147 = arith.constant dense<0.000000e+00> : vector<16x128xf32>
    %377 = tpu.matmul %375, %376, %cst_147 {dimension_numbers = #tpu.dot_dimension_numbers<[1], [0], [0], [1], [0, 0, 1, 1], [], []>} : vector<16x32xf32>, vector<32x128xf32>, vector<16x128xf32> -> vector<16x128xf32>
    %c0_148 = arith.constant 0 : index
    %c0_149 = arith.constant 0 : index
    %378 = vector.load %arg36[%c0_148, %c0_149] : memref<1x128xf32, #tpu.memory_space<vmem>>, vector<1x128xf32>
    %379 = vector.broadcast %378 : vector<1x128xf32> to vector<16x128xf32>
    %380 = arith.addf %377, %379 : vector<16x128xf32>
    %cst_150 = arith.constant 1.702000e+00 : f32
    %381 = vector.broadcast %cst_150 : f32 to vector<16x128xf32>
    %382 = arith.mulf %381, %380 : vector<16x128xf32>
    %383 = arith.negf %382 : vector<16x128xf32>
    %384 = math.exp %383 : vector<16x128xf32>
    %cst_151 = arith.constant 1.000000e+00 : f32
    %385 = vector.broadcast %cst_151 : f32 to vector<16x128xf32>
    %386 = arith.addf %385, %384 : vector<16x128xf32>
    %387 = arith.divf %385, %386 : vector<16x128xf32>
    %388 = arith.mulf %380, %387 : vector<16x128xf32>
    %c0_152 = arith.constant 0 : index
    %c0_153 = arith.constant 0 : index
    %389 = vector.load %arg37[%c0_152, %c0_153] : memref<128x32xf32, #tpu.memory_space<vmem>>, vector<128x32xf32>
    %cst_154 = arith.constant dense<0.000000e+00> : vector<16x32xf32>
    %390 = tpu.matmul %388, %389, %cst_154 {dimension_numbers = #tpu.dot_dimension_numbers<[1], [0], [0], [1], [0, 0, 1, 1], [], []>} : vector<16x128xf32>, vector<128x32xf32>, vector<16x32xf32> -> vector<16x32xf32>
    %391 = arith.addf %351, %390 : vector<16x32xf32>
    %c0_155 = arith.constant 0 : index
    %c0_156 = arith.constant 0 : index
    %392 = vector.load %arg38[%c0_155, %c0_156] : memref<1x32xf32, #tpu.memory_space<vmem>>, vector<1x32xf32>
    %393 = vector.broadcast %392 : vector<1x32xf32> to vector<16x32xf32>
    %394 = arith.addf %391, %393 : vector<16x32xf32>
    %c0_157 = arith.constant 0 : index
    %395 = memref.load %arg0[%c0_157] : memref<1xi32, #tpu.memory_space<smem>>
    %396 = tpu.iota {dimensions = array<i32: 1>} : vector<1x16xi32>
    %c0_i32_158 = arith.constant 0 : i32
    %397 = arith.addi %c0_i32_158, %395 : i32
    %398 = vector.broadcast %397 : i32 to vector<1x16xi32>
    %399 = arith.cmpi eq, %396, %398 : vector<1x16xi32>
    %cst_159 = arith.constant 1.000000e+00 : f32
    %cst_160 = arith.constant 0.000000e+00 : f32
    %400 = vector.broadcast %cst_159 : f32 to vector<1x16xf32>
    %401 = vector.broadcast %cst_160 : f32 to vector<1x16xf32>
    %402 = arith.select %399, %400, %401 : vector<1x16xi1>, vector<1x16xf32>
    %c8_i32_161 = arith.constant 8 : i32
    %403 = arith.addi %c8_i32_161, %395 : i32
    %404 = vector.broadcast %403 : i32 to vector<1x16xi32>
    %405 = arith.cmpi eq, %396, %404 : vector<1x16xi32>
    %cst_162 = arith.constant 1.000000e+00 : f32
    %cst_163 = arith.constant 0.000000e+00 : f32
    %406 = vector.broadcast %cst_162 : f32 to vector<1x16xf32>
    %407 = vector.broadcast %cst_163 : f32 to vector<1x16xf32>
    %408 = arith.select %405, %406, %407 : vector<1x16xi1>, vector<1x16xf32>
    %409 = tpu.concatenate %402, %408 in 0 : vector<1x16xf32>, vector<1x16xf32> -> vector<2x16xf32>
    %cst_164 = arith.constant dense<0.000000e+00> : vector<2x32xf32>
    %410 = tpu.matmul %409, %394, %cst_164 {dimension_numbers = #tpu.dot_dimension_numbers<[1], [0], [0], [1], [0, 0, 1, 1], [], []>} : vector<2x16xf32>, vector<16x32xf32>, vector<2x32xf32> -> vector<2x32xf32>
    %c0_165 = arith.constant 0 : index
    %c0_166 = arith.constant 0 : index
    %411 = vector.load %arg4[%c0_165, %c0_166] : memref<1x32xf32, #tpu.memory_space<vmem>>, vector<1x32xf32>
    %c0_167 = arith.constant 0 : index
    %c0_168 = arith.constant 0 : index
    %412 = vector.load %arg5[%c0_167, %c0_168] : memref<1x32xf32, #tpu.memory_space<vmem>>, vector<1x32xf32>
    %cst_169 = arith.constant dense<0.000000e+00> : vector<2xf32>
    %413 = vector.multi_reduction <add>, %410, %cst_169 [1] : vector<2x32xf32> to vector<2xf32>
    %414 = vector.shape_cast %413 : vector<2xf32> to vector<2x1xf32>
    %cst_170 = arith.constant 3.200000e+01 : f32
    %415 = vector.broadcast %cst_170 : f32 to vector<2x1xf32>
    %416 = arith.divf %414, %415 : vector<2x1xf32>
    %417 = vector.broadcast %416 : vector<2x1xf32> to vector<2x32xf32>
    %418 = arith.subf %410, %417 : vector<2x32xf32>
    %419 = arith.mulf %418, %418 : vector<2x32xf32>
    %cst_171 = arith.constant dense<0.000000e+00> : vector<2xf32>
    %420 = vector.multi_reduction <add>, %419, %cst_171 [1] : vector<2x32xf32> to vector<2xf32>
    %421 = vector.shape_cast %420 : vector<2xf32> to vector<2x1xf32>
    %cst_172 = arith.constant 3.200000e+01 : f32
    %422 = vector.broadcast %cst_172 : f32 to vector<2x1xf32>
    %423 = arith.divf %421, %422 : vector<2x1xf32>
    %424 = vector.broadcast %416 : vector<2x1xf32> to vector<2x32xf32>
    %425 = arith.subf %410, %424 : vector<2x32xf32>
    %cst_173 = arith.constant 9.99999974E-6 : f32
    %426 = vector.broadcast %cst_173 : f32 to vector<2x1xf32>
    %427 = arith.addf %423, %426 : vector<2x1xf32>
    %428 = math.rsqrt %427 : vector<2x1xf32>
    %429 = vector.broadcast %428 : vector<2x1xf32> to vector<2x32xf32>
    %430 = arith.mulf %425, %429 : vector<2x32xf32>
    %431 = vector.broadcast %411 : vector<1x32xf32> to vector<2x32xf32>
    %432 = arith.mulf %430, %431 : vector<2x32xf32>
    %433 = vector.broadcast %412 : vector<1x32xf32> to vector<2x32xf32>
    %434 = arith.addf %432, %433 : vector<2x32xf32>
    %c0_174 = arith.constant 0 : index
    %c0_175 = arith.constant 0 : index
    %435 = vector.load %arg6[%c0_174, %c0_175] : memref<32x32xf32, #tpu.memory_space<vmem>>, vector<32x32xf32>
    %cst_176 = arith.constant dense<0.000000e+00> : vector<2x32xf32>
    %436 = tpu.matmul %434, %435, %cst_176 {dimension_numbers = #tpu.dot_dimension_numbers<[1], [0], [0], [1], [0, 0, 1, 1], [], []>} : vector<2x32xf32>, vector<32x32xf32>, vector<2x32xf32> -> vector<2x32xf32>
    %437 = arith.mulf %436, %436 : vector<2x32xf32>
    %cst_177 = arith.constant dense<0.000000e+00> : vector<2xf32>
    %438 = vector.multi_reduction <add>, %437, %cst_177 [1] : vector<2x32xf32> to vector<2xf32>
    %439 = vector.shape_cast %438 : vector<2xf32> to vector<2x1xf32>
    %440 = math.sqrt %439 : vector<2x1xf32>
    %441 = vector.broadcast %440 : vector<2x1xf32> to vector<2x32xf32>
    %442 = arith.divf %436, %441 : vector<2x32xf32>
    %c0_178 = arith.constant 0 : index
    %c0_179 = arith.constant 0 : index
    %443 = vector.load %arg3[%c0_178, %c0_179] : memref<2x32xf32, #tpu.memory_space<vmem>>, vector<2x32xf32>
    "tpu.trace_start"() <{level = 10 : i32, message = "md,pd->mp"}> : () -> ()
    %cst_180 = arith.constant dense<0.000000e+00> : vector<2x2xf32>
    %444 = tpu.matmul %443, %442, %cst_180 {dimension_numbers = #tpu.dot_dimension_numbers<[1], [1], [0], [0], [0, 0, 1, 0], [], []>} : vector<2x32xf32>, vector<2x32xf32>, vector<2x2xf32> -> vector<2x2xf32>
    "tpu.trace_stop"() : () -> ()
    %cst_181 = arith.constant 1.000000e+02 : f32
    %445 = vector.broadcast %cst_181 : f32 to vector<2x2xf32>
    %446 = arith.mulf %445, %444 : vector<2x2xf32>
    %cst_182 = arith.constant dense<0xFF800000> : vector<2xf32>
    %447 = vector.multi_reduction <maximumf>, %446, %cst_182 [1] : vector<2x2xf32> to vector<2xf32>
    %448 = vector.shape_cast %447 : vector<2xf32> to vector<2x1xf32>
    %449 = vector.broadcast %448 : vector<2x1xf32> to vector<2x2xf32>
    %450 = arith.subf %446, %449 : vector<2x2xf32>
    %451 = math.exp %450 : vector<2x2xf32>
    %cst_183 = arith.constant dense<0.000000e+00> : vector<2xf32>
    %452 = vector.multi_reduction <add>, %451, %cst_183 [1] : vector<2x2xf32> to vector<2xf32>
    %453 = vector.shape_cast %452 : vector<2xf32> to vector<2x1xf32>
    %454 = vector.broadcast %453 : vector<2x1xf32> to vector<2x2xf32>
    %455 = arith.divf %451, %454 : vector<2x2xf32>
    %456 = vector.extract_strided_slice %455 {offsets = [0, 0], sizes = [2, 1], strides = [1, 1]} : vector<2x2xf32> to vector<2x1xf32>
    %c0_184 = arith.constant 0 : index
    %c0_185 = arith.constant 0 : index
    %457 = vector.load %arg39[%c0_184, %c0_185] : memref<2x1xf32, #tpu.memory_space<vmem>>, vector<2x1xf32>
    tpu.vector_store %arg39[%c0_184, %c0_185], %456 {strides = array<i32>} : memref<2x1xf32, #tpu.memory_space<vmem>>, vector<2x1xf32>,
    return
  }
}

</mosaic_0001>

<bundles_post_ra>
// kernel: tpu_custom_call.1
= control target key start
LH: loop header
LB: loop body
LE: loop exit
PB: predicated region body
PF: predicated region fallthrough
CT: control target
= control target key end

     0   :  { %s4979_s6 = smov 1   ;;  %s4980_s10 = smov 2   ;;  %s5735_s0 = inlined_call_operand.smem [shape: u32[40], index: -1, kind: input, shape index: {}] }
   0x1   :  { %s5048_s5 = sld [smem:[%s5735_s0]]   ;;  %s4981_s14 = smov 3  }
   0x2   :  { %s5053_s9 = sld [smem:[%s5735_s0 + %s4979_s6]]   ;;  %s4982_s18 = smov 4  }
   0x3   :  { %s5058_s13 = sld [smem:[%s5735_s0 + %s4980_s10]]   ;;  %s4983_s22 = smov 5  }
   0x4   :  { %s5063_s17 = sld [smem:[%s5735_s0 + %s4981_s14]]   ;;  %s4984_s26 = smov 6  }
   0x5   :  { %s5068_s21 = sld [smem:[%s5735_s0 + %s4982_s18]]   ;;  %s4985_s30 = smov 7  }
   0x6   :  { %s5073_s25 = sld [smem:[%s5735_s0 + %s4983_s22]]   ;;  %s4986_s4 = smov 8  }
   0x7   :  { %5751 = sst [smem:[#allocation37_spill]] %s5048_s5  ;;  %s4987_s10 = smov 9  }
   0x8   :  { %s5078_s29 = sld [smem:[%s5735_s0 + %s4984_s26]]   ;;  %s4988_s15 = smov 10  }
   0x9   :  { %s5083_s3 = sld [smem:[%s5735_s0 + %s4985_s30]]   ;;  %s4989_s20 = smov 11  }
   0xa   :  { %s5088_s8 = sld [smem:[%s5735_s0 + %s4986_s4]]   ;;  %s4990_s26 = smov 12  }
   0xb   :  { %s5093_s14 = sld [smem:[%s5735_s0 + %s4987_s10]]   ;;  %s4991_s1 = smov 13  }
   0xc   :  { %s5098_s19 = sld [smem:[%s5735_s0 + %s4988_s15]]   ;;  %s4992_s7 = smov 14  }
   0xd   :  { %s5103_s24 = sld [smem:[%s5735_s0 + %s4989_s20]]   ;;  %s4993_s15 = smov 15  }
   0xe   :  { %5752 = sst [smem:[#allocation38_spill]] %s5078_s29  ;;  %s4994_s22 = smov 16  }
   0xf   :  { %s5108_s30 = sld [smem:[%s5735_s0 + %s4990_s26]]   ;;  %s4995_s28 = smov 17  }
  0x10   :  { %s5113_s6 = sld [smem:[%s5735_s0 + %s4991_s1]]  }
  0x11   :  { %5753 = sst [smem:[#allocation39_spill]] %s5093_s14 }
  0x12   :  { %s5118_s12 = sld [smem:[%s5735_s0 + %s4992_s7]]   ;;  %s4996_s7 = smov 18  }
  0x13   :  { %5754 = sst [smem:[#allocation40_spill]] %s5103_s24 }
  0x14   :  { %s5123_s20 = sld [smem:[%s5735_s0 + %s4993_s15]]   ;;  %s4997_s15 = smov 19  }
  0x15   :  { %s5128_s27 = sld [smem:[%s5735_s0 + %s4994_s22]]   ;;  %s4998_s22 = smov 20  }
  0x16   :  { %5755 = sst [smem:[#allocation41_spill]] %s5113_s6 }
  0x17   :  { %s5133_s4 = sld [smem:[%s5735_s0 + %s4995_s28]]   ;;  %s4999_s28 = smov 21  }
  0x18   :  { %s5138_s29 = sld [smem:[%s5735_s0 + %s4996_s7]]   ;;  %s5000_s7 = smov 22  }
  0x19   :  { %s5143_s5 = sld [smem:[%s5735_s0 + %s4997_s15]]   ;;  %s5001_s15 = smov 23  }
  0x1a   :  { %5756 = sst [smem:[#allocation42_spill]] %s5123_s20 }
  0x1b   :  { %s5148_s20 = sld [smem:[%s5735_s0 + %s4998_s22]]   ;;  %s5002_s22 = smov 24  }
  0x1c   :  { %s5153_s24 = sld [smem:[%s5735_s0 + %s4999_s28]]   ;;  %s5003_s28 = smov 25  }
  0x1e   :  { %5757 = sst [smem:[#allocation43_spill]] %s5138_s29 }
  0x1f   :  { %5758 = sst [smem:[#allocation44_spill]] %s5143_s5 }
  0x20   :  { %s5158_s29 = sld [smem:[%s5735_s0 + %s5000_s7]]   ;;  %s5004_s7 = smov 26  }
  0x21   :  { %5759 = sst [smem:[#allocation45_spill]] %s5148_s20 }
  0x22   :  { %5760 = sst [smem:[#allocation46_spill]] %s5153_s24 }
  0x23   :  { %s5163_s5 = sld [smem:[%s5735_s0 + %s5001_s15]]   ;;  %s5005_s15 = smov 27  }
  0x24   :  { %s5168_s20 = sld [smem:[%s5735_s0 + %s5002_s22]]   ;;  %s5006_s22 = smov 28  }
  0x25   :  { %s5173_s24 = sld [smem:[%s5735_s0 + %s5003_s28]]   ;;  %s5007_s28 = smov 29  }
  0x26   :  { %s5178_s6 = sld [smem:[%s5735_s0 + %s5004_s7]]   ;;  %s5008_s7 = smov 30  }
  0x27   :  { %s5183_s14 = sld [smem:[%s5735_s0 + %s5005_s15]]   ;;  %s5009_s15 = smov 31  }
  0x2a   :  { %5761 = sst [smem:[#allocation47_spill]] %s5168_s20 }
  0x2b   :  { %5762 = sst [smem:[#allocation48_spill]] %s5173_s24 }
  0x2c   :  { %5763 = sst [smem:[#allocation49_spill]] %s5178_s6 }
  0x2d   :  { %5764 = sst [smem:[#allocation50_spill]] %s5183_s14 }
  0x2e   :  { %s5188_s20 = sld [smem:[%s5735_s0 + %s5006_s22]]   ;;  %s5010_s22 = smov 32  }
  0x2f   :  { %s5193_s24 = sld [smem:[%s5735_s0 + %s5007_s28]]   ;;  %s5011_s28 = smov 33  }
  0x30   :  { %s5198_s6 = sld [smem:[%s5735_s0 + %s5008_s7]]   ;;  %s5012_s7 = smov 34  }
  0x31   :  { %s5203_s14 = sld [smem:[%s5735_s0 + %s5009_s15]]   ;;  %s5013_s15 = smov 35  }
  0x34   :  { %5765 = sst [smem:[#allocation51_spill]] %s5188_s20 }
  0x35   :  { %5766 = sst [smem:[#allocation52_spill]] %s5193_s24 }
  0x36   :  { %5767 = sst [smem:[#allocation53_spill]] %s5198_s6 }
  0x37   :  { %5768 = sst [smem:[#allocation54_spill]] %s5203_s14 }
  0x38   :  { %s5208_s20 = sld [smem:[%s5735_s0 + %s5010_s22]]   ;;  %s5014_s22 = smov 36  }
  0x39   :  { %s5213_s24 = sld [smem:[%s5735_s0 + %s5011_s28]]   ;;  %s5015_s28 = smov 37  }
  0x3a   :  { %s5218_s6 = sld [smem:[%s5735_s0 + %s5012_s7]]   ;;  %s5016_s7 = smov 38  }
  0x3b   :  { %s5223_s14 = sld [smem:[%s5735_s0 + %s5013_s15]]   ;;  %s5017_s15 = smov 39  }
  0x3e   :  { %5769 = sst [smem:[#allocation55_spill]] %s5208_s20 }
  0x3f   :  { %5770 = sst [smem:[#allocation56_spill]] %s5213_s24 }
  0x40   :  { %5771 = sst [smem:[#allocation57_spill]] %s5218_s6 }
  0x41   :  { %5772 = sst [smem:[#allocation58_spill]] %s5223_s14 }
  0x42   :  { %s5228_s20 = sld [smem:[%s5735_s0 + %s5014_s22]]  }
  0x43   :  { %s5233_s24 = sld [smem:[%s5735_s0 + %s5015_s28]]  }
  0x44   :  { %s5238_s6 = sld [smem:[%s5735_s0 + %s5016_s7]]  }
  0x45   :  { %s5243_s14 = sld [smem:[%s5735_s0 + %s5017_s15]]  }
  0x46   :  { %85 = vsyncpa [#allocation4], 0 }
  0x47   :  { %86 = vsyncpa [#allocation6], 0 }
  0x48   :  { %87 = vsyncpa [#allocation9], 0 }
  0x49   :  { %88 = vsyncpa [#allocation12], 0 }
  0x4a   :  { %89 = vsyncpa [#allocation15], 0 }
  0x4b   :  { %90 = vsyncpa [#allocation18], 0 }
  0x4c   :  { %91 = vsyncpa [#allocation21], 0 }
  0x4d   :  { %92 = vsyncpa [#allocation24], 0 }
  0x4e   :  { %93 = vsyncpa [#allocation27], 0  ;;  %s5018_s22 = smov [#allocation5]   ;;  %s5019_s26 = smov [#allocation8]  }
  0x4f   :  { %s114_s23 = sshll.u32 %s5018_s22, 4  ;;  %s134_s28 = sshll.u32 %s5019_s26, 4  ;;  %s115_s23 = int_to_ptr.vmem [resolvable:$true] %s114_s23  ;;  %s135_s28 = int_to_ptr.vmem [resolvable:$true] %s134_s28 }
  0x50   :  { %s4609_s0 = scalar_lea.hbm %s5058_s13, 128 }
  0x51   :  { %p4610_p0 = scmp.ne.s32.totalorder %s5058_s13, %s4609_s0  ;;  %p4613_p1 = scmp.lt.u32.totalorder %s4609_s0, %s5058_s13 }
  0x53   :  { %p4615_p2 = pnand %p4613_p1, %p4610_p0 }
  0x55   :  { %4618 = shalt.err (!%p4615_p2)
}
  0x56   :  { %s4619_s1 = scalar_lea.vmem %s115_s23, 128  ;;  %p4624_p4 = scmp.lt.s32.totalorder %s115_s23, %s115_s23 }
  0x57   :  { %p4620_p3 = scmp.ne.s32.totalorder %s115_s23, %s4619_s1  ;;  %p4625_p5 = scmp.lt.s32.totalorder %s4619_s1, %s4619_s1 }
  0x59   :  { %p4626_p6 = por %p4625_p5, %p4624_p4 }
  0x5b   :  { %p4627_p7 = pnand %p4626_p6, %p4620_p3 }
  0x5d   :  { %4630 = shalt.err (!%p4627_p7)
}
  0x5e   :  { %117 = dma.hbm_to_vmem [thread:$0]  %s5058_s13, 128, %s115_s23, [#allocation6]  }
  0x5f   :  { %s4631_s2 = scalar_lea.hbm %s5068_s21, 16 }
  0x60   :  { %p4632_p8 = scmp.ne.s32.totalorder %s5068_s21, %s4631_s2  ;;  %p4635_p9 = scmp.lt.u32.totalorder %s4631_s2, %s5068_s21 }
  0x62   :  { %p4637_p10 = pnand %p4635_p9, %p4632_p8 }
  0x64   :  { %4640 = shalt.err (!%p4637_p10)
}
  0x65   :  { %s4641_s7 = scalar_lea.vmem %s135_s28, 16  ;;  %s4645_s10 = scalar_lea.vmem %s135_s28, 32 }
  0x66   :  { %p4642_p11 = scmp.ne.s32.totalorder %s135_s28, %s4641_s7  ;;  %p4646_p12 = scmp.lt.s32.totalorder %s135_s28, %s135_s28 }
  0x67   :  { %p4647_p13 = scmp.lt.s32.totalorder %s4645_s10, %s4641_s7 }
  0x69   :  { %p4648_p0 = por %p4647_p13, %p4646_p12 }
  0x6b   :  { %p4649_p1 = pnand %p4648_p0, %p4642_p11 }
  0x6d   :  { %4652 = shalt.err (!%p4649_p1)
}
  0x6e   :  { %137 = dma.hbm_to_vmem [thread:$0]  %s5068_s21, 16, %s135_s28, [#allocation9]  }
  0x6f   :  { %s5020_s11 = smov [#allocation11]   ;;  %s5021_s15 = smov [#allocation14]  }
  0x70   :  { %s156_s13 = sshll.u32 %s5020_s11, 4  ;;  %s178_s16 = sshll.u32 %s5021_s15, 4  ;;  %s157_s13 = int_to_ptr.vmem [resolvable:$true] %s156_s13  ;;  %s179_s16 = int_to_ptr.vmem [resolvable:$true] %s178_s16 }
  0x71   :  { %s4653_s18 = scalar_lea.hbm %s5083_s3, 16 }
  0x72   :  { %p4654_p2 = scmp.ne.s32.totalorder %s5083_s3, %s4653_s18  ;;  %p4657_p3 = scmp.lt.u32.totalorder %s4653_s18, %s5083_s3 }
  0x74   :  { %p4659_p4 = pnand %p4657_p3, %p4654_p2 }
  0x76   :  { %4662 = shalt.err (!%p4659_p4)
}
  0x77   :  { %s4663_s22 = scalar_lea.vmem %s157_s13, 16  ;;  %s4667_s23 = scalar_lea.vmem %s157_s13, 32 }
  0x78   :  { %p4664_p5 = scmp.ne.s32.totalorder %s157_s13, %s4663_s22  ;;  %p4668_p6 = scmp.lt.s32.totalorder %s157_s13, %s157_s13 }
  0x79   :  { %p4669_p7 = scmp.lt.s32.totalorder %s4667_s23, %s4663_s22 }
  0x7b   :  { %p4670_p8 = por %p4669_p7, %p4668_p6 }
  0x7d   :  { %p4671_p9 = pnand %p4670_p8, %p4664_p5 }
  0x7f   :  { %4674 = shalt.err (!%p4671_p9)
}
  0x80   :  { %159 = dma.hbm_to_vmem [thread:$0]  %s5083_s3, 16, %s157_s13, [#allocation12]  }
  0x81   :  { %s4675_s21 = scalar_lea.hbm %s5098_s19, 16 }
  0x82   :  { %p4676_p10 = scmp.ne.s32.totalorder %s5098_s19, %s4675_s21  ;;  %p4679_p11 = scmp.lt.u32.totalorder %s4675_s21, %s5098_s19 }
  0x84   :  { %p4681_p12 = pnand %p4679_p11, %p4676_p10 }
  0x86   :  { %4684 = shalt.err (!%p4681_p12)
}
  0x87   :  { %s4685_s26 = scalar_lea.vmem %s179_s16, 16  ;;  %s4689_s28 = scalar_lea.vmem %s179_s16, 32 }
  0x88   :  { %p4686_p13 = scmp.ne.s32.totalorder %s179_s16, %s4685_s26  ;;  %p4690_p0 = scmp.lt.s32.totalorder %s179_s16, %s179_s16 }
  0x89   :  { %p4691_p1 = scmp.lt.s32.totalorder %s4689_s28, %s4685_s26 }
  0x8b   :  { %p4692_p2 = por %p4691_p1, %p4690_p0 }
  0x8d   :  { %p4693_p3 = pnand %p4692_p2, %p4686_p13 }
  0x8f   :  { %4696 = shalt.err (!%p4693_p3)
}
  0x90   :  { %181 = dma.hbm_to_vmem [thread:$0]  %s5098_s19, 16, %s179_s16, [#allocation15]  }
  0x91   :  { %s5022_s0 = smov [#allocation17]   ;;  %s5023_s1 = smov [#allocation20]  }
  0x92   :  { %s202_s3 = sshll.u32 %s5022_s0, 4  ;;  %s224_s2 = sshll.u32 %s5023_s1, 4  ;;  %s203_s3 = int_to_ptr.vmem [resolvable:$true] %s202_s3  ;;  %s225_s2 = int_to_ptr.vmem [resolvable:$true] %s224_s2 }
  0x93   :  { %s4697_s7 = scalar_lea.hbm %s5118_s12, 16 }
  0x94   :  { %p4698_p4 = scmp.ne.s32.totalorder %s5118_s12, %s4697_s7  ;;  %p4701_p5 = scmp.lt.u32.totalorder %s4697_s7, %s5118_s12 }
  0x96   :  { %p4703_p6 = pnand %p4701_p5, %p4698_p4 }
  0x98   :  { %4706 = shalt.err (!%p4703_p6)
}
  0x99   :  { %s4707_s10 = scalar_lea.vmem %s203_s3, 16  ;;  %s4711_s11 = scalar_lea.vmem %s203_s3, 32 }
  0x9a   :  { %p4708_p7 = scmp.ne.s32.totalorder %s203_s3, %s4707_s10  ;;  %p4712_p8 = scmp.lt.s32.totalorder %s203_s3, %s203_s3 }
  0x9b   :  { %p4713_p9 = scmp.lt.s32.totalorder %s4711_s11, %s4707_s10 }
  0x9d   :  { %p4714_p10 = por %p4713_p9, %p4712_p8 }
  0x9f   :  { %p4715_p11 = pnand %p4714_p10, %p4708_p7 }
  0xa1   :  { %4718 = shalt.err (!%p4715_p11)
}
  0xa2   :  { %205 = dma.hbm_to_vmem [thread:$0]  %s5118_s12, 16, %s203_s3, [#allocation18]  }
  0xa3   :  { %s4719_s19 = scalar_lea.hbm %s5133_s4, 16 }
  0xa4   :  { %p4720_p12 = scmp.ne.s32.totalorder %s5133_s4, %s4719_s19  ;;  %p4723_p13 = scmp.lt.u32.totalorder %s4719_s19, %s5133_s4 }
  0xa6   :  { %p4725_p0 = pnand %p4723_p13, %p4720_p12 }
  0xa8   :  { %4728 = shalt.err (!%p4725_p0)
}
  0xa9   :  { %s4729_s13 = scalar_lea.vmem %s225_s2, 16  ;;  %s4733_s15 = scalar_lea.vmem %s225_s2, 32 }
  0xaa   :  { %p4730_p1 = scmp.ne.s32.totalorder %s225_s2, %s4729_s13  ;;  %p4734_p2 = scmp.lt.s32.totalorder %s225_s2, %s225_s2 }
  0xab   :  { %p4735_p3 = scmp.lt.s32.totalorder %s4733_s15, %s4729_s13 }
  0xad   :  { %p4736_p4 = por %p4735_p3, %p4734_p2 }
  0xaf   :  { %p4737_p5 = pnand %p4736_p4, %p4730_p1 }
  0xb1   :  { %4740 = shalt.err (!%p4737_p5)
}
  0xb2   :  { %227 = dma.hbm_to_vmem [thread:$0]  %s5133_s4, 16, %s225_s2, [#allocation21]  }
  0xb3   :  { %s5024_s16 = smov [#allocation23]   ;;  %s5025_s18 = smov [#allocation3]  }
  0xb4   :  { %s252_s12 = sshll.u32 %s5024_s16, 4  ;;  %s101_s22 = sshll.u32 %s5025_s18, 4  ;;  %s253_s12 = int_to_ptr.vmem [resolvable:$true] %s252_s12  ;;  %s5269_s22 = int_to_ptr.vmem [resolvable:$true] %s101_s22 }
  0xb5   :  { %s4741_s23 = scalar_lea.hbm %s5163_s5, 16 }
  0xb6   :  { %p4742_p6 = scmp.ne.s32.totalorder %s5163_s5, %s4741_s23  ;;  %p4745_p7 = scmp.lt.u32.totalorder %s4741_s23, %s5163_s5 }
  0xb8   :  { %p4747_p8 = pnand %p4745_p7, %p4742_p6 }
  0xba   :  { %4750 = shalt.err (!%p4747_p8)
}
  0xbb   :  { %s4751_s21 = scalar_lea.vmem %s253_s12, 16  ;;  %s4755_s26 = scalar_lea.vmem %s253_s12, 32 }
  0xbc   :  { %p4752_p9 = scmp.ne.s32.totalorder %s253_s12, %s4751_s21  ;;  %p4756_p10 = scmp.lt.s32.totalorder %s253_s12, %s253_s12 }
  0xbd   :  { %p4757_p11 = scmp.lt.s32.totalorder %s4755_s26, %s4751_s21 }
  0xbf   :  { %p4758_p12 = por %p4757_p11, %p4756_p10 }
  0xc1   :  { %p4759_p13 = pnand %p4758_p12, %p4752_p9 }
  0xc3   :  { %4762 = shalt.err (!%p4759_p13)
}
  0xc4   :  { %255 = dma.hbm_to_vmem [thread:$0]  %s5163_s5, 16, %s253_s12, [#allocation24]  }
  0xc5   :  { %s4763_s4 = scalar_lea.hbm %s5053_s9, 256 }
  0xc6   :  { %p4764_p0 = scmp.ne.s32.totalorder %s5053_s9, %s4763_s4  ;;  %p4767_p1 = scmp.lt.u32.totalorder %s4763_s4, %s5053_s9 }
  0xc8   :  { %p4769_p2 = pnand %p4767_p1, %p4764_p0 }
  0xca   :  { %4772 = shalt.err (!%p4769_p2)
}
  0xcb   :  { %s4773_s28 = scalar_lea.vmem %s5269_s22, 256  ;;  %p4778_p4 = scmp.lt.s32.totalorder %s5269_s22, %s5269_s22 }
  0xcc   :  { %p4774_p3 = scmp.ne.s32.totalorder %s5269_s22, %s4773_s28  ;;  %p4779_p5 = scmp.lt.s32.totalorder %s4773_s28, %s4773_s28 }
  0xce   :  { %p4780_p6 = por %p4779_p5, %p4778_p4 }
  0xd0   :  { %p4781_p7 = pnand %p4780_p6, %p4774_p3 }
  0xd2   :  { %4784 = shalt.err (!%p4781_p7)
}
  0xd3   :  { %s5026_s0 = smov 128   ;;  %s5027_s5 = smov 8  }
  0xd4   :  { %107 = dma.hbm_to_vmem [thread:$0]  %s5053_s9, 256, %s5269_s22, [#allocation4], %s5026_s0, %s5026_s0, %s5027_s5  }
  0xd5   :  { %s5028_s3 = smov [#allocation7]   ;;  %s5029_s2 = smov [#allocation10]  }
  0xd6   :  { %s124_s1 = sshll.u32 %s5028_s3, 4  ;;  %s144_s7 = sshll.u32 %s5029_s2, 4  ;;  %s125_s1 = int_to_ptr.vmem [resolvable:$true] %s124_s1  ;;  %s145_s7 = int_to_ptr.vmem [resolvable:$true] %s144_s7 }
  0xd7   :  { %s4785_s10 = scalar_lea.hbm %s5063_s17, 32 }
  0xd8   :  { %p4786_p8 = scmp.ne.s32.totalorder %s5063_s17, %s4785_s10  ;;  %p4789_p9 = scmp.lt.u32.totalorder %s4785_s10, %s5063_s17 }
  0xda   :  { %p4791_p10 = pnand %p4789_p9, %p4786_p8 }
  0xdc   :  { %4794 = shalt.err (!%p4791_p10)
}
  0xdd   :  { %s4795_s11 = scalar_lea.vmem %s125_s1, 32  ;;  %p4800_p12 = scmp.lt.s32.totalorder %s125_s1, %s125_s1 }
  0xde   :  { %p4796_p11 = scmp.ne.s32.totalorder %s125_s1, %s4795_s11  ;;  %p4801_p13 = scmp.lt.s32.totalorder %s4795_s11, %s4795_s11 }
  0xe0   :  { %p4802_p0 = por %p4801_p13, %p4800_p12 }
  0xe2   :  { %p4803_p1 = pnand %p4802_p0, %p4796_p11 }
  0xe4   :  { %4806 = shalt.err (!%p4803_p1)
}
  0xe5   :  { %127 = dma.hbm_to_vmem [thread:$0]  %s5063_s17, 32, %s125_s1, [#allocation6]  }
  0xe6   :  { %s4807_s9 = scalar_lea.hbm %s5073_s25, 16 }
  0xe7   :  { %p4808_p2 = scmp.ne.s32.totalorder %s5073_s25, %s4807_s9  ;;  %p4811_p3 = scmp.lt.u32.totalorder %s4807_s9, %s5073_s25 }
  0xe9   :  { %p4813_p4 = pnand %p4811_p3, %p4808_p2 }
  0xeb   :  { %4816 = shalt.err (!%p4813_p4)
}
  0xec   :  { %s4817_s19 = scalar_lea.vmem %s145_s7, 16  ;;  %s4821_s13 = scalar_lea.vmem %s145_s7, 32 }
  0xed   :  { %p4818_p5 = scmp.ne.s32.totalorder %s145_s7, %s4817_s19  ;;  %p4822_p6 = scmp.lt.s32.totalorder %s145_s7, %s145_s7 }
  0xee   :  { %p4823_p7 = scmp.lt.s32.totalorder %s4821_s13, %s4817_s19 }
  0xf0   :  { %p4824_p8 = por %p4823_p7, %p4822_p6 }
  0xf2   :  { %p4825_p9 = pnand %p4824_p8, %p4818_p5 }
  0xf4   :  { %4828 = shalt.err (!%p4825_p9)
}
  0xf5   :  { %147 = dma.hbm_to_vmem [thread:$0]  %s5073_s25, 16, %s145_s7, [#allocation9]  }
  0xf6   :  { %s5030_s15 = smov [#allocation13]   ;;  %s5031_s16 = smov [#allocation16]  }
  0xf7   :  { %s166_s17 = sshll.u32 %s5030_s15, 4  ;;  %s190_s12 = sshll.u32 %s5031_s16, 4  ;;  %s167_s17 = int_to_ptr.vmem [resolvable:$true] %s166_s17  ;;  %s191_s12 = int_to_ptr.vmem [resolvable:$true] %s190_s12 }
  0xf8   :  { %s4829_s18 = scalar_lea.hbm %s5088_s8, 16 }
  0xf9   :  { %p4830_p10 = scmp.ne.s32.totalorder %s5088_s8, %s4829_s18  ;;  %p4833_p11 = scmp.lt.u32.totalorder %s4829_s18, %s5088_s8 }
  0xfb   :  { %p4835_p12 = pnand %p4833_p11, %p4830_p10 }
  0xfd   :  { %4838 = shalt.err (!%p4835_p12)
}
  0xfe   :  { %s4839_s22 = scalar_lea.vmem %s167_s17, 16  ;;  %s4843_s23 = scalar_lea.vmem %s167_s17, 32 }
  0xff   :  { %p4840_p13 = scmp.ne.s32.totalorder %s167_s17, %s4839_s22  ;;  %p4844_p0 = scmp.lt.s32.totalorder %s167_s17, %s167_s17 }
 0x100   :  { %p4845_p1 = scmp.lt.s32.totalorder %s4843_s23, %s4839_s22 }
 0x102   :  { %p4846_p2 = por %p4845_p1, %p4844_p0 }
 0x104   :  { %p4847_p3 = pnand %p4846_p2, %p4840_p13 }
 0x106   :  { %4850 = shalt.err (!%p4847_p3)
}
 0x107   :  { %169 = dma.hbm_to_vmem [thread:$0]  %s5088_s8, 16, %s167_s17, [#allocation12]  }
 0x108   :  { %s4851_s25 = scalar_lea.hbm %s5108_s30, 16 }
 0x109   :  { %p4852_p4 = scmp.ne.s32.totalorder %s5108_s30, %s4851_s25  ;;  %p4855_p5 = scmp.lt.u32.totalorder %s4851_s25, %s5108_s30 }
 0x10b   :  { %p4857_p6 = pnand %p4855_p5, %p4852_p4 }
 0x10d   :  { %4860 = shalt.err (!%p4857_p6)
}
 0x10e   :  { %s4861_s21 = scalar_lea.vmem %s191_s12, 16  ;;  %s4865_s26 = scalar_lea.vmem %s191_s12, 32 }
 0x10f   :  { %p4862_p7 = scmp.ne.s32.totalorder %s191_s12, %s4861_s21  ;;  %p4866_p8 = scmp.lt.s32.totalorder %s191_s12, %s191_s12 }
 0x110   :  { %p4867_p9 = scmp.lt.s32.totalorder %s4865_s26, %s4861_s21 }
 0x112   :  { %p4868_p10 = por %p4867_p9, %p4866_p8 }
 0x114   :  { %p4869_p11 = pnand %p4868_p10, %p4862_p7 }
 0x116   :  { %4872 = shalt.err (!%p4869_p11)
}
 0x117   :  { %193 = dma.hbm_to_vmem [thread:$0]  %s5108_s30, 16, %s191_s12, [#allocation15]  }
 0x118   :  { %s5032_s4 = smov [#allocation19]   ;;  %s5033_s28 = smov [#allocation22]  }
 0x119   :  { %s214_s8 = sshll.u32 %s5032_s4, 4  ;;  %s242_s0 = sshll.u32 %s5033_s28, 4  ;;  %s215_s8 = int_to_ptr.vmem [resolvable:$true] %s214_s8  ;;  %s243_s0 = int_to_ptr.vmem [resolvable:$true] %s242_s0 }
 0x11a   :  { %s4873_s5 = scalar_lea.hbm %s5128_s27, 16 }
 0x11b   :  { %p4874_p12 = scmp.ne.s32.totalorder %s5128_s27, %s4873_s5  ;;  %p4877_p13 = scmp.lt.u32.totalorder %s4873_s5, %s5128_s27 }
 0x11d   :  { %p4879_p0 = pnand %p4877_p13, %p4874_p12 }
 0x11f   :  { %4882 = shalt.err (!%p4879_p0)
}
 0x120   :  { %s4883_s3 = scalar_lea.vmem %s215_s8, 16  ;;  %s4887_s1 = scalar_lea.vmem %s215_s8, 32 }
 0x121   :  { %p4884_p1 = scmp.ne.s32.totalorder %s215_s8, %s4883_s3  ;;  %p4888_p2 = scmp.lt.s32.totalorder %s215_s8, %s215_s8 }
 0x122   :  { %p4889_p3 = scmp.lt.s32.totalorder %s4887_s1, %s4883_s3 }
 0x124   :  { %p4890_p4 = por %p4889_p3, %p4888_p2 }
 0x126   :  { %p4891_p5 = pnand %p4890_p4, %p4884_p1 }
 0x128   :  { %4894 = shalt.err (!%p4891_p5)
}
 0x129   :  { %217 = dma.hbm_to_vmem [thread:$0]  %s5128_s27, 16, %s215_s8, [#allocation18]  }
 0x12a   :  { %s4895_s30 = scalar_lea.hbm %s5158_s29, 16 }
 0x12b   :  { %p4896_p6 = scmp.ne.s32.totalorder %s5158_s29, %s4895_s30  ;;  %p4899_p7 = scmp.lt.u32.totalorder %s4895_s30, %s5158_s29 }
 0x12d   :  { %p4901_p8 = pnand %p4899_p7, %p4896_p6 }
 0x12f   :  { %4904 = shalt.err (!%p4901_p8)
}
 0x130   :  { %s4905_s2 = scalar_lea.vmem %s243_s0, 16  ;;  %s4909_s7 = scalar_lea.vmem %s243_s0, 32 }
 0x131   :  { %p4906_p9 = scmp.ne.s32.totalorder %s243_s0, %s4905_s2  ;;  %p4910_p10 = scmp.lt.s32.totalorder %s243_s0, %s243_s0 }
 0x132   :  { %p4911_p11 = scmp.lt.s32.totalorder %s4909_s7, %s4905_s2 }
 0x134   :  { %p4912_p12 = por %p4911_p11, %p4910_p10 }
 0x136   :  { %p4913_p13 = pnand %p4912_p12, %p4906_p9 }
 0x138   :  { %4916 = shalt.err (!%p4913_p13)
}
 0x139   :  { %s5773_s10 = sld [smem:[#allocation47_spill]]  ;;  %s5034_s11 = smov [#allocation25]  }
 0x13a   :  { %245 = dma.hbm_to_vmem [thread:$0]  %s5158_s29, 16, %s243_s0, [#allocation21]  }
 0x13b   :  { %s262_s27 = sshll.u32 %s5034_s11, 4  ;;  %s5035_s9 = smov [#allocation26]   ;;  %s263_s27 = int_to_ptr.vmem [resolvable:$true] %s262_s27 }
 0x13c   :  { %s274_s19 = sshll.u32 %s5035_s9, 4  ;;  %s275_s19 = int_to_ptr.vmem [resolvable:$true] %s274_s19 }
 0x13f   :  { %s4917_s13 = scalar_lea.hbm %s5773_s10, 16 }
 0x140   :  { %p4918_p0 = scmp.ne.s32.totalorder %s5773_s10, %s4917_s13  ;;  %p4921_p1 = scmp.lt.u32.totalorder %s4917_s13, %s5773_s10 }
 0x142   :  { %p4923_p2 = pnand %p4921_p1, %p4918_p0 }
 0x144   :  { %4926 = shalt.err (!%p4923_p2)
}
 0x145   :  { %s4927_s15 = scalar_lea.vmem %s263_s27, 16  ;;  %s4931_s17 = scalar_lea.vmem %s263_s27, 32 }
 0x146   :  { %p4928_p3 = scmp.ne.s32.totalorder %s263_s27, %s4927_s15  ;;  %p4932_p4 = scmp.lt.s32.totalorder %s263_s27, %s263_s27 }
 0x147   :  { %p4933_p5 = scmp.lt.s32.totalorder %s4931_s17, %s4927_s15 }
 0x149   :  { %p4934_p6 = por %p4933_p5, %p4932_p4 }
 0x14b   :  { %p4935_p7 = pnand %p4934_p6, %p4928_p3 }
 0x14d   :  { %4938 = shalt.err (!%p4935_p7)
}
 0x14e   :  { %s5774_s29 = sld [smem:[#allocation49_spill]] }
 0x14f   :  { %265 = dma.hbm_to_vmem [thread:$0]  %s5773_s10, 16, %s263_s27, [#allocation24]  }
 0x154   :  { %s4939_s16 = scalar_lea.hbm %s5774_s29, 16 }
 0x155   :  { %p4940_p8 = scmp.ne.s32.totalorder %s5774_s29, %s4939_s16  ;;  %p4943_p9 = scmp.lt.u32.totalorder %s4939_s16, %s5774_s29 }
 0x157   :  { %p4945_p10 = pnand %p4943_p9, %p4940_p8 }
 0x159   :  { %4948 = shalt.err (!%p4945_p10)
}
 0x15a   :  { %s4949_s12 = scalar_lea.vmem %s275_s19, 16  ;;  %s4953_s18 = scalar_lea.vmem %s275_s19, 32 }
 0x15b   :  { %p4950_p11 = scmp.ne.s32.totalorder %s275_s19, %s4949_s12  ;;  %p4954_p12 = scmp.lt.s32.totalorder %s275_s19, %s275_s19 }
 0x15c   :  { %p4955_p13 = scmp.lt.s32.totalorder %s4953_s18, %s4949_s12 }
 0x15e   :  { %p4956_p0 = por %p4955_p13, %p4954_p12 }
 0x160   :  { %p4957_p1 = pnand %p4956_p0, %p4950_p11 }
 0x162   :  { %4960 = shalt.err (!%p4957_p1)
}
 0x163   :  { %277 = dma.hbm_to_vmem [thread:$0]  %s5774_s29, 16, %s275_s19, [#allocation27]  }
 0x164   :  { %4961 = dma.done.wait [#allocation4], 256  }
 0x165   :  { %4962 = vsyncadd [#allocation4], 4294967040 }
 0x166   :  { %4963 = dma.done.wait [#allocation6], 160  }
 0x167   :  { %4964 = vsyncadd [#allocation6], 4294967136 }
 0x168   :  { %4965 = dma.done.wait [#allocation9], 32  }
 0x169   :  { %4966 = vsyncadd [#allocation9], 4294967264 }
 0x16a   :  { %4967 = dma.done.wait [#allocation12], 32  }
 0x16b   :  { %4968 = vsyncadd [#allocation12], 4294967264 }
 0x16c   :  { %4969 = dma.done.wait [#allocation15], 32  }
 0x16d   :  { %4970 = vsyncadd [#allocation15], 4294967264 }
 0x16e   :  { %4971 = dma.done.wait [#allocation18], 32  }
 0x16f   :  { %4972 = vsyncadd [#allocation18], 4294967264 }
 0x170   :  { %4973 = dma.done.wait [#allocation21], 32  }
 0x171   :  { %4974 = vsyncadd [#allocation21], 4294967264 }
 0x172   :  { %4975 = dma.done.wait [#allocation24], 32  }
 0x173   :  { %4976 = vsyncadd [#allocation24], 4294967264 }
 0x174   :  { %4977 = dma.done.wait [#allocation27], 16  }
 0x175   :  { %4978 = vsyncadd [#allocation27], 4294967280  ;;  %v350_v0 = vld [vmem:[#allocation5] sm:$0xff]  ;;  %v351_v1 = vld [vmem:[#allocation3] sm:$0xff]  ;;  %vm406_vm0 = vcmask 261120   ;;  %s5775_s22 = sld [smem:[#allocation39_spill]]  ;;  %v355_v51 = vlaneseq }
 0x176   :  { %v352_v2 = vld [vmem:[#allocation3 + $0x8] sm:$0xff]  ;;  %v5316_v3 = vadd.f32 %v351_v1, %v350_v0  ;;  %s5776_s23 = sld [smem:[#allocation41_spill]]  ;;  %s5777_s25 = sld [smem:[#allocation40_spill]]  ;;  %v3614_v39 = vld [vmem:[#allocation11] ss:$0 sm:$0xff]  ;;  %v5036_v58 = vmov 0.0   ;;  %vm5398_vm11 = vmpackc.low %vm406_vm0, %vm406_vm0 }
 0x177   :  { %v5318_v4 = vadd.f32 %v352_v2, %v350_v0  ;;  %v3615_v41 = vld [vmem:[#allocation13] ss:$0 sm:$0xff]  ;;  %v5347_v52 = vand.u32 127, %v355_v51  ;;  %v3622_v54 = vld [vmem:[#allocation17] ss:$0 sm:$0xff]  ;;  %s5782_s21 = sld [smem:[#allocation42_spill]] }
 0x178   :  { %v407_v5 = vsel %vm406_vm0, %v5316_v3, 0.0  ;;  %v3616_v55 = vld [vmem:[#allocation14] ss:$0 sm:$0xff]  ;;  %s5783_s26 = sld [smem:[#allocation44_spill]]  ;;  %s5784_s4 = sld [smem:[#allocation43_spill]] }
 0x179   :  { %408 = vadd.xlane.f32.xlu0 %v407_v5  ;;  %v410_v6 = vsel %vm406_vm0, %v5318_v4, 0.0  ;;  %vm379_vm1 = vcmp.ge.s32.totalorder %v5347_v52, 8  ;;  %vm380_vm2 = vcmp.lt.s32.totalorder %v5347_v52, 16  ;;  %vm394_vm3 = vcmp.ge.s32.totalorder %v5347_v52, 16  ;;  %s5785_s8 = sld [smem:[#allocation46_spill]]  ;;  %s5786_s28 = sld [smem:[#allocation45_spill]] }
 0x17a   :  { %vm395_vm4 = vcmp.lt.s32.totalorder %v5347_v52, 24  ;;  %vm369_vm5 = vcmp.lt.s32.totalorder %v5347_v52, 8  ;;  %vm5354_vm6 = vmand %vm379_vm1, %vm380_vm2  ;;  %vm399_vm7 = vcmp.ge.s32.totalorder %v5347_v52, 24  ;;  %vm400_vm8 = vcmp.lt.s32.totalorder %v5347_v52, 32  ;;  %s5787_s0 = sld [smem:[#allocation48_spill]]  ;;  %s5788_s5 = sld [smem:[#allocation50_spill]] }
 0x17b   :  { %v450_v17 = vld [vmem:[%s5775_s22] sm:$0xff]  ;;  %v451_v18 = vld [vmem:[%s5775_s22 + $0x8] sm:$0xff]  ;;  %v452_v22 = vld [vmem:[%s5775_s22 + $0x10] sm:$0xff]  ;;  %v5363_v59 = vsel %vm369_vm5, 1.0, %v5036_v58  ;;  %v5368_v60 = vsel %vm5354_vm6, 1.0, %v5036_v58  ;;  %vm805_vm1 = vcmask 130048  }
 0x17c   :  { %v628_v19 = vld [vmem:[%s5776_s23] sm:$0xff]  ;;  %v4197_v20 = vpack.c.bf16 %v451_v18, %v450_v17  ;;  %v629_v21 = vld [vmem:[%s5776_s23 + $0x8] sm:$0xff]  ;;  %v453_v23 = vld [vmem:[%s5775_s22 + $0x18] sm:$0xff]  ;;  %s5789_s3 = sld [smem:[#allocation52_spill]]  ;;  %s5790_s1 = sld [smem:[#allocation51_spill]]  ;;  %vm5039_vm2 = vmmov 0  }
 0x17d   :  { %411 = vadd.xlane.f32.xlu0 %v410_v6  ;;  %v4213_v24 = vpack.c.bf16 %v629_v21, %v628_v19  ;;  %v4201_v25 = vpack.c.bf16 %v453_v23, %v452_v22  ;;  %v630_v26 = vld [vmem:[%s5776_s23 + $0x10] sm:$0xff]  ;;  %v631_v27 = vld [vmem:[%s5776_s23 + $0x18] sm:$0xff]  ;;  %v542_v29 = vld [vmem:[%s5777_s25] sm:$0xff]  ;;  %s5791_s30 = sld [smem:[#allocation53_spill]]  ;;  %s5792_s2 = sld [smem:[#allocation54_spill]] }
 0x17e   :  { %4198 = vmatprep.subr.bf16.mxu1 %v4197_v20  ;;  %v4217_v28 = vpack.c.bf16 %v631_v27, %v630_v26  ;;  %v543_v30 = vld [vmem:[%s5777_s25 + $0x8] sm:$0xff]  ;;  %v544_v46 = vld [vmem:[%s5777_s25 + $0x10] sm:$0xff]  ;;  %v545_v47 = vld [vmem:[%s5777_s25 + $0x18] sm:$0xff]  ;;  %s5793_s7 = sld [smem:[#allocation55_spill]]  ;;  %s5794_s10 = sld [smem:[#allocation58_spill]] }
 0x17f   :  { %4200 = vmatpush3.bf16.msra.mxu1 %v4197_v20  ;;  %4214 = vmatprep.subr.bf16.mxu0 %v4213_v24  ;;  %v4205_v31 = vpack.c.bf16 %v543_v30, %v542_v29  ;;  %v4209_v50 = vpack.c.bf16 %v545_v47, %v544_v46  ;;  %vm396_vm9 = vmand %vm394_vm3, %vm395_vm4  ;;  %s5795_s11 = sld [smem:[#allocation56_spill]]  ;;  %s5796_s27 = sld [smem:[#allocation57_spill]] }
 0x180   :  { %4216 = vmatpush3.bf16.msra.mxu0 %v4213_v24  ;;  %4202 = vmatprep.subr.bf16.mxu1 %v4201_v25  ;;  %vm401_vm10 = vmand %vm399_vm7, %vm400_vm8  ;;  %v5373_v2 = vsel %vm396_vm9, 1.0, %v5036_v58  ;;  %s5797_s9 = sld [smem:[#allocation37_spill]]  ;;  %vm3544_vm9 = vcmask 9216  }
 0x181   :  { %4218 = vmatprep.subr.bf16.mxu0 %v4217_v28 }
 0x183   :  { %4204 = vmatpush3.bf16.msra.mxu1 %v4201_v25 }
 0x184   :  { %4220 = vmatpush3.bf16.msra.mxu0 %v4217_v28  ;;  %4206 = vmatprep.subr.bf16.mxu1 %v4205_v31 }
 0x206   :  { %v409_v7 = vpop.xlane.xlu0 %408 }
 0x207   :  { %v414_v8 = vmul.f32 0.03125, %v409_v7 }
 0x209   :  { %v416_v9 = vsub.f32 %v5316_v3, %v414_v8 }
 0x20a   :  { %v412_v10 = vpop.xlane.xlu0 %411 }
 0x20b   :  { %v415_v11 = vmul.f32 0.03125, %v412_v10  ;;  %v418_v12 = vmul.f32 %v416_v9, %v416_v9  ;;  %v3619_v10 = vld [vmem:[#allocation16] ss:$0 sm:$0xff] }
 0x20d   :  { %v417_v13 = vsub.f32 %v5318_v4, %v415_v11  ;;  %v420_v14 = vsel %vm406_vm0, %v418_v12, 0.0 }
 0x20e   :  { %421 = vadd.xlane.f32.xlu1 %v420_v14 }
 0x20f   :  { %v419_v15 = vmul.f32 %v417_v13, %v417_v13 }
 0x211   :  { %v423_v16 = vsel %vm406_vm0, %v419_v15, 0.0 }
 0x212   :  { %424 = vadd.xlane.f32.xlu1 %v423_v16 }
 0x29b   :  { %v422_v32 = vpop.xlane.xlu1 %421 }
 0x29c   :  { %v426_v33 = vmul.f32 0.03125, %v422_v32 }
 0x29e   :  { %v428_v34 = vadd.f32 1e-05, %v426_v33 }
 0x29f   :  { %v425_v35 = vpop.xlane.xlu1 %424 }
 0x2a0   :  { %4503 = vrsqrt.f32 %v428_v34  ;;  %v427_v36 = vmul.f32 0.03125, %v425_v35 }
 0x2a2   :  { %v429_v37 = vadd.f32 1e-05, %v427_v36 }
 0x2a4   :  { %4505 = vrsqrt.f32 %v429_v37 }
 0x2aa   :  { %v4504_v38 = vpop.eup %4503 }
 0x2ab   :  { %v432_v40 = vmul.f32 %v4504_v38, %v416_v9  ;;  %v5382_v9 = vsel %vm401_vm10, 1.0, %v5036_v58  ;;  %v356_v38 = vshrl.u32 %v355_v51, 7  ;;  %vm3556_vm10 = vcmask 1024  }
 0x2ad   :  { %v440_v42 = vmul.f32 %v3614_v39, %v432_v40  ;;  %vm360_vm13 = vcmp.le.s32.totalorder %v5347_v52, %v356_v38  ;;  %v5037_v40 = vmov -1e+30  }
 0x2ae   :  { %v4506_v43 = vpop.eup %4505  ;;  %vm386_vm15 = vmand %vm369_vm5, %vm360_vm13  ;;  %vm3271_vm5 = vcmask 1040384  }
 0x2af   :  { %v433_v44 = vmul.f32 %v4506_v43, %v417_v13  ;;  %v448_v45 = vadd.f32 %v3615_v41, %v440_v42  ;;  %v5448_v42 = vsel %vm386_vm15, 0.0, %v5037_v40 }
 0x2b1   :  { %v441_v48 = vmul.f32 %v3614_v39, %v433_v44  ;;  %3890 = vmatprep.mubr.msk.f32.mxu1 %vm406_vm0, %v448_v45  ;;  %3912 = vmatprep.mubr.msk.f32.mxu0 %vm406_vm0, %v448_v45  ;;  %v357_v39 = vadd.s32 8, %v356_v38 }
 0x2b3   :  { %v449_v49 = vadd.f32 %v3615_v41, %v441_v48  ;;  %vm361_vm12 = vcmp.le.s32.totalorder %v5347_v52, %v357_v39 }
 0x2b4   :  { %vm387_vm14 = vmand %vm5354_vm6, %vm361_vm12  ;;  %vm3348_vm6 = vcmask 254976  }
 0x2b5   :  { %3891 = vmatmul.mubr.msk.f32.vlgmr.msra.gmra.mrb[0].mxu1 %vm406_vm0, %v449_v49  ;;  %3913 = vmatmul.mubr.msk.f32.vlgmr.msra.gmra.mrb[0].mxu0 %vm406_vm0, %v449_v49  ;;  %v5446_v41 = vsel %vm387_vm14, 0.0, %v5037_v40 }
 0x2b6   :  { %4208 = vmatpush3.bf16.msra.mxu1 %v4205_v31  ;;  %3901 = vmatprep.mubr.msk.f32.mxu1 %vm406_vm0, %v448_v45 }
 0x2b7   :  { %4210 = vmatprep.subr.bf16.mxu1 %v4209_v50 }
 0x2ba   :  { %4212 = vmatpush3.bf16.msra.mxu1 %v4209_v50 }
 0x2bd   :  { %3902 = vmatmul.mubr.msk.f32.vlgmr.msra.gmra.mrb[2].mxu1 %vm406_vm0, %v449_v49 }
 0x388   :  { %v3892_v56 = vpop.f32.mrb[0].mxu1  ;;  %v3914_v57 = vpop.f32.mrb[0].mxu0 }
 0x389   :  { %v711_v61 = vadd.f32 %v3914_v57, %v3622_v54  ;;  %v533_v62 = vpop.f32.mrb[1].mxu1  ;;  %v705_v63 = vpop.f32.mrb[1].mxu0  ;;  %v5404_v28 = vadd.f32 %v3892_v56, %v3616_v55 }
 0x38a   :  { %v5370_v0 = vadd.f32 %v3616_v55, %v533_v62  ;;  %v706_v1 = vadd.f32 %v3622_v54, %v705_v63 }
 0x38b   :  { %v938_v8 = vmul.f32 %v5368_v60, %v711_v61  ;;  %v829_v15 = vmul.f32 %v5363_v59, %v711_v61  ;;  %v1209_v18 = vmul.f32 %v5373_v2, %v711_v61  ;;  %v1401_v23 = vmul.f32 %v5382_v9, %v711_v61 }
 0x38c   :  { %v714_v5 = vmul.f32 %v5363_v59, %v5370_v0  ;;  %v830_v6 = vmul.f32 %v5368_v60, %v5370_v0  ;;  %v937_v7 = vmul.f32 %v5368_v60, %v706_v1  ;;  %v828_v14 = vmul.f32 %v5363_v59, %v706_v1 }
 0x38d   :  { %v1208_v16 = vmul.f32 %v5373_v2, %v706_v1  ;;  %v1400_v19 = vmul.f32 %v5382_v9, %v706_v1  ;;  %v715_v30 = vmul.f32 %v5363_v59, %v5404_v28  ;;  %v831_v31 = vmul.f32 %v5368_v60, %v5404_v28 }
 0x38e   :  { %v716_v11 = vmul.f32 0.35355338, %v714_v5  ;;  %v832_v12 = vmul.f32 0.35355338, %v830_v6  ;;  %v4233_v13 = vpack.c.bf16 %v938_v8, %v937_v7  ;;  %v5391_v22 = vpack.c.bf16 %v829_v15, %v828_v14 }
 0x38f   :  { %v5394_v25 = vpack.c.bf16 %v1209_v18, %v1208_v16  ;;  %v5402_v27 = vpack.c.bf16 %v1401_v23, %v1400_v19  ;;  %v1101_v32 = vmul.f32 %v5373_v2, %v5370_v0  ;;  %v717_v33 = vmul.f32 0.35355338, %v715_v30 }
 0x390   :  { %v3903_v17 = vpop.f32.mrb[2].mxu1  ;;  %3919 = vmatprep.mubr.msk.f32.mxu1 %vm406_vm0, %v716_v11  ;;  %3926 = vmatprep.mubr.msk.f32.mxu0 %vm406_vm0, %v832_v12  ;;  %v833_v34 = vmul.f32 0.35355338, %v831_v31  ;;  %v1102_v36 = vmul.f32 %v5373_v2, %v5404_v28 }
 0x391   :  { %v625_v20 = vadd.f32 %v3903_v17, %v3619_v10  ;;  %v619_v21 = vpop.f32.mrb[3].mxu1  ;;  %v1103_v35 = vmul.f32 0.35355338, %v1101_v32 }
 0x392   :  { %v620_v24 = vadd.f32 %v3619_v10, %v619_v21  ;;  %v1104_v37 = vmul.f32 0.35355338, %v1102_v36 }
 0x394   :  { %v5406_v29 = vpack.c.bf16 %v625_v20, %v620_v24 }
 0x396   :  { %4223 = vmatprep.subr.msk.bf16.mxu1 %vm5398_vm11, %v5406_v29  ;;  %4229 = vmatprep.subr.msk.bf16.mxu0 %vm5398_vm11, %v5406_v29 }
 0x397   :  { %4226 = vmatpush3.bf16.xpose.msk.msra.mxu1 %vm5398_vm11, %v5406_v29  ;;  %4232 = vmatpush3.bf16.xpose.msk.msra.mxu0 %vm5398_vm11, %v5406_v29 }
 0x398   :  { %4234 = vmatprep.subr.bf16.mxu1 %v4233_v13  ;;  %4243 = vmatprep.subr.msk.bf16.mxu0 %vm5398_vm11, %v5406_v29 }
 0x39e   :  { %3920 = vmatmul.mubr.msk.f32.vlgmr.msra.gmra.mrb[4].mxu1 %vm406_vm0, %v717_v33  ;;  %3927 = vmatmul.mubr.msk.f32.vlgmr.msra.gmra.mrb[2].mxu0 %vm406_vm0, %v833_v34 }
 0x39f   :  { %4236 = vmatpush3.bf16.msra.mxu1 %v4233_v13  ;;  %4246 = vmatpush3.bf16.xpose.msk.msra.mxu0 %vm5398_vm11, %v5406_v29 }
 0x3a0   :  { %3947 = vmatprep.mubr.msk.f32.mxu0 %vm406_vm0, %v1103_v35  ;;  %4238 = vmatprep.subr.bf16.mxu1 %v5391_v22 }
 0x3a6   :  { %3948 = vmatmul.mubr.msk.f32.vlgmr.msra.gmra.mrb[4].mxu0 %vm406_vm0, %v1104_v37 }
 0x471   :  { %v3921_v43 = vpop.f32.mrb[4].mxu1  ;;  %v3928_v44 = vpop.f32.mrb[2].mxu0 }
 0x472   :  { %v912_v45 = vadd.f32 %v3928_v44, %v5446_v41  ;;  %v796_v46 = vpop.f32.mrb[5].mxu1  ;;  %v906_v47 = vpop.f32.mrb[3].mxu0  ;;  %v802_v49 = vadd.f32 %v3921_v43, %v5446_v41 }
 0x473   :  { %v907_v48 = vadd.f32 %v906_v47, %v5448_v42  ;;  %v797_v51 = vadd.f32 %v796_v46, %v5448_v42 }
 0x474   :  { %v918_v50 = vsel %vm805_vm1, %v912_v45, -inf  ;;  %v809_v54 = vsel %vm805_vm1, %v802_v49, -inf }
 0x475   :  { %919 = vmax.xlane.f32.xlu1 %v918_v50  ;;  %v915_v53 = vsel %vm805_vm1, %v907_v48, -inf  ;;  %v806_v56 = vsel %vm805_vm1, %v797_v51, -inf }
 0x476   :  { %916 = vmax.xlane.f32.xlu0 %v915_v53 }
 0x479   :  { %v3949_v55 = vpop.f32.mrb[4].mxu0  ;;  %810 = vmax.xlane.f32.xlu1 %v809_v54 }
 0x47a   :  { %v1183_v57 = vadd.f32 %v3949_v55, %v5446_v41  ;;  %v1177_v61 = vpop.f32.mrb[5].mxu0  ;;  %807 = vmax.xlane.f32.xlu0 %v806_v56 }
 0x47b   :  { %v1178_v62 = vadd.f32 %v1177_v61, %v5448_v42 }
 0x47c   :  { %v1189_v63 = vsel %vm805_vm1, %v1183_v57, -inf }
 0x47d   :  { %1190 = vmax.xlane.f32.xlu1 %v1189_v63  ;;  %v1186_v1 = vsel %vm805_vm1, %v1178_v62, -inf }
 0x47e   :  { %1187 = vmax.xlane.f32.xlu0 %v1186_v1  ;;  %v1293_v1 = vmul.f32 %v5382_v9, %v5370_v0 }
 0x502   :  { %v920_v5 = vpop.xlane.xlu1 %919 }
 0x503   :  { %v922_v6 = vsub.f32 %v912_v45, %v920_v5  ;;  %v917_v7 = vpop.xlane.xlu0 %916 }
 0x504   :  { %v921_v8 = vsub.f32 %v907_v48, %v917_v7 }
 0x505   :  { %v925_v10 = vmul.f32 1.442695, %v922_v6  ;;  %v1295_v6 = vmul.f32 0.35355338, %v1293_v1  ;;  %v1626_v1 = vld [vmem:[%s5783_s26 + $0x8] sm:$0xff] }
 0x506   :  { %v923_v11 = vmul.f32 1.442695, %v921_v8  ;;  %v811_v12 = vpop.xlane.xlu1 %810 }
 0x507   :  { %4507 = vpow2.f32 %v925_v10  ;;  %v813_v13 = vsub.f32 %v802_v49, %v811_v12  ;;  %v808_v14 = vpop.xlane.xlu0 %807 }
 0x508   :  { %4509 = vpow2.f32 %v923_v11  ;;  %v812_v15 = vsub.f32 %v797_v51, %v808_v14 }
 0x509   :  { %v816_v16 = vmul.f32 1.442695, %v813_v13 }
 0x50a   :  { %v814_v17 = vmul.f32 1.442695, %v812_v15  ;;  %v1191_v18 = vpop.xlane.xlu1 %1190 }
 0x50b   :  { %4511 = vpow2.f32 %v816_v16  ;;  %v1193_v19 = vsub.f32 %v1183_v57, %v1191_v18  ;;  %v1188_v20 = vpop.xlane.xlu0 %1187 }
 0x50c   :  { %4513 = vpow2.f32 %v814_v17  ;;  %v1192_v21 = vsub.f32 %v1178_v62, %v1188_v20 }
 0x50d   :  { %v1196_v23 = vmul.f32 1.442695, %v1193_v19 }
 0x50e   :  { %v1194_v24 = vmul.f32 1.442695, %v1192_v21  ;;  %v1485_v21 = vld [vmem:[%s5782_s21] sm:$0xff] }
 0x50f   :  { %4515 = vpow2.f32 %v1196_v23  ;;  %v1486_v23 = vld [vmem:[%s5782_s21 + $0x8] sm:$0xff] }
 0x510   :  { %4517 = vpow2.f32 %v1194_v24  ;;  %v1487_v24 = vld [vmem:[%s5782_s21 + $0x10] sm:$0xff] }
 0x511   :  { %v4508_v30 = vpop.eup %4507 }
 0x512   :  { %v4510_v31 = vpop.eup %4509  ;;  %v930_v32 = vsel %vm805_vm1, %v4508_v30, 0.0 }
 0x513   :  { %931 = vadd.xlane.f32.xlu1 %v930_v32  ;;  %v927_v33 = vsel %vm805_vm1, %v4510_v31, 0.0 }
 0x514   :  { %928 = vadd.xlane.f32.xlu0 %v927_v33 }
 0x515   :  { %v4512_v34 = vpop.eup %4511 }
 0x516   :  { %v4514_v35 = vpop.eup %4513  ;;  %v821_v36 = vsel %vm805_vm1, %v4512_v34, 0.0 }
 0x517   :  { %822 = vadd.xlane.f32.xlu1 %v821_v36  ;;  %v818_v37 = vsel %vm805_vm1, %v4514_v35, 0.0 }
 0x518   :  { %819 = vadd.xlane.f32.xlu0 %v818_v37 }
 0x519   :  { %v4516_v38 = vpop.eup %4515 }
 0x51a   :  { %v4518_v39 = vpop.eup %4517  ;;  %v1201_v40 = vsel %vm805_vm1, %v4516_v38, 0.0 }
 0x51b   :  { %1202 = vadd.xlane.f32.xlu1 %v1201_v40  ;;  %v1198_v43 = vsel %vm805_vm1, %v4518_v39, 0.0 }
 0x51c   :  { %1199 = vadd.xlane.f32.xlu0 %v1198_v43 }
 0x5a0   :  { %v932_v44 = vpop.xlane.xlu1 %931 }
 0x5a1   :  { %4519 = vrcp.f32 %v932_v44  ;;  %v929_v45 = vpop.xlane.xlu0 %928  ;;  %v3651_v44 = vld [vmem:[#allocation19] ss:$0 sm:$0xff] }
 0x5a2   :  { %4521 = vrcp.f32 %v929_v45 }
 0x5a4   :  { %v823_v47 = vpop.xlane.xlu1 %822 }
 0x5a5   :  { %v820_v46 = vpop.xlane.xlu0 %819 }
 0x5a6   :  { %4523 = vrcp.f32 %v820_v46 }
 0x5a7   :  { %4525 = vrcp.f32 %v823_v47 }
 0x5a8   :  { %v1203_v54 = vpop.xlane.xlu1 %1202 }
 0x5a9   :  { %v1200_v48 = vpop.xlane.xlu0 %1199 }
 0x5aa   :  { %4527 = vrcp.f32 %v1200_v48 }
 0x5ab   :  { %v4520_v49 = vpop.eup %4519  ;;  %4529 = vrcp.f32 %v1203_v54 }
 0x5ac   :  { %v4522_v50 = vpop.eup %4521  ;;  %v936_v53 = vmul.f32 %v4520_v49, %v4508_v30  ;;  %v4261_v30 = vpack.c.bf16 %v1486_v23, %v1485_v21  ;;  %v1733_v21 = vld [vmem:[%s5785_s8] sm:$0xff]  ;;  %v1734_v23 = vld [vmem:[%s5785_s8 + $0x8] sm:$0xff] }
 0x5ad   :  { %v934_v51 = vmul.f32 %v4522_v50, %v4510_v31  ;;  %v1488_v31 = vld [vmem:[%s5782_s21 + $0x18] sm:$0xff] }
 0x5ae   :  { %v4265_v32 = vpack.c.bf16 %v1488_v31, %v1487_v24  ;;  %4262 = vmatprep.subr.bf16.mxu0 %v4261_v30  ;;  %v4277_v24 = vpack.c.bf16 %v1734_v23, %v1733_v21  ;;  %v1736_v31 = vld [vmem:[%s5785_s8 + $0x18] sm:$0xff] }
 0x5af   :  { %3933 = vmatprep.mubr.msk.f32.mxu1 %vm805_vm1, %v934_v51  ;;  %4264 = vmatpush3.bf16.msra.mxu0 %v4261_v30  ;;  %v1735_v30 = vld [vmem:[%s5785_s8 + $0x10] sm:$0xff] }
 0x5b0   :  { %v4524_v55 = vpop.eup %4523  ;;  %3934 = vmatmul.mubr.msk.f32.vlgmr.msra.gmra.mrb[6].mxu1 %vm805_vm1, %v936_v53  ;;  %4266 = vmatprep.subr.bf16.mxu0 %v4265_v32 }
 0x5b1   :  { %4240 = vmatpush3.bf16.msra.mxu1 %v5391_v22  ;;  %v825_v56 = vmul.f32 %v4524_v55, %v4514_v35  ;;  %v4526_v57 = vpop.eup %4525 }
 0x5b2   :  { %4248 = vmatprep.subr.bf16.mxu1 %v5394_v25  ;;  %v827_v62 = vmul.f32 %v4526_v57, %v4512_v34 }
 0x5b3   :  { %3940 = vmatprep.mubr.msk.f32.mxu1 %vm805_vm1, %v825_v56  ;;  %4268 = vmatpush3.bf16.msra.mxu0 %v4265_v32  ;;  %v4281_v32 = vpack.c.bf16 %v1736_v31, %v1735_v30 }
 0x5b4   :  { %v4528_v61 = vpop.eup %4527 }
 0x5b5   :  { %v1205_v63 = vmul.f32 %v4528_v61, %v4518_v39  ;;  %v4530_v22 = vpop.eup %4529 }
 0x5b6   :  { %v1207_v5 = vmul.f32 %v4530_v22, %v4516_v38  ;;  %v1625_v22 = vld [vmem:[%s5783_s26] sm:$0xff] }
 0x5b8   :  { %3941 = vmatmul.mubr.msk.f32.vlgmr.msra.gmra.mrb[6].mxu1 %vm805_vm1, %v827_v62 }
 0x5b9   :  { %4250 = vmatpush3.bf16.msra.mxu1 %v5394_v25  ;;  %3954 = vmatprep.mubr.msk.f32.mxu1 %vm805_vm1, %v1205_v63  ;;  %v1294_v25 = vmul.f32 %v5382_v9, %v5404_v28 }
 0x5ba   :  { %4253 = vmatprep.subr.msk.bf16.mxu1 %vm5398_vm11, %v5406_v29 }
 0x5bb   :  { %v1296_v7 = vmul.f32 0.35355338, %v1294_v25  ;;  %v1628_v25 = vld [vmem:[%s5783_s26 + $0x18] sm:$0xff] }
 0x5c0   :  { %3955 = vmatmul.mubr.msk.f32.vlgmr.msra.gmra.mrb[6].mxu1 %vm805_vm1, %v1207_v5  ;;  %v1627_v5 = vld [vmem:[%s5783_s26 + $0x10] sm:$0xff] }
 0x5c1   :  { %3961 = vmatprep.mubr.msk.f32.mxu1 %vm406_vm0, %v1295_v6  ;;  %v4269_v6 = vpack.c.bf16 %v1626_v1, %v1625_v22 }
 0x5c2   :  { %4256 = vmatpush3.bf16.xpose.msk.msra.mxu1 %vm5398_vm11, %v5406_v29 }
 0x5c3   :  { %4258 = vmatprep.subr.bf16.mxu1 %v5402_v27  ;;  %4270 = vmatprep.subr.bf16.mxu0 %v4269_v6 }
 0x5c9   :  { %3962 = vmatmul.mubr.msk.f32.vlgmr.msra.gmra.mrb[8].mxu1 %vm406_vm0, %v1296_v7  ;;  %v4273_v7 = vpack.c.bf16 %v1628_v25, %v1627_v5 }
 0x5ca   :  { %4260 = vmatpush3.bf16.msra.mxu1 %v5402_v27 }
 0x5cb   :  { %4278 = vmatprep.subr.bf16.mxu1 %v4277_v24 }
 0x69c   :  { %v3963_v0 = vpop.f32.mrb[8].mxu1 }
 0x69d   :  { %v1375_v8 = vadd.f32 %v3963_v0, %v5446_v41  ;;  %v1369_v10 = vpop.f32.mrb[9].mxu1 }
 0x69e   :  { %v1370_v11 = vadd.f32 %v1369_v10, %v5448_v42 }
 0x69f   :  { %v1381_v12 = vsel %vm805_vm1, %v1375_v8, -inf }
 0x6a0   :  { %1382 = vmax.xlane.f32.xlu1 %v1381_v12  ;;  %v1378_v29 = vsel %vm805_vm1, %v1370_v11, -inf }
 0x6a1   :  { %1379 = vmax.xlane.f32.xlu0 %v1378_v29 }
 0x72d   :  { %v1383_v28 = vpop.xlane.xlu1 %1382 }
 0x72e   :  { %v1385_v13 = vsub.f32 %v1375_v8, %v1383_v28  ;;  %v1380_v14 = vpop.xlane.xlu0 %1379 }
 0x72f   :  { %v1384_v27 = vsub.f32 %v1370_v11, %v1380_v14 }
 0x730   :  { %v1388_v15 = vmul.f32 1.442695, %v1385_v13  ;;  %v3652_v13 = vld [vmem:[#allocation20] ss:$0 sm:$0xff] }
 0x731   :  { %v1386_v16 = vmul.f32 1.442695, %v1384_v27 }
 0x732   :  { %4531 = vpow2.f32 %v1388_v15 }
 0x733   :  { %4533 = vpow2.f32 %v1386_v16  ;;  %v3653_v16 = vld [vmem:[%s5784_s4] ss:$0 sm:$0xff] }
 0x73c   :  { %v4532_v17 = vpop.eup %4531 }
 0x73d   :  { %v4534_v18 = vpop.eup %4533  ;;  %v1393_v19 = vsel %vm805_vm1, %v4532_v17, 0.0 }
 0x73e   :  { %1394 = vadd.xlane.f32.xlu1 %v1393_v19  ;;  %v1390_v20 = vsel %vm805_vm1, %v4534_v18, 0.0 }
 0x73f   :  { %1391 = vadd.xlane.f32.xlu0 %v1390_v20 }
 0x7cb   :  { %v1395_v33 = vpop.xlane.xlu1 %1394 }
 0x7cc   :  { %4535 = vrcp.f32 %v1395_v33  ;;  %v1392_v34 = vpop.xlane.xlu0 %1391  ;;  %v1737_v33 = vld [vmem:[%s5785_s8 + $0x20] sm:$0xff] }
 0x7cd   :  { %4537 = vrcp.f32 %v1392_v34  ;;  %v1738_v34 = vld [vmem:[%s5785_s8 + $0x28] sm:$0xff] }
 0x7d6   :  { %v4536_v35 = vpop.eup %4535 }
 0x7d7   :  { %v4538_v36 = vpop.eup %4537  ;;  %v1399_v38 = vmul.f32 %v4536_v35, %v4532_v17  ;;  %v4285_v35 = vpack.c.bf16 %v1738_v34, %v1737_v33  ;;  %v1880_v33 = vld [vmem:[%s5787_s0 + $0x8] sm:$0xff]  ;;  %v1881_v34 = vld [vmem:[%s5787_s0 + $0x10] sm:$0xff] }
 0x7d8   :  { %v1397_v37 = vmul.f32 %v4538_v36, %v4534_v18  ;;  %v1739_v36 = vld [vmem:[%s5785_s8 + $0x30] sm:$0xff] }
 0x7da   :  { %3968 = vmatprep.mubr.msk.f32.mxu1 %vm805_vm1, %v1397_v37  ;;  %v1740_v37 = vld [vmem:[%s5785_s8 + $0x38] sm:$0xff] }
 0x7db   :  { %3969 = vmatmul.mubr.msk.f32.vlgmr.msra.gmra.mrb[6].mxu1 %vm805_vm1, %v1399_v38  ;;  %v4289_v38 = vpack.c.bf16 %v1740_v37, %v1739_v36  ;;  %v1882_v36 = vld [vmem:[%s5787_s0 + $0x18] sm:$0xff] }
 0x7dc   :  { %4280 = vmatpush3.bf16.msra.mxu1 %v4277_v24  ;;  %v4313_v37 = vpack.c.bf16 %v1882_v36, %v1881_v34 }
 0x7dd   :  { %4282 = vmatprep.subr.bf16.mxu1 %v4281_v32 }
 0x7e0   :  { %4284 = vmatpush3.bf16.msra.mxu1 %v4281_v32  ;;  %v1879_v32 = vld [vmem:[%s5787_s0] sm:$0xff] }
 0x7e1   :  { %4286 = vmatprep.subr.bf16.mxu1 %v4285_v35 }
 0x7e4   :  { %4288 = vmatpush3.bf16.msra.mxu1 %v4285_v35  ;;  %v4309_v35 = vpack.c.bf16 %v1880_v33, %v1879_v32 }
 0x7e5   :  { %4290 = vmatprep.subr.bf16.mxu1 %v4289_v38 }
 0x7e8   :  { %4292 = vmatpush3.bf16.msra.mxu1 %v4289_v38  ;;  %v1971_v38 = vld [vmem:[%s5788_s5] sm:$0xff] }
 0x8ae   :  { %v3970_v39 = vpop.f32.mrb[6].mxu1 }
 0x8af   :  { %v1474_v40 = vpop.f32.mrb[7].mxu1 }
 0x8b0   :  { %3979 = vmatprep.mubr.msk.f32.mxu0 %vm406_vm0, %v1474_v40  ;;  %v1742_v40 = vld [vmem:[%s5785_s8 + $0x48] sm:$0xff] }
 0x8b1   :  { %3980 = vmatmul.mubr.msk.f32.vlgmr.msra.gmra.mrb[6].mxu0 %vm406_vm0, %v3970_v39  ;;  %v1741_v39 = vld [vmem:[%s5785_s8 + $0x40] sm:$0xff] }
 0x8b2   :  { %4272 = vmatpush3.bf16.msra.mxu0 %v4269_v6 }
 0x8b3   :  { %4274 = vmatprep.subr.bf16.mxu0 %v4273_v7 }
 0x8b6   :  { %4276 = vmatpush3.bf16.msra.mxu0 %v4273_v7 }
 0x8b7   :  { %4310 = vmatprep.subr.bf16.mxu0 %v4309_v35 }
 0x984   :  { %v3981_v43 = vpop.f32.mrb[6].mxu0 }
 0x985   :  { %v1571_v45 = vadd.f32 %v3981_v43, %v5318_v4  ;;  %v1561_v46 = vpop.f32.mrb[7].mxu0  ;;  %v4293_v43 = vpack.c.bf16 %v1742_v40, %v1741_v39  ;;  %v1972_v39 = vld [vmem:[%s5788_s5 + $0x8] sm:$0xff] }
 0x986   :  { %v1570_v47 = vadd.f32 %v1561_v46, %v5316_v3  ;;  %v4317_v40 = vpack.c.bf16 %v1972_v39, %v1971_v38 }
 0x987   :  { %v5507_v48 = vadd.f32 %v3651_v44, %v1571_v45  ;;  %4294 = vmatprep.subr.bf16.mxu1 %v4293_v43  ;;  %v1744_v45 = vld [vmem:[%s5785_s8 + $0x58] sm:$0xff] }
 0x988   :  { %v5509_v49 = vadd.f32 %v3651_v44, %v1570_v47  ;;  %4296 = vmatpush3.bf16.msra.mxu1 %v4293_v43  ;;  %v1743_v44 = vld [vmem:[%s5785_s8 + $0x50] sm:$0xff]  ;;  %v1745_v47 = vld [vmem:[%s5785_s8 + $0x60] sm:$0xff] }
 0x989   :  { %v1586_v50 = vsel %vm406_vm0, %v5507_v48, 0.0  ;;  %v4297_v46 = vpack.c.bf16 %v1744_v45, %v1743_v44 }
 0x98a   :  { %1587 = vadd.xlane.f32.xlu1 %v1586_v50  ;;  %v1583_v51 = vsel %vm406_vm0, %v5509_v49, 0.0  ;;  %v1746_v50 = vld [vmem:[%s5785_s8 + $0x68] sm:$0xff] }
 0x98b   :  { %1584 = vadd.xlane.f32.xlu0 %v1583_v51  ;;  %4298 = vmatprep.subr.bf16.mxu1 %v4297_v46  ;;  %v4301_v51 = vpack.c.bf16 %v1746_v50, %v1745_v47 }
 0x98c   :  { %4300 = vmatpush3.bf16.msra.mxu1 %v4297_v46 }
 0x98d   :  { %4302 = vmatprep.subr.bf16.mxu1 %v4301_v51 }
 0x990   :  { %4304 = vmatpush3.bf16.msra.mxu1 %v4301_v51 }
 0xa17   :  { %v1588_v53 = vpop.xlane.xlu1 %1587 }
 0xa18   :  { %v1590_v4 = vmul.f32 0.03125, %v1588_v53  ;;  %v1585_v54 = vpop.xlane.xlu0 %1584  ;;  %v1747_v53 = vld [vmem:[%s5785_s8 + $0x70] sm:$0xff] }
 0xa19   :  { %v1589_v3 = vmul.f32 0.03125, %v1585_v54 }
 0xa1a   :  { %v1592_v55 = vsub.f32 %v5507_v48, %v1590_v4  ;;  %v1748_v4 = vld [vmem:[%s5785_s8 + $0x78] sm:$0xff] }
 0xa1b   :  { %v1591_v56 = vsub.f32 %v5509_v49, %v1589_v3  ;;  %v4305_v54 = vpack.c.bf16 %v1748_v4, %v1747_v53  ;;  %v3654_v3 = vld [vmem:[%s5786_s28] ss:$0 sm:$0xff]  ;;  %v3660_v53 = vld [vmem:[#allocation23] ss:$0 sm:$0xff] }
 0xa1c   :  { %v1594_v57 = vmul.f32 %v1592_v55, %v1592_v55 }
 0xa1d   :  { %v1593_v61 = vmul.f32 %v1591_v56, %v1591_v56  ;;  %4306 = vmatprep.subr.bf16.mxu1 %v4305_v54 }
 0xa1e   :  { %v1598_v62 = vsel %vm406_vm0, %v1594_v57, 0.0  ;;  %4308 = vmatpush3.bf16.msra.mxu1 %v4305_v54 }
 0xa1f   :  { %1599 = vadd.xlane.f32.xlu1 %v1598_v62  ;;  %v1595_v63 = vsel %vm406_vm0, %v1593_v61, 0.0 }
 0xa20   :  { %1596 = vadd.xlane.f32.xlu0 %v1595_v63 }
 0xaac   :  { %v1600_v0 = vpop.xlane.xlu1 %1599 }
 0xaad   :  { %v1602_v8 = vmul.f32 0.03125, %v1600_v0  ;;  %v1597_v10 = vpop.xlane.xlu0 %1596 }
 0xaae   :  { %v1601_v11 = vmul.f32 0.03125, %v1597_v10 }
 0xaaf   :  { %v1604_v12 = vadd.f32 1e-05, %v1602_v8 }
 0xab0   :  { %v1603_v29 = vadd.f32 1e-05, %v1601_v11 }
 0xab1   :  { %4539 = vrsqrt.f32 %v1604_v12 }
 0xab2   :  { %4541 = vrsqrt.f32 %v1603_v29  ;;  %v3659_v29 = vld [vmem:[#allocation22] ss:$0 sm:$0xff] }
 0xabb   :  { %v4540_v28 = vpop.eup %4539 }
 0xabc   :  { %v4542_v14 = vpop.eup %4541  ;;  %v1608_v27 = vmul.f32 %v4540_v28, %v1592_v55 }
 0xabd   :  { %v1607_v15 = vmul.f32 %v4542_v14, %v1591_v56 }
 0xabe   :  { %v1616_v17 = vmul.f32 %v3652_v13, %v1608_v27 }
 0xabf   :  { %v1615_v18 = vmul.f32 %v3652_v13, %v1607_v15 }
 0xac0   :  { %v1624_v20 = vadd.f32 %v3653_v16, %v1616_v17 }
 0xac1   :  { %v1623_v19 = vadd.f32 %v3653_v16, %v1615_v18 }
 0xac3   :  { %3990 = vmatprep.mubr.msk.f32.mxu0 %vm406_vm0, %v1623_v19 }
 0xac4   :  { %3991 = vmatmul.mubr.msk.f32.vlgmr.msra.gmra.mrb[8].mxu0 %vm406_vm0, %v1624_v20 }
 0xac5   :  { %4312 = vmatpush3.bf16.msra.mxu0 %v4309_v35 }
 0xac6   :  { %4314 = vmatprep.subr.bf16.mxu0 %v4313_v37 }
 0xac9   :  { %4316 = vmatpush3.bf16.msra.mxu0 %v4313_v37 }
 0xaca   :  { %4318 = vmatprep.subr.bf16.mxu0 %v4317_v40 }
 0xb97   :  { %v3992_v55 = vpop.f32.mrb[8].mxu0 }
 0xb98   :  { %v1714_v56 = vadd.f32 %v3992_v55, %v3654_v3  ;;  %v1708_v57 = vpop.f32.mrb[9].mxu0  ;;  %v3661_v55 = vld [vmem:[#allocation25] ss:$0 sm:$0xff] }
 0xb99   :  { %v1709_v61 = vadd.f32 %v3654_v3, %v1708_v57 }
 0xb9a   :  { %v3658_v62 = vmul.f32 -1.702, %v1714_v56 }
 0xb9b   :  { %v3657_v63 = vmul.f32 -1.702, %v1709_v61 }
 0xb9c   :  { %v1723_v22 = vmul.f32 1.442695, %v3658_v62  ;;  %v1974_v62 = vld [vmem:[%s5788_s5 + $0x18] sm:$0xff] }
 0xb9d   :  { %v1721_v1 = vmul.f32 1.442695, %v3657_v63 }
 0xb9e   :  { %4543 = vpow2.f32 %v1723_v22 }
 0xb9f   :  { %4545 = vpow2.f32 %v1721_v1 }
 0xba8   :  { %v4544_v5 = vpop.eup %4543 }
 0xba9   :  { %v4546_v6 = vpop.eup %4545  ;;  %v1726_v25 = vadd.f32 1.0, %v4544_v5  ;;  %v2057_v5 = vld [vmem:[%s5789_s3] sm:$0xff] }
 0xbaa   :  { %v1725_v7 = vadd.f32 1.0, %v4546_v6  ;;  %v2058_v6 = vld [vmem:[%s5789_s3 + $0x8] sm:$0xff] }
 0xbab   :  { %4547 = vrcp.f32 %v1726_v25  ;;  %v4325_v25 = vpack.c.bf16 %v2058_v6, %v2057_v5 }
 0xbac   :  { %4549 = vrcp.f32 %v1725_v7  ;;  %v2059_v7 = vld [vmem:[%s5789_s3 + $0x10] sm:$0xff] }
 0xbb5   :  { %v4548_v0 = vpop.eup %4547 }
 0xbb6   :  { %v4550_v8 = vpop.eup %4549  ;;  %v1732_v11 = vmul.f32 %v4548_v0, %v1714_v56  ;;  %v2060_v0 = vld [vmem:[%s5789_s3 + $0x18] sm:$0xff] }
 0xbb7   :  { %v1731_v10 = vmul.f32 %v4550_v8, %v1709_v61  ;;  %v1973_v61 = vld [vmem:[%s5788_s5 + $0x10] sm:$0xff]  ;;  %v4329_v8 = vpack.c.bf16 %v2060_v0, %v2059_v7 }
 0xbb8   :  { %v4321_v1 = vpack.c.bf16 %v1974_v62, %v1973_v61 }
 0xbb9   :  { %4025 = vmatprep.mubr.f32.mxu1 %v1731_v10  ;;  %v3662_v10 = vld [vmem:[#allocation26] ss:$0 sm:$0xff] }
 0xbba   :  { %4026 = vmatmul.mubr.f32.vlgmr.msra.gmra.mrb[10].mxu1 %v1732_v11 }
 0xc8d   :  { %v4027_v12 = vpop.f32.mrb[10].mxu1 }
 0xc8e   :  { %v1825_v28 = vadd.f32 %v4027_v12, %v5507_v48  ;;  %v1815_v13 = vpop.f32.mrb[11].mxu1 }
 0xc8f   :  { %v1824_v14 = vadd.f32 %v1815_v13, %v5509_v49 }
 0xc90   :  { %v5545_v27 = vadd.f32 %v3659_v29, %v1825_v28 }
 0xc91   :  { %v5547_v15 = vadd.f32 %v3659_v29, %v1824_v14  ;;  %v3665_v14 = vld [vmem:[%s5790_s1] ss:$0 sm:$0xff] }
 0xc92   :  { %v1840_v16 = vsel %vm406_vm0, %v5545_v27, 0.0 }
 0xc93   :  { %1841 = vadd.xlane.f32.xlu1 %v1840_v16  ;;  %v1837_v17 = vsel %vm406_vm0, %v5547_v15, 0.0 }
 0xc94   :  { %1838 = vadd.xlane.f32.xlu0 %v1837_v17 }
 0xd20   :  { %v1842_v18 = vpop.xlane.xlu1 %1841 }
 0xd21   :  { %v1844_v48 = vmul.f32 0.03125, %v1842_v18  ;;  %v1839_v19 = vpop.xlane.xlu0 %1838 }
 0xd22   :  { %v1843_v49 = vmul.f32 0.03125, %v1839_v19 }
 0xd23   :  { %v1846_v20 = vsub.f32 %v5545_v27, %v1844_v48 }
 0xd24   :  { %v1845_v21 = vsub.f32 %v5547_v15, %v1843_v49 }
 0xd25   :  { %v1848_v23 = vmul.f32 %v1846_v20, %v1846_v20 }
 0xd26   :  { %v1847_v24 = vmul.f32 %v1845_v21, %v1845_v21 }
 0xd27   :  { %v1852_v30 = vsel %vm406_vm0, %v1848_v23, 0.0 }
 0xd28   :  { %1853 = vadd.xlane.f32.xlu1 %v1852_v30  ;;  %v1849_v31 = vsel %vm406_vm0, %v1847_v24, 0.0  ;;  %v3668_v30 = vld [vmem:[%s5791_s30] ss:$0 sm:$0xff] }
 0xd29   :  { %1850 = vadd.xlane.f32.xlu0 %v1849_v31 }
 0xdb5   :  { %v1854_v43 = vpop.xlane.xlu1 %1853 }
 0xdb6   :  { %v1856_v44 = vmul.f32 0.03125, %v1854_v43  ;;  %v1851_v45 = vpop.xlane.xlu0 %1850 }
 0xdb7   :  { %v1855_v46 = vmul.f32 0.03125, %v1851_v45 }
 0xdb8   :  { %v1858_v47 = vadd.f32 1e-05, %v1856_v44 }
 0xdb9   :  { %v1857_v50 = vadd.f32 1e-05, %v1855_v46 }
 0xdba   :  { %4551 = vrsqrt.f32 %v1858_v47 }
 0xdbb   :  { %4553 = vrsqrt.f32 %v1857_v50 }
 0xdc4   :  { %v4552_v51 = vpop.eup %4551 }
 0xdc5   :  { %v4554_v4 = vpop.eup %4553  ;;  %v1862_v54 = vmul.f32 %v4552_v51, %v1846_v20 }
 0xdc6   :  { %v1861_v3 = vmul.f32 %v4554_v4, %v1845_v21 }
 0xdc7   :  { %v1870_v56 = vmul.f32 %v3660_v53, %v1862_v54 }
 0xdc8   :  { %v1869_v57 = vmul.f32 %v3660_v53, %v1861_v3 }
 0xdc9   :  { %v1878_v22 = vadd.f32 %v3661_v55, %v1870_v56 }
 0xdca   :  { %v1877_v63 = vadd.f32 %v3661_v55, %v1869_v57 }
 0xdcc   :  { %4036 = vmatprep.mubr.msk.f32.mxu0 %vm406_vm0, %v1877_v63 }
 0xdcd   :  { %4037 = vmatmul.mubr.msk.f32.vlgmr.msra.gmra.mrb[10].mxu0 %vm406_vm0, %v1878_v22 }
 0xdce   :  { %4320 = vmatpush3.bf16.msra.mxu0 %v4317_v40  ;;  %4047 = vmatprep.mubr.msk.f32.mxu0 %vm406_vm0, %v1877_v63 }
 0xdcf   :  { %4322 = vmatprep.subr.bf16.mxu0 %v4321_v1 }
 0xdd2   :  { %4324 = vmatpush3.bf16.msra.mxu0 %v4321_v1 }
 0xdd3   :  { %4326 = vmatprep.subr.bf16.mxu0 %v4325_v25 }
 0xdd5   :  { %4048 = vmatmul.mubr.msk.f32.vlgmr.msra.gmra.mrb[12].mxu0 %vm406_vm0, %v1878_v22 }
 0xdd6   :  { %4328 = vmatpush3.bf16.msra.mxu0 %v4325_v25  ;;  %4058 = vmatprep.mubr.msk.f32.mxu0 %vm406_vm0, %v1877_v63 }
 0xdd7   :  { %4330 = vmatprep.subr.bf16.mxu0 %v4329_v8 }
 0xdda   :  { %4332 = vmatpush3.bf16.msra.mxu0 %v4329_v8 }
 0xddd   :  { %4059 = vmatmul.mubr.msk.f32.vlgmr.msra.gmra.mrb[14].mxu0 %vm406_vm0, %v1878_v22 }
 0xea0   :  { %v4038_v11 = vpop.f32.mrb[10].mxu0 }
 0xea1   :  { %v1962_v12 = vpop.f32.mrb[11].mxu0  ;;  %v1968_v49 = vadd.f32 %v4038_v11, %v3662_v10 }
 0xea2   :  { %v1963_v29 = vadd.f32 %v3662_v10, %v1962_v12 }
 0xea3   :  { %v2144_v23 = vmul.f32 %v5363_v59, %v1968_v49  ;;  %v2259_v24 = vmul.f32 %v5368_v60, %v1968_v49 }
 0xea4   :  { %v2143_v28 = vmul.f32 %v5363_v59, %v1963_v29  ;;  %v2258_v13 = vmul.f32 %v5368_v60, %v1963_v29  ;;  %v2529_v34 = vmul.f32 %v5373_v2, %v1963_v29  ;;  %v2721_v54 = vmul.f32 %v5382_v9, %v1963_v29 }
 0xea5   :  { %v2146_v35 = vmul.f32 0.35355338, %v2144_v23  ;;  %v2261_v36 = vmul.f32 0.35355338, %v2259_v24 }
 0xea6   :  { %v2145_v16 = vmul.f32 0.35355338, %v2143_v28  ;;  %v2260_v17 = vmul.f32 0.35355338, %v2258_v13  ;;  %v2531_v50 = vmul.f32 0.35355338, %v2529_v34 }
 0xea7   :  { %v2723_v55 = vmul.f32 0.35355338, %v2721_v54 }
 0xea8   :  { %v4049_v18 = vpop.f32.mrb[12].mxu0  ;;  %4065 = vmatprep.mubr.msk.f32.mxu0 %vm406_vm0, %v2145_v16  ;;  %4072 = vmatprep.mubr.msk.f32.mxu1 %vm406_vm0, %v2260_v17 }
 0xea9   :  { %v2054_v48 = vadd.f32 %v4049_v18, %v3665_v14  ;;  %v2048_v19 = vpop.f32.mrb[13].mxu0 }
 0xeaa   :  { %v2049_v20 = vadd.f32 %v3665_v14, %v2048_v19 }
 0xeac   :  { %v4333_v21 = vpack.c.bf16 %v2054_v48, %v2049_v20 }
 0xeae   :  { %4335 = vmatprep.subr.msk.bf16.mxu0 %vm5398_vm11, %v4333_v21  ;;  %4341 = vmatprep.subr.msk.bf16.mxu1 %vm5398_vm11, %v4333_v21 }
 0xeaf   :  { %4338 = vmatpush3.bf16.xpose.msk.msra.mxu0 %vm5398_vm11, %v4333_v21  ;;  %4344 = vmatpush3.bf16.xpose.msk.msra.mxu1 %vm5398_vm11, %v4333_v21 }
 0xeb0   :  { %v4060_v31 = vpop.f32.mrb[14].mxu0  ;;  %4355 = vmatprep.subr.msk.bf16.mxu1 %vm5398_vm11, %v4333_v21 }
 0xeb1   :  { %v2140_v32 = vadd.f32 %v4060_v31, %v3668_v30  ;;  %v2134_v33 = vpop.f32.mrb[15].mxu0 }
 0xeb2   :  { %v2135_v37 = vadd.f32 %v3668_v30, %v2134_v33 }
 0xeb3   :  { %v2366_v38 = vmul.f32 %v5368_v60, %v2140_v32  ;;  %v2257_v39 = vmul.f32 %v5363_v59, %v2140_v32  ;;  %v2637_v40 = vmul.f32 %v5373_v2, %v2140_v32  ;;  %v2829_v43 = vmul.f32 %v5382_v9, %v2140_v32 }
 0xeb4   :  { %v2365_v44 = vmul.f32 %v5368_v60, %v2135_v37  ;;  %v2256_v45 = vmul.f32 %v5363_v59, %v2135_v37  ;;  %v2636_v46 = vmul.f32 %v5373_v2, %v2135_v37  ;;  %v2828_v47 = vmul.f32 %v5382_v9, %v2135_v37 }
 0xeb5   :  { %v2530_v60 = vmul.f32 %v5373_v2, %v1968_v49  ;;  %v2722_v2 = vmul.f32 %v5382_v9, %v1968_v49 }
 0xeb6   :  { %4066 = vmatmul.mubr.msk.f32.vlgmr.msra.gmra.mrb[16].mxu0 %vm406_vm0, %v2146_v35  ;;  %4073 = vmatmul.mubr.msk.f32.vlgmr.msra.gmra.mrb[12].mxu1 %vm406_vm0, %v2261_v36  ;;  %v4345_v51 = vpack.c.bf16 %v2366_v38, %v2365_v44  ;;  %v5604_v53 = vpack.c.bf16 %v2257_v39, %v2256_v45  ;;  %v5606_v4 = vpack.c.bf16 %v2637_v40, %v2636_v46 }
 0xeb7   :  { %4358 = vmatpush3.bf16.xpose.msk.msra.mxu1 %vm5398_vm11, %v4333_v21  ;;  %4093 = vmatprep.mubr.msk.f32.mxu1 %vm406_vm0, %v2531_v50  ;;  %v5611_v59 = vpack.c.bf16 %v2829_v43, %v2828_v47  ;;  %v2532_v3 = vmul.f32 0.35355338, %v2530_v60  ;;  %v2724_v56 = vmul.f32 0.35355338, %v2722_v2 }
 0xeb8   :  { %4346 = vmatprep.subr.bf16.mxu0 %v4345_v51  ;;  %4365 = vmatprep.subr.msk.bf16.mxu1 %vm5398_vm11, %v4333_v21 }
 0xeb9   :  { %4348 = vmatpush3.bf16.msra.mxu0 %v4345_v51 }
 0xeba   :  { %4350 = vmatprep.subr.bf16.mxu0 %v5604_v53 }
 0xebe   :  { %4094 = vmatmul.mubr.msk.f32.vlgmr.msra.gmra.mrb[14].mxu1 %vm406_vm0, %v2532_v3 }
 0xebf   :  { %4368 = vmatpush3.bf16.xpose.msk.msra.mxu1 %vm5398_vm11, %v4333_v21  ;;  %4107 = vmatprep.mubr.msk.f32.mxu1 %vm406_vm0, %v2723_v55 }
 0xec6   :  { %4108 = vmatmul.mubr.msk.f32.vlgmr.msra.gmra.mrb[16].mxu1 %vm406_vm0, %v2724_v56 }
 0xf89   :  { %v4067_v57 = vpop.f32.mrb[16].mxu0  ;;  %v4074_v61 = vpop.f32.mrb[12].mxu1 }
 0xf8a   :  { %v2340_v62 = vadd.f32 %v4074_v61, %v5446_v41  ;;  %v2225_v63 = vpop.f32.mrb[17].mxu0  ;;  %v2334_v22 = vpop.f32.mrb[13].mxu1  ;;  %v2231_v5 = vadd.f32 %v4067_v57, %v5446_v41 }
 0xf8b   :  { %v2335_v1 = vadd.f32 %v2334_v22, %v5448_v42  ;;  %v2226_v6 = vadd.f32 %v2225_v63, %v5448_v42 }
 0xf8c   :  { %v2346_v26 = vsel %vm805_vm1, %v2340_v62, -inf  ;;  %v2237_v25 = vsel %vm805_vm1, %v2231_v5, -inf }
 0xf8d   :  { %2347 = vmax.xlane.f32.xlu1 %v2346_v26  ;;  %v2343_v9 = vsel %vm805_vm1, %v2335_v1, -inf  ;;  %v2234_v0 = vsel %vm805_vm1, %v2226_v6, -inf }
 0xf8e   :  { %2344 = vmax.xlane.f32.xlu0 %v2343_v9 }
 0xf91   :  { %v4095_v7 = vpop.f32.mrb[14].mxu1  ;;  %2238 = vmax.xlane.f32.xlu1 %v2237_v25 }
 0xf92   :  { %v2611_v8 = vadd.f32 %v4095_v7, %v5446_v41  ;;  %v2605_v10 = vpop.f32.mrb[15].mxu1  ;;  %2235 = vmax.xlane.f32.xlu0 %v2234_v0 }
 0xf93   :  { %v2606_v11 = vadd.f32 %v2605_v10, %v5448_v42 }
 0xf94   :  { %v2617_v12 = vsel %vm805_vm1, %v2611_v8, -inf }
 0xf95   :  { %2618 = vmax.xlane.f32.xlu1 %v2617_v12  ;;  %v2614_v29 = vsel %vm805_vm1, %v2606_v11, -inf }
 0xf96   :  { %2615 = vmax.xlane.f32.xlu0 %v2614_v29 }
 0xf99   :  { %v4109_v28 = vpop.f32.mrb[16].mxu1 }
 0xf9a   :  { %v2803_v13 = vadd.f32 %v4109_v28, %v5446_v41  ;;  %v2797_v14 = vpop.f32.mrb[17].mxu1 }
 0xf9b   :  { %v2798_v16 = vadd.f32 %v2797_v14, %v5448_v42 }
 0xf9c   :  { %v2809_v17 = vsel %vm805_vm1, %v2803_v13, -inf }
 0xf9d   :  { %2810 = vmax.xlane.f32.xlu1 %v2809_v17  ;;  %v2806_v18 = vsel %vm805_vm1, %v2798_v16, -inf }
 0xf9e   :  { %2807 = vmax.xlane.f32.xlu0 %v2806_v18 }
0x101a   :  { %v2348_v48 = vpop.xlane.xlu1 %2347 }
0x101b   :  { %v2350_v19 = vsub.f32 %v2340_v62, %v2348_v48  ;;  %v2345_v49 = vpop.xlane.xlu0 %2344 }
0x101c   :  { %v2349_v20 = vsub.f32 %v2335_v1, %v2345_v49  ;;  %v2914_v49 = vld [vmem:[%s5792_s2 + $0x8] sm:$0xff] }
0x101d   :  { %v2353_v21 = vmul.f32 1.442695, %v2350_v19  ;;  %v2913_v19 = vld [vmem:[%s5792_s2] sm:$0xff] }
0x101e   :  { %v2351_v23 = vmul.f32 1.442695, %v2349_v20  ;;  %v2239_v24 = vpop.xlane.xlu1 %2238 }
0x101f   :  { %4555 = vpow2.f32 %v2353_v21  ;;  %v2241_v30 = vsub.f32 %v2231_v5, %v2239_v24  ;;  %v2236_v31 = vpop.xlane.xlu0 %2235 }
0x1020   :  { %4557 = vpow2.f32 %v2351_v23  ;;  %v2240_v41 = vsub.f32 %v2226_v6, %v2236_v31  ;;  %v4373_v23 = vpack.c.bf16 %v2914_v49, %v2913_v19  ;;  %v2916_v31 = vld [vmem:[%s5792_s2 + $0x18] sm:$0xff]  ;;  %v3167_v49 = vld [vmem:[%s5233_s24 + $0x30] sm:$0xff] }
0x1021   :  { %v2244_v32 = vmul.f32 1.442695, %v2241_v30  ;;  %v2915_v30 = vld [vmem:[%s5792_s2 + $0x10] sm:$0xff] }
0x1022   :  { %v2242_v42 = vmul.f32 1.442695, %v2240_v41  ;;  %v2619_v33 = vpop.xlane.xlu1 %2618 }
0x1023   :  { %4559 = vpow2.f32 %v2244_v32  ;;  %v2621_v34 = vsub.f32 %v2611_v8, %v2619_v33  ;;  %v2616_v35 = vpop.xlane.xlu0 %2615  ;;  %v4377_v32 = vpack.c.bf16 %v2916_v31, %v2915_v30  ;;  %v3171_v30 = vld [vmem:[%s5233_s24 + $0x50] sm:$0xff]  ;;  %v3172_v31 = vld [vmem:[%s5233_s24 + $0x58] sm:$0xff] }
0x1024   :  { %4561 = vpow2.f32 %v2242_v42  ;;  %v2620_v36 = vsub.f32 %v2606_v11, %v2616_v35 }
0x1025   :  { %v2624_v37 = vmul.f32 1.442695, %v2621_v34  ;;  %v3697_v34 = vld [vmem:[%s5793_s7] ss:$0 sm:$0xff] }
0x1026   :  { %v2622_v38 = vmul.f32 1.442695, %v2620_v36 }
0x1027   :  { %4563 = vpow2.f32 %v2624_v37 }
0x1028   :  { %4565 = vpow2.f32 %v2622_v38 }
0x1029   :  { %v4556_v39 = vpop.eup %4555 }
0x102a   :  { %v4558_v40 = vpop.eup %4557  ;;  %v2811_v43 = vpop.xlane.xlu1 %2810  ;;  %v2358_v44 = vsel %vm805_vm1, %v4556_v39, 0.0 }
0x102b   :  { %v2813_v45 = vsub.f32 %v2803_v13, %v2811_v43  ;;  %2359 = vadd.xlane.f32.xlu1 %v2358_v44  ;;  %v2808_v46 = vpop.xlane.xlu0 %2807  ;;  %v2355_v47 = vsel %vm805_vm1, %v4558_v40, 0.0 }
0x102c   :  { %v2812_v50 = vsub.f32 %v2798_v16, %v2808_v46  ;;  %2356 = vadd.xlane.f32.xlu0 %v2355_v47 }
0x102d   :  { %v4560_v51 = vpop.eup %4559  ;;  %v2816_v60 = vmul.f32 1.442695, %v2813_v45 }
0x102e   :  { %v4562_v54 = vpop.eup %4561  ;;  %v2814_v3 = vmul.f32 1.442695, %v2812_v50  ;;  %v2249_v55 = vsel %vm805_vm1, %v4560_v51, 0.0 }
0x102f   :  { %4567 = vpow2.f32 %v2816_v60  ;;  %2250 = vadd.xlane.f32.xlu1 %v2249_v55  ;;  %v2246_v2 = vsel %vm805_vm1, %v4562_v54, 0.0  ;;  %v3054_v55 = vld [vmem:[%s5794_s10 + $0x8] sm:$0xff] }
0x1030   :  { %4569 = vpow2.f32 %v2814_v3  ;;  %2247 = vadd.xlane.f32.xlu0 %v2246_v2  ;;  %v3053_v3 = vld [vmem:[%s5794_s10] sm:$0xff]  ;;  %v3055_v2 = vld [vmem:[%s5794_s10 + $0x10] sm:$0xff] }
0x1031   :  { %v4564_v56 = vpop.eup %4563 }
0x1032   :  { %v4566_v57 = vpop.eup %4565  ;;  %v2629_v61 = vsel %vm805_vm1, %v4564_v56, 0.0 }
0x1033   :  { %2630 = vadd.xlane.f32.xlu1 %v2629_v61  ;;  %v2626_v62 = vsel %vm805_vm1, %v4566_v57, 0.0 }
0x1034   :  { %2627 = vadd.xlane.f32.xlu0 %v2626_v62 }
0x1039   :  { %v4568_v63 = vpop.eup %4567 }
0x103a   :  { %v4570_v22 = vpop.eup %4569  ;;  %v2821_v1 = vsel %vm805_vm1, %v4568_v63, 0.0 }
0x103b   :  { %2822 = vadd.xlane.f32.xlu1 %v2821_v1  ;;  %v2818_v5 = vsel %vm805_vm1, %v4570_v22, 0.0 }
0x103c   :  { %2819 = vadd.xlane.f32.xlu0 %v2818_v5 }
0x10b8   :  { %v2360_v26 = vpop.xlane.xlu1 %2359 }
0x10b9   :  { %4571 = vrcp.f32 %v2360_v26  ;;  %v2357_v6 = vpop.xlane.xlu0 %2356 }
0x10ba   :  { %4573 = vrcp.f32 %v2357_v6 }
0x10bc   :  { %v2251_v25 = vpop.xlane.xlu1 %2250 }
0x10bd   :  { %v2248_v9 = vpop.xlane.xlu0 %2247 }
0x10be   :  { %4575 = vrcp.f32 %v2248_v9  ;;  %v3698_v9 = vld [vmem:[%s5795_s11] ss:$0 sm:$0xff] }
0x10bf   :  { %4577 = vrcp.f32 %v2251_v25 }
0x10c0   :  { %v2631_v12 = vpop.xlane.xlu1 %2630 }
0x10c1   :  { %v2628_v7 = vpop.xlane.xlu0 %2627 }
0x10c2   :  { %4579 = vrcp.f32 %v2628_v7 }
0x10c3   :  { %v4572_v0 = vpop.eup %4571  ;;  %4581 = vrcp.f32 %v2631_v12 }
0x10c4   :  { %v4574_v8 = vpop.eup %4573  ;;  %v2364_v11 = vmul.f32 %v4572_v0, %v4556_v39 }
0x10c5   :  { %v2362_v10 = vmul.f32 %v4574_v8, %v4558_v40  ;;  %v3699_v8 = vld [vmem:[%s5796_s27] ss:$0 sm:$0xff] }
0x10c7   :  { %4079 = vmatprep.mubr.msk.f32.mxu0 %vm805_vm1, %v2362_v10 }
0x10c8   :  { %v4576_v29 = vpop.eup %4575  ;;  %4080 = vmatmul.mubr.msk.f32.vlgmr.msra.gmra.mrb[18].mxu0 %vm805_vm1, %v2364_v11  ;;  %v2823_v18 = vpop.xlane.xlu1 %2822 }
0x10c9   :  { %4352 = vmatpush3.bf16.msra.mxu0 %v5604_v53  ;;  %v2820_v28 = vpop.xlane.xlu0 %2819  ;;  %v2253_v13 = vmul.f32 %v4576_v29, %v4562_v54  ;;  %v4578_v14 = vpop.eup %4577 }
0x10ca   :  { %4360 = vmatprep.subr.bf16.mxu0 %v5606_v4  ;;  %4583 = vrcp.f32 %v2820_v28  ;;  %v2255_v17 = vmul.f32 %v4578_v14, %v4560_v51  ;;  %v3161_v28 = vld [vmem:[%s5233_s24] sm:$0xff] }
0x10cb   :  { %4086 = vmatprep.mubr.msk.f32.mxu0 %vm805_vm1, %v2253_v13  ;;  %4585 = vrcp.f32 %v2823_v18  ;;  %v3162_v13 = vld [vmem:[%s5233_s24 + $0x8] sm:$0xff] }
0x10cc   :  { %v4580_v16 = vpop.eup %4579  ;;  %v4389_v14 = vpack.c.bf16 %v3162_v13, %v3161_v28 }
0x10cd   :  { %v2633_v48 = vmul.f32 %v4580_v16, %v4566_v57  ;;  %v4582_v53 = vpop.eup %4581  ;;  %v3056_v57 = vld [vmem:[%s5794_s10 + $0x18] sm:$0xff]  ;;  %v3163_v16 = vld [vmem:[%s5233_s24 + $0x10] sm:$0xff] }
0x10ce   :  { %v2635_v21 = vmul.f32 %v4582_v53, %v4564_v56  ;;  %v4381_v56 = vpack.c.bf16 %v3054_v55, %v3053_v3  ;;  %v4385_v61 = vpack.c.bf16 %v3056_v57, %v3055_v2  ;;  %v3166_v53 = vld [vmem:[%s5233_s24 + $0x28] sm:$0xff]  ;;  %v3264_v57 = vstv %s5797_s9 }
0x10cf   :  { %vm3265_vm3 = vcmp.eq.s32.totalorder %v5347_v52, %v3264_v57 }
0x10d0   :  { %4087 = vmatmul.mubr.msk.f32.vlgmr.msra.gmra.mrb[18].mxu0 %vm805_vm1, %v2255_v17  ;;  %4382 = vmatprep.subr.bf16.mxu1 %v4381_v56  ;;  %v3164_v17 = vld [vmem:[%s5233_s24 + $0x18] sm:$0xff] }
0x10d1   :  { %4362 = vmatpush3.bf16.msra.mxu0 %v5606_v4  ;;  %4100 = vmatprep.mubr.msk.f32.mxu0 %vm805_vm1, %v2633_v48  ;;  %v4393_v18 = vpack.c.bf16 %v3164_v17, %v3163_v16  ;;  %v3165_v48 = vld [vmem:[%s5233_s24 + $0x20] sm:$0xff] }
0x10d2   :  { %4370 = vmatprep.subr.bf16.mxu0 %v5611_v59  ;;  %4384 = vmatpush3.bf16.msra.mxu1 %v4381_v56  ;;  %v4397_v19 = vpack.c.bf16 %v3166_v53, %v3165_v48  ;;  %v5038_v56 = vmov 0.0|0.0  }
0x10d3   :  { %4386 = vmatprep.subr.bf16.mxu1 %v4385_v61 }
0x10d4   :  { %v4584_v20 = vpop.eup %4583 }
0x10d5   :  { %v2825_v24 = vmul.f32 %v4584_v20, %v4570_v22  ;;  %v4586_v4 = vpop.eup %4585  ;;  %v3168_v20 = vld [vmem:[%s5233_s24 + $0x38] sm:$0xff] }
0x10d6   :  { %v2827_v41 = vmul.f32 %v4586_v4, %v4568_v63  ;;  %4388 = vmatpush3.bf16.msra.mxu1 %v4385_v61 }
0x10d7   :  { %4421 = vmatprep.subr.bf16.mxu1 %v5038_v56 }
0x10d8   :  { %4101 = vmatmul.mubr.msk.f32.vlgmr.msra.gmra.mrb[18].mxu0 %vm805_vm1, %v2635_v21  ;;  %v4401_v21 = vpack.c.bf16 %v3168_v20, %v3167_v49  ;;  %v3707_v20 = vld [vmem:[#allocation8] ss:$0 sm:$0xff] }
0x10d9   :  { %4372 = vmatpush3.bf16.msra.mxu0 %v5611_v59  ;;  %4114 = vmatprep.mubr.msk.f32.mxu0 %vm805_vm1, %v2825_v24  ;;  %v3170_v24 = vld [vmem:[%s5233_s24 + $0x48] sm:$0xff] }
0x10da   :  { %4374 = vmatprep.subr.bf16.mxu0 %v4373_v23 }
0x10e0   :  { %4115 = vmatmul.mubr.msk.f32.vlgmr.msra.gmra.mrb[18].mxu0 %vm805_vm1, %v2827_v41  ;;  %v4409_v41 = vpack.c.bf16 %v3172_v31, %v3171_v30 }
0x10e1   :  { %4376 = vmatpush3.bf16.msra.mxu0 %v4373_v23  ;;  %v3169_v23 = vld [vmem:[%s5233_s24 + $0x40] sm:$0xff] }
0x10e2   :  { %4378 = vmatprep.subr.bf16.mxu0 %v4377_v32  ;;  %v4405_v4 = vpack.c.bf16 %v3170_v24, %v3169_v23  ;;  %v3708_v23 = vld [vmem:[#allocation10] ss:$0 sm:$0xff] }
0x10e5   :  { %4380 = vmatpush3.bf16.msra.mxu0 %v4377_v32  ;;  %v3173_v32 = vld [vmem:[%s5233_s24 + $0x60] sm:$0xff] }
0x10e6   :  { %4390 = vmatprep.subr.bf16.mxu0 %v4389_v14 }
0x11b3   :  { %v4116_v42 = vpop.f32.mrb[18].mxu0 }
0x11b4   :  { %v2902_v33 = vpop.f32.mrb[19].mxu0 }
0x11b5   :  { %4125 = vmatprep.mubr.msk.f32.mxu0 %vm406_vm0, %v2902_v33 }
0x11b6   :  { %4126 = vmatmul.mubr.msk.f32.vlgmr.msra.gmra.mrb[20].mxu0 %vm406_vm0, %v4116_v42  ;;  %v3174_v42 = vld [vmem:[%s5233_s24 + $0x68] sm:$0xff] }
0x11b7   :  { %4392 = vmatpush3.bf16.msra.mxu0 %v4389_v14  ;;  %v4413_v33 = vpack.c.bf16 %v3174_v42, %v3173_v32 }
0x11b8   :  { %4394 = vmatprep.subr.bf16.mxu0 %v4393_v18 }
0x11bb   :  { %4396 = vmatpush3.bf16.msra.mxu0 %v4393_v18 }
0x11bc   :  { %4398 = vmatprep.subr.bf16.mxu0 %v4397_v19 }
0x11bf   :  { %4400 = vmatpush3.bf16.msra.mxu0 %v4397_v19 }
0x11c0   :  { %4402 = vmatprep.subr.bf16.mxu0 %v4401_v21 }
0x11c3   :  { %4404 = vmatpush3.bf16.msra.mxu0 %v4401_v21 }
0x11c4   :  { %4406 = vmatprep.subr.bf16.mxu0 %v4405_v4 }
0x11c7   :  { %4408 = vmatpush3.bf16.msra.mxu0 %v4405_v4 }
0x11c8   :  { %4410 = vmatprep.subr.bf16.mxu0 %v4409_v41 }
0x11cb   :  { %4412 = vmatpush3.bf16.msra.mxu0 %v4409_v41 }
0x11cc   :  { %4414 = vmatprep.subr.bf16.mxu0 %v4413_v33 }
0x11cf   :  { %4416 = vmatpush3.bf16.msra.mxu0 %v4413_v33 }
0x1289   :  { %v4127_v59 = vpop.f32.mrb[20].mxu0 }
0x128a   :  { %v2999_v35 = vadd.f32 %v4127_v59, %v5545_v27  ;;  %v2989_v36 = vpop.f32.mrb[21].mxu0  ;;  %v3175_v59 = vld [vmem:[%s5233_s24 + $0x70] sm:$0xff] }
0x128b   :  { %v2998_v37 = vadd.f32 %v2989_v36, %v5547_v15  ;;  %v3700_v36 = vld [vmem:[%s5228_s20] ss:$0 sm:$0xff]  ;;  %s5798_s20 = sld [smem:[#allocation38_spill]] }
0x128c   :  { %v5670_v38 = vadd.f32 %v3697_v34, %v2999_v35 }
0x128d   :  { %v5672_v39 = vadd.f32 %v3697_v34, %v2998_v37  ;;  %v3176_v34 = vld [vmem:[%s5233_s24 + $0x78] sm:$0xff]  ;;  %s3267_s24 = sadd.s32 8, %s5797_s9 }
0x128e   :  { %v3014_v40 = vsel %vm406_vm0, %v5670_v38, 0.0  ;;  %v4417_v35 = vpack.c.bf16 %v3176_v34, %v3175_v59  ;;  %v3268_v61 = vstv %s3267_s24 }
0x128f   :  { %3015 = vadd.xlane.f32.xlu1 %v3014_v40  ;;  %v3011_v43 = vsel %vm406_vm0, %v5672_v39, 0.0  ;;  %vm3269_vm4 = vcmp.eq.s32.totalorder %v5347_v52, %v3268_v61 }
0x1290   :  { %3012 = vadd.xlane.f32.xlu0 %v3011_v43  ;;  %4418 = vmatprep.subr.bf16.mxu0 %v4417_v35 }
0x1291   :  { %4420 = vmatpush3.bf16.msra.mxu0 %v4417_v35  ;;  %v3376_v28 = vld [vmem:[%s5798_s20] sm:$0xff]  ;;  %v3377_v13 = vld [vmem:[%s5798_s20 + $0x8] sm:$0xff]  ;;  %v3378_v16 = vld [vmem:[%s5798_s20 + $0x10] sm:$0xff] }
0x1292   :  { %v4425_v14 = vpack.c.bf16 %v3377_v13, %v3376_v28  ;;  %v3379_v17 = vld [vmem:[%s5798_s20 + $0x18] sm:$0xff] }
0x1293   :  { %v4428_v18 = vpack.c.bf16 %v3379_v17, %v3378_v16 }
0x131c   :  { %v3016_v44 = vpop.xlane.xlu1 %3015 }
0x131d   :  { %v3018_v27 = vmul.f32 0.03125, %v3016_v44  ;;  %v3013_v45 = vpop.xlane.xlu0 %3012 }
0x131e   :  { %v3017_v15 = vmul.f32 0.03125, %v3013_v45 }
0x131f   :  { %v3020_v46 = vsub.f32 %v5670_v38, %v3018_v27 }
0x1320   :  { %v3019_v47 = vsub.f32 %v5672_v39, %v3017_v15 }
0x1321   :  { %v3022_v50 = vmul.f32 %v3020_v46, %v3020_v46 }
0x1322   :  { %v3021_v51 = vmul.f32 %v3019_v47, %v3019_v47 }
0x1323   :  { %v3026_v60 = vsel %vm406_vm0, %v3022_v50, 0.0 }
0x1324   :  { %3027 = vadd.xlane.f32.xlu1 %v3026_v60  ;;  %v3023_v54 = vsel %vm406_vm0, %v3021_v51, 0.0 }
0x1325   :  { %3024 = vadd.xlane.f32.xlu0 %v3023_v54 }
0x13b1   :  { %v3028_v62 = vpop.xlane.xlu1 %3027 }
0x13b2   :  { %v3030_v63 = vmul.f32 0.03125, %v3028_v62  ;;  %v3025_v22 = vpop.xlane.xlu0 %3024 }
0x13b3   :  { %v3029_v1 = vmul.f32 0.03125, %v3025_v22 }
0x13b4   :  { %v3032_v5 = vadd.f32 1e-05, %v3030_v63  ;;  %v3705_v63 = vld [vmem:[%s5238_s6] ss:$0 sm:$0xff] }
0x13b5   :  { %v3031_v26 = vadd.f32 1e-05, %v3029_v1 }
0x13b6   :  { %4587 = vrsqrt.f32 %v3032_v5 }
0x13b7   :  { %4589 = vrsqrt.f32 %v3031_v26 }
0x13c0   :  { %v4588_v6 = vpop.eup %4587 }
0x13c1   :  { %v4590_v25 = vpop.eup %4589  ;;  %v3036_v7 = vmul.f32 %v4588_v6, %v3020_v46 }
0x13c2   :  { %v3035_v0 = vmul.f32 %v4590_v25, %v3019_v47  ;;  %v3270_v25 = vsel %vm3269_vm4, 1.0, %v5036_v58 }
0x13c3   :  { %v3044_v10 = vmul.f32 %v3698_v9, %v3036_v7 }
0x13c4   :  { %v3043_v11 = vmul.f32 %v3698_v9, %v3035_v0  ;;  %v3266_v9 = vsel %vm3265_vm3, 1.0, %v5036_v58 }
0x13c5   :  { %v3052_v29 = vadd.f32 %v3699_v8, %v3044_v10  ;;  %v3272_v0 = vsel %vm3271_vm5, %v3266_v9, %v3270_v25 }
0x13c6   :  { %v3051_v12 = vadd.f32 %v3699_v8, %v3043_v11 }
0x13c8   :  { %4136 = vmatprep.mubr.msk.f32.mxu1 %vm406_vm0, %v3051_v12 }
0x13c9   :  { %4137 = vmatmul.mubr.msk.f32.vlgmr.msra.gmra.mrb[18].mxu1 %vm406_vm0, %v3052_v29 }
0x13ca   :  { %4178 = vmatprep.mubr.msk.f32.mxu1 %vm5039_vm2, %v5036_v58 }
0x149c   :  { %v4138_v37 = vpop.f32.mrb[18].mxu1 }
0x149d   :  { %v3142_v40 = vadd.f32 %v4138_v37, %v3700_v36  ;;  %v3136_v43 = vpop.f32.mrb[19].mxu1 }
0x149e   :  { %v3137_v44 = vadd.f32 %v3700_v36, %v3136_v43 }
0x149f   :  { %v3704_v27 = vmul.f32 -1.702, %v3142_v40 }
0x14a0   :  { %v3703_v45 = vmul.f32 -1.702, %v3137_v44 }
0x14a1   :  { %v3151_v15 = vmul.f32 1.442695, %v3704_v27 }
0x14a2   :  { %v3149_v46 = vmul.f32 1.442695, %v3703_v45 }
0x14a3   :  { %4591 = vpow2.f32 %v3151_v15 }
0x14a4   :  { %4593 = vpow2.f32 %v3149_v46 }
0x14ad   :  { %v4592_v47 = vpop.eup %4591 }
0x14ae   :  { %v4594_v50 = vpop.eup %4593  ;;  %v3154_v51 = vadd.f32 1.0, %v4592_v47 }
0x14af   :  { %v3153_v60 = vadd.f32 1.0, %v4594_v50 }
0x14b0   :  { %4595 = vrcp.f32 %v3154_v51 }
0x14b1   :  { %4597 = vrcp.f32 %v3153_v60 }
0x14ba   :  { %v4596_v54 = vpop.eup %4595 }
0x14bb   :  { %v4598_v3 = vpop.eup %4597  ;;  %v3160_v2 = vmul.f32 %v4596_v54, %v3142_v40 }
0x14bc   :  { %v3159_v55 = vmul.f32 %v4598_v3, %v3137_v44 }
0x14be   :  { %4171 = vmatprep.mubr.f32.mxu0 %v3159_v55 }
0x14bf   :  { %4172 = vmatmul.mubr.f32.vlgmr.msra.gmra.mrb[22].mxu0 %v3160_v2 }
0x1592   :  { %v4173_v62 = vpop.f32.mrb[22].mxu0 }
0x1593   :  { %v3253_v22 = vadd.f32 %v4173_v62, %v5670_v38  ;;  %v3243_v1 = vpop.f32.mrb[23].mxu0 }
0x1594   :  { %v3252_v5 = vadd.f32 %v3243_v1, %v5672_v39 }
0x1595   :  { %v3262_v26 = vadd.f32 %v3705_v63, %v3253_v22 }
0x1596   :  { %v3261_v6 = vadd.f32 %v3705_v63, %v3252_v5 }
0x1598   :  { %v4422_v7 = vpack.c.bf16 %v3262_v26, %v3261_v6 }
0x159a   :  { %4423 = vmatpush3.bf16.msra.mxu1 %v4422_v7 }
0x159b   :  { %4424 = vmatprep.subr.bf16.mxu1 %v5038_v56 }
0x159d   :  { %4179 = vmatmul.mubr.msk.f32.vlgmr.msra.gmra.mrb[20].mxu1 %vm805_vm1, %v3272_v0 }
0x159e   :  { %4189 = vmatprep.mubr.msk.f32.mxu1 %vm5039_vm2, %v5036_v58  ;;  %4426 = vmatpush3.bf16.msra.mxu1 %v4425_v14 }
0x159f   :  { %4427 = vmatprep.subr.bf16.mxu1 %v5038_v56 }
0x15a2   :  { %4429 = vmatpush3.bf16.msra.mxu1 %v4428_v18 }
0x15a3   :  { %4192 = vmatprep.subr.mxu1 %v5036_v58 }
0x1670   :  { %v3342_v52 = vpop.f32.mrb[20].mxu1 }
0x1671   :  { %v4180_v38 = vpop.f32.mrb[21].mxu1  ;;  %v3349_v39 = vsel %vm3348_vm6, %v3342_v52, 0.0 }
0x1672   :  { %3350 = vadd.xlane.f32.xlu0 %v3349_v39 }
0x16ff   :  { %v3351_v8 = vpop.xlane.xlu0 %3350 }
0x1700   :  { %v3352_v10 = vmul.f32 0.03125, %v3351_v8 }
0x1702   :  { %v3353_v11 = vsub.f32 %v3342_v52, %v3352_v10 }
0x1704   :  { %v3354_v12 = vmul.f32 %v3353_v11, %v3353_v11 }
0x1706   :  { %v3355_v29 = vsel %vm3348_vm6, %v3354_v12, 0.0 }
0x1707   :  { %3356 = vadd.xlane.f32.xlu1 %v3355_v29 }
0x1794   :  { %v3357_v48 = vpop.xlane.xlu1 %3356 }
0x1795   :  { %v3358_v53 = vmul.f32 0.03125, %v3357_v48 }
0x1797   :  { %v3359_v19 = vadd.f32 1e-05, %v3358_v53 }
0x1799   :  { %4599 = vrsqrt.f32 %v3359_v19 }
0x17a3   :  { %v4600_v49 = vpop.eup %4599 }
0x17a4   :  { %v3361_v21 = vmul.f32 %v4600_v49, %v3353_v11 }
0x17a6   :  { %v3368_v24 = vmul.f32 %v3707_v20, %v3361_v21 }
0x17a8   :  { %v3375_v4 = vadd.f32 %v3708_v23, %v3368_v24 }
0x17aa   :  { %4190 = vmatmul.mubr.msk.f32.vlgmr.msra.gmra.mrb[22].mxu1 %vm406_vm0, %v3375_v4 }
0x17ab   :  { %4194 = vmatprep.mubr.msk.f32.mxu1 %vm5039_vm2, %v5036_v58  ;;  %v3466_v58 = vld [vmem:[#allocation7] sm:$0x3] }
0x187d   :  { %v3449_v30 = vpop.f32.mrb[22].mxu1 }
0x187e   :  { %v3453_v31 = vmul.f32 %v3449_v30, %v3449_v30  ;;  %v4191_v41 = vpop.f32.mrb[23].mxu1 }
0x1880   :  { %v3454_v32 = vsel %vm3348_vm6, %v3453_v31, 0.0 }
0x1881   :  { %3455 = vadd.xlane.f32.xlu0 %v3454_v32 }
0x190e   :  { %v3456_v42 = vpop.xlane.xlu0 %3455 }
0x190f   :  { %4601 = vrsqrt.f32 %v3456_v42  ;;  %vm3459_vm7 = vcmp.eq.f32.partialorder %v3456_v42, inf  ;;  %v3462_v34 = vand.u32 2147483648, %v3456_v42  ;;  %vm3461_vm8 = vcmp.eq.f32.partialorder %v3456_v42, 0.0 }
0x1919   :  { %v4602_v33 = vpop.eup %4601 }
0x191a   :  { %v3458_v59 = vmul.f32 %v4602_v33, %v3456_v42 }
0x191c   :  { %v3460_v35 = vsel %vm3459_vm7, %v3456_v42, %v3458_v59 }
0x191d   :  { %v3463_v36 = vsel %vm3461_vm8, %v3462_v34, %v3460_v35 }
0x191e   :  { %4603 = vrcp.f32 %v3463_v36 }
0x1928   :  { %v4604_v37 = vpop.eup %4603 }
0x1929   :  { %v3465_v40 = vmul.f32 %v4604_v37, %v3449_v30 }
0x192b   :  { %4193 = vmatpush3.xpose.msk.msra.mxu1 %vm406_vm0, %v3465_v40 }
0x192e   :  { %4195 = vmatmul.mubr.msk.f32.vlgmr.msra.gmra.mrb[24].mxu1 %vm406_vm0, %v3466_v58 }
0x1a01   :  { %v3539_v43 = vpop.f32.mrb[24].mxu1 }
0x1a02   :  { %v3543_v44 = vmul.f32 100.0, %v3539_v43  ;;  %v4196_v27 = vpop.f32.mrb[25].mxu1 }
0x1a04   :  { %v3545_v45 = vsel %vm3544_vm9, %v3543_v44, -inf }
0x1a05   :  { %3546 = vmax.xlane.f32.xlu1 %v3545_v45 }
0x1a92   :  { %v3547_v15 = vpop.xlane.xlu1 %3546 }
0x1a93   :  { %v3548_v46 = vsub.f32 %v3543_v44, %v3547_v15 }
0x1a95   :  { %v3549_v47 = vmul.f32 1.442695, %v3548_v46 }
0x1a97   :  { %4605 = vpow2.f32 %v3549_v47 }
0x1aa1   :  { %v4606_v50 = vpop.eup %4605 }
0x1aa2   :  { %v3551_v51 = vsel %vm3544_vm9, %v4606_v50, 0.0 }
0x1aa3   :  { %3552 = vadd.xlane.f32.xlu0 %v3551_v51 }
0x1b30   :  { %v3553_v60 = vpop.xlane.xlu0 %3552 }
0x1b31   :  { %4607 = vrcp.f32 %v3553_v60 }
0x1b3b   :  { %v4608_v54 = vpop.eup %4607 }
0x1b3c   :  { %v3555_v3 = vmul.f32 %v4608_v54, %v4606_v50 }
0x1b3e   :  { %3557 = vst.msk [vmem:[%s5243_s14] sm:$0x3] %vm3556_vm10, %v3555_v3 }
0x1b3f   :  { %3562 = vsyncpa [#allocation4], 1 }
0x1b40   :  { %3563 = vsyncpa [#allocation6], 1 }
0x1b41   :  { %3564 = vsyncpa [#allocation9], 1 }
0x1b42   :  { %3565 = vsyncpa [#allocation12], 1 }
0x1b43   :  { %3566 = vsyncpa [#allocation15], 1 }
0x1b44   :  { %3567 = vsyncpa [#allocation18], 1 }
0x1b45   :  { %3568 = vsyncpa [#allocation21], 1 }
0x1b46   :  { %3569 = vsyncpa [#allocation24], 1 }
0x1b47   :  { %3570 = vsyncpa [#allocation27], 1 }

</bundles_post_ra>
